<compile_context>
chip_gen: v6e
topology: v6e:2x2x1
jax: 0.10.0
libtpu: 0.0.40
codegen_flags: <defaults>
</compile_context>

<pallas_src>
import functools

import jax
import jax.numpy as jnp
from jax import lax
from jax.experimental import pallas as pl
from jax.experimental.pallas import tpu as pltpu


def unfolded_huber_kernel(x_ref, u0_ref, v0_ref, out_ref, *,
                          delta, lamda, mu, total_steps):
    """Single-invocation kernel: all layers*iter Huber-gradient steps unrolled.

    U and V (and their bf16 copies) are carried as loop values, so there is no
    scratch load/store per layer and no per-grid-step overhead.
    """
    x = x_ref[...]
    c1 = 1.0 - mu * lamda          # strength-reduced damping constant

    u0 = u0_ref[...]
    v0 = v0_ref[...]
    carry0 = (u0, u0.astype(jnp.bfloat16), v0, v0.astype(jnp.bfloat16))

    def step(_, carry):
        u, ub, v, vb = carry

        # Reconstruction + Huber influence function (clipped residual), f32
        # elementwise (portable: v5e VPU has no bf16 path).
        pred = lax.dot_general(ub, vb, (((1,), (0,)), ((), ())),
                               preferred_element_type=jnp.float32)
        psi = jnp.clip(x - pred, -delta, delta)
        pb = psi.astype(jnp.bfloat16)

        # U <- (1 - mu*lamda) * U + mu * (psi @ V^T)
        # A @ B^T pattern: contract the n2 axes; any relayout hits only the
        # small (16,128) vb operand.
        gu = lax.dot_general(pb, vb, (((1,), (1,)), ((), ())),
                             preferred_element_type=jnp.float32)
        u_new = c1 * u + mu * gu
        ub_new = u_new.astype(jnp.bfloat16)     # cast once; reused next step

        # V <- (1 - mu*lamda) * V + mu * (U_new^T @ psi)   (Gauss–Seidel)
        # Transpose the SMALL operand explicitly (64x16 f32 through the XLU)
        # so this is a native (16,64)x(64,128) MKxKN matmul and the big psi
        # tile keeps its layout.
        ub_t = jnp.transpose(u_new).astype(jnp.bfloat16)
        gv = lax.dot_general(ub_t, pb, (((1,), (0,)), ((), ())),
                             preferred_element_type=jnp.float32)
        v_new = c1 * v + mu * gv
        vb_new = v_new.astype(jnp.bfloat16)     # cast once; reused next step

        return (u_new, ub_new, v_new, vb_new)

    # Fully unroll the small layers*iter loop so the LLO scheduler can keep
    # back-to-back MXU pushes in flight (rank-16 matmuls are drain-bound).
    _, ub, _, vb = lax.fori_loop(0, total_steps, step, carry0, unroll=True)

    # Final prediction U @ V, reusing the carried bf16 copies (no extra cast).
    out_ref[...] = lax.dot_general(ub, vb, (((1,), (0,)), ((), ())),
                                   preferred_element_type=jnp.float32)


def unfolded_net_huber(x, U, V, *, sigma, c, lamda, mu, layers, iters):
    """Forward pass: pred_matrix = Huber-unrolled factorization of x."""
    n1, n2 = x.shape

    kernel = functools.partial(
        unfolded_huber_kernel,
        delta=float(c) * float(sigma),
        lamda=float(lamda),
        mu=float(mu),
        total_steps=int(layers) * int(iters),
    )

    # No grid: one invocation, full arrays resident in VMEM (<100 KiB total).
    # If the net is ever scaled up, raise vmem_limit_bytes via
    # pltpu.CompilerParams before introducing any tiling.
    return pl.pallas_call(
        kernel,
        out_shape=jax.ShapeDtypeStruct((n1, n2), jnp.float32),
        in_specs=[
            pl.BlockSpec(memory_space=pltpu.MemorySpace.VMEM),  # x
            pl.BlockSpec(memory_space=pltpu.MemorySpace.VMEM),  # U0
            pl.BlockSpec(memory_space=pltpu.MemorySpace.VMEM),  # V0
        ],
        out_specs=pl.BlockSpec(memory_space=pltpu.MemorySpace.VMEM),
    )(x, U, V)


def unfolded_huber_reference(x, U, V, *, sigma, c, lamda, mu, layers, iters):
    """Pure-JAX reference (same math, same bf16-operand/f32-accum matmuls)."""
    delta = float(c) * float(sigma)
    c1 = 1.0 - float(mu) * float(lamda)
    u, v = U, V
    for _ in range(int(layers) * int(iters)):
        ub, vb = u.astype(jnp.bfloat16), v.astype(jnp.bfloat16)
        r = x - jnp.dot(ub, vb, preferred_element_type=jnp.float32)
        pb = jnp.clip(r, -delta, delta).astype(jnp.bfloat16)
        u = c1 * u + mu * jnp.dot(pb, vb.T, preferred_element_type=jnp.float32)
        v = c1 * v + mu * jnp.dot(u.astype(jnp.bfloat16).T, pb,
                                  preferred_element_type=jnp.float32)
    return jnp.dot(u.astype(jnp.bfloat16), v.astype(jnp.bfloat16),
                   preferred_element_type=jnp.float32)


if __name__ == "__main__":
    # Small deterministic params. initial_mu is inside the stability bound of
    # the un-normalized Huber gradient step at these sizes
    # (mu < 2 / sigma_max(V V^T) ~ 0.008).
    params = dict(
        size1=64,          # n1
        size2=128,         # n2
        rank=16,
        layers=5,
        iter=3,
        initial_sigma=1.0,
        initial_c=1.345,
        initial_lamda=0.1,
        initial_mu=0.002,
        CalInGPU=False,
    )
    n1, n2, rank = params["size1"], params["size2"], params["rank"]

    key = jax.random.PRNGKey(0)
    k_u, k_v, k_x = jax.random.split(key, 3)
    U0 = jax.random.normal(k_u, (n1, rank), dtype=jnp.float32)
    V0 = jax.random.normal(k_v, (rank, n2), dtype=jnp.float32)
    x = jax.random.normal(k_x, (n1, n2), dtype=jnp.float32)

    hyper = dict(
        sigma=params["initial_sigma"],
        c=params["initial_c"],
        lamda=params["initial_lamda"],
        mu=params["initial_mu"],
        layers=params["layers"],
        iters=params["iter"],
    )

    pred = unfolded_net_huber(x, U0, V0, **hyper)
    pred = jax.block_until_ready(pred)

    ref = unfolded_huber_reference(x, U0, V0, **hyper)
    ref = jax.block_until_ready(ref)

    assert pred.shape == (n1, n2) and pred.dtype == jnp.float32
    assert bool(jnp.all(jnp.isfinite(pred)))
    err = float(jnp.max(jnp.abs(pred - ref)))
    scale = float(jnp.max(jnp.abs(ref))) + 1e-6
    assert err <= 1e-2 * scale + 1e-3, f"kernel/reference mismatch: {err} vs scale {scale}"
    print("KERNEL_OK")
</pallas_src>

<mosaic_0001>
module attributes {stable_mosaic.version = 11 : i64} {
  func.func @unfolded_huber_kernel(%arg0: memref<64x128xf32, #tpu.memory_space<vmem>>, %arg1: memref<64x16xf32, #tpu.memory_space<vmem>>, %arg2: memref<16x128xf32, #tpu.memory_space<vmem>>, %arg3: memref<64x128xf32, #tpu.memory_space<vmem>>) attributes {dimension_semantics = [], scalar_prefetch = 0 : i64, scratch_operands = 0 : i64, tpu.core_type = #tpu.core_type<tc>} {
    %c0 = arith.constant 0 : index
    %c0_0 = arith.constant 0 : index
    %0 = vector.load %arg0[%c0, %c0_0] : memref<64x128xf32, #tpu.memory_space<vmem>>, vector<64x128xf32>
    %c0_1 = arith.constant 0 : index
    %c0_2 = arith.constant 0 : index
    %1 = vector.load %arg1[%c0_1, %c0_2] : memref<64x16xf32, #tpu.memory_space<vmem>>, vector<64x16xf32>
    %c0_3 = arith.constant 0 : index
    %c0_4 = arith.constant 0 : index
    %2 = vector.load %arg2[%c0_3, %c0_4] : memref<16x128xf32, #tpu.memory_space<vmem>>, vector<16x128xf32>
    %3 = arith.truncf %1 : vector<64x16xf32> to vector<64x16xbf16>
    %4 = arith.truncf %2 : vector<16x128xf32> to vector<16x128xbf16>
    %c0_i32 = arith.constant 0 : i32
    %cst = arith.constant dense<0.000000e+00> : vector<64x128xf32>
    %5 = tpu.matmul %3, %4, %cst {dimension_numbers = #tpu.dot_dimension_numbers<[1], [0], [0], [1], [0, 0, 1, 1], [], []>} : vector<64x16xbf16>, vector<16x128xbf16>, vector<64x128xf32> -> vector<64x128xf32>
    %6 = arith.subf %0, %5 : vector<64x128xf32>
    %cst_5 = arith.constant -1.345000e+00 : f32
    %cst_6 = arith.constant 1.345000e+00 : f32
    %7 = vector.broadcast %cst_5 : f32 to vector<64x128xf32>
    %8 = arith.maximumf %7, %6 : vector<64x128xf32>
    %9 = vector.broadcast %cst_6 : f32 to vector<64x128xf32>
    %10 = arith.minimumf %9, %8 : vector<64x128xf32>
    %11 = arith.truncf %10 : vector<64x128xf32> to vector<64x128xbf16>
    %cst_7 = arith.constant dense<0.000000e+00> : vector<64x16xf32>
    %12 = tpu.matmul %11, %4, %cst_7 {dimension_numbers = #tpu.dot_dimension_numbers<[1], [1], [0], [0], [0, 0, 1, 0], [], []>} : vector<64x128xbf16>, vector<16x128xbf16>, vector<64x16xf32> -> vector<64x16xf32>
    %cst_8 = arith.constant 9.998000e-01 : f32
    %13 = vector.broadcast %cst_8 : f32 to vector<64x16xf32>
    %14 = arith.mulf %13, %1 : vector<64x16xf32>
    %cst_9 = arith.constant 2.000000e-03 : f32
    %15 = vector.broadcast %cst_9 : f32 to vector<64x16xf32>
    %16 = arith.mulf %15, %12 : vector<64x16xf32>
    %17 = arith.addf %14, %16 : vector<64x16xf32>
    %18 = arith.truncf %17 : vector<64x16xf32> to vector<64x16xbf16>
    %19 = tpu.transpose %17, [1, 0] : vector<64x16xf32> -> vector<16x64xf32>
    %20 = arith.truncf %19 : vector<16x64xf32> to vector<16x64xbf16>
    %cst_10 = arith.constant dense<0.000000e+00> : vector<16x128xf32>
    %21 = tpu.matmul %20, %11, %cst_10 {dimension_numbers = #tpu.dot_dimension_numbers<[1], [0], [0], [1], [0, 0, 1, 1], [], []>} : vector<16x64xbf16>, vector<64x128xbf16>, vector<16x128xf32> -> vector<16x128xf32>
    %cst_11 = arith.constant 9.998000e-01 : f32
    %22 = vector.broadcast %cst_11 : f32 to vector<16x128xf32>
    %23 = arith.mulf %22, %2 : vector<16x128xf32>
    %cst_12 = arith.constant 2.000000e-03 : f32
    %24 = vector.broadcast %cst_12 : f32 to vector<16x128xf32>
    %25 = arith.mulf %24, %21 : vector<16x128xf32>
    %26 = arith.addf %23, %25 : vector<16x128xf32>
    %27 = arith.truncf %26 : vector<16x128xf32> to vector<16x128xbf16>
    %c1_i32 = arith.constant 1 : i32
    %cst_13 = arith.constant dense<0.000000e+00> : vector<64x128xf32>
    %28 = tpu.matmul %18, %27, %cst_13 {dimension_numbers = #tpu.dot_dimension_numbers<[1], [0], [0], [1], [0, 0, 1, 1], [], []>} : vector<64x16xbf16>, vector<16x128xbf16>, vector<64x128xf32> -> vector<64x128xf32>
    %29 = arith.subf %0, %28 : vector<64x128xf32>
    %cst_14 = arith.constant -1.345000e+00 : f32
    %cst_15 = arith.constant 1.345000e+00 : f32
    %30 = vector.broadcast %cst_14 : f32 to vector<64x128xf32>
    %31 = arith.maximumf %30, %29 : vector<64x128xf32>
    %32 = vector.broadcast %cst_15 : f32 to vector<64x128xf32>
    %33 = arith.minimumf %32, %31 : vector<64x128xf32>
    %34 = arith.truncf %33 : vector<64x128xf32> to vector<64x128xbf16>
    %cst_16 = arith.constant dense<0.000000e+00> : vector<64x16xf32>
    %35 = tpu.matmul %34, %27, %cst_16 {dimension_numbers = #tpu.dot_dimension_numbers<[1], [1], [0], [0], [0, 0, 1, 0], [], []>} : vector<64x128xbf16>, vector<16x128xbf16>, vector<64x16xf32> -> vector<64x16xf32>
    %cst_17 = arith.constant 9.998000e-01 : f32
    %36 = vector.broadcast %cst_17 : f32 to vector<64x16xf32>
    %37 = arith.mulf %36, %17 : vector<64x16xf32>
    %cst_18 = arith.constant 2.000000e-03 : f32
    %38 = vector.broadcast %cst_18 : f32 to vector<64x16xf32>
    %39 = arith.mulf %38, %35 : vector<64x16xf32>
    %40 = arith.addf %37, %39 : vector<64x16xf32>
    %41 = arith.truncf %40 : vector<64x16xf32> to vector<64x16xbf16>
    %42 = tpu.transpose %40, [1, 0] : vector<64x16xf32> -> vector<16x64xf32>
    %43 = arith.truncf %42 : vector<16x64xf32> to vector<16x64xbf16>
    %cst_19 = arith.constant dense<0.000000e+00> : vector<16x128xf32>
    %44 = tpu.matmul %43, %34, %cst_19 {dimension_numbers = #tpu.dot_dimension_numbers<[1], [0], [0], [1], [0, 0, 1, 1], [], []>} : vector<16x64xbf16>, vector<64x128xbf16>, vector<16x128xf32> -> vector<16x128xf32>
    %cst_20 = arith.constant 9.998000e-01 : f32
    %45 = vector.broadcast %cst_20 : f32 to vector<16x128xf32>
    %46 = arith.mulf %45, %26 : vector<16x128xf32>
    %cst_21 = arith.constant 2.000000e-03 : f32
    %47 = vector.broadcast %cst_21 : f32 to vector<16x128xf32>
    %48 = arith.mulf %47, %44 : vector<16x128xf32>
    %49 = arith.addf %46, %48 : vector<16x128xf32>
    %50 = arith.truncf %49 : vector<16x128xf32> to vector<16x128xbf16>
    %c2_i32 = arith.constant 2 : i32
    %cst_22 = arith.constant dense<0.000000e+00> : vector<64x128xf32>
    %51 = tpu.matmul %41, %50, %cst_22 {dimension_numbers = #tpu.dot_dimension_numbers<[1], [0], [0], [1], [0, 0, 1, 1], [], []>} : vector<64x16xbf16>, vector<16x128xbf16>, vector<64x128xf32> -> vector<64x128xf32>
    %52 = arith.subf %0, %51 : vector<64x128xf32>
    %cst_23 = arith.constant -1.345000e+00 : f32
    %cst_24 = arith.constant 1.345000e+00 : f32
    %53 = vector.broadcast %cst_23 : f32 to vector<64x128xf32>
    %54 = arith.maximumf %53, %52 : vector<64x128xf32>
    %55 = vector.broadcast %cst_24 : f32 to vector<64x128xf32>
    %56 = arith.minimumf %55, %54 : vector<64x128xf32>
    %57 = arith.truncf %56 : vector<64x128xf32> to vector<64x128xbf16>
    %cst_25 = arith.constant dense<0.000000e+00> : vector<64x16xf32>
    %58 = tpu.matmul %57, %50, %cst_25 {dimension_numbers = #tpu.dot_dimension_numbers<[1], [1], [0], [0], [0, 0, 1, 0], [], []>} : vector<64x128xbf16>, vector<16x128xbf16>, vector<64x16xf32> -> vector<64x16xf32>
    %cst_26 = arith.constant 9.998000e-01 : f32
    %59 = vector.broadcast %cst_26 : f32 to vector<64x16xf32>
    %60 = arith.mulf %59, %40 : vector<64x16xf32>
    %cst_27 = arith.constant 2.000000e-03 : f32
    %61 = vector.broadcast %cst_27 : f32 to vector<64x16xf32>
    %62 = arith.mulf %61, %58 : vector<64x16xf32>
    %63 = arith.addf %60, %62 : vector<64x16xf32>
    %64 = arith.truncf %63 : vector<64x16xf32> to vector<64x16xbf16>
    %65 = tpu.transpose %63, [1, 0] : vector<64x16xf32> -> vector<16x64xf32>
    %66 = arith.truncf %65 : vector<16x64xf32> to vector<16x64xbf16>
    %cst_28 = arith.constant dense<0.000000e+00> : vector<16x128xf32>
    %67 = tpu.matmul %66, %57, %cst_28 {dimension_numbers = #tpu.dot_dimension_numbers<[1], [0], [0], [1], [0, 0, 1, 1], [], []>} : vector<16x64xbf16>, vector<64x128xbf16>, vector<16x128xf32> -> vector<16x128xf32>
    %cst_29 = arith.constant 9.998000e-01 : f32
    %68 = vector.broadcast %cst_29 : f32 to vector<16x128xf32>
    %69 = arith.mulf %68, %49 : vector<16x128xf32>
    %cst_30 = arith.constant 2.000000e-03 : f32
    %70 = vector.broadcast %cst_30 : f32 to vector<16x128xf32>
    %71 = arith.mulf %70, %67 : vector<16x128xf32>
    %72 = arith.addf %69, %71 : vector<16x128xf32>
    %73 = arith.truncf %72 : vector<16x128xf32> to vector<16x128xbf16>
    %c3_i32 = arith.constant 3 : i32
    %cst_31 = arith.constant dense<0.000000e+00> : vector<64x128xf32>
    %74 = tpu.matmul %64, %73, %cst_31 {dimension_numbers = #tpu.dot_dimension_numbers<[1], [0], [0], [1], [0, 0, 1, 1], [], []>} : vector<64x16xbf16>, vector<16x128xbf16>, vector<64x128xf32> -> vector<64x128xf32>
    %75 = arith.subf %0, %74 : vector<64x128xf32>
    %cst_32 = arith.constant -1.345000e+00 : f32
    %cst_33 = arith.constant 1.345000e+00 : f32
    %76 = vector.broadcast %cst_32 : f32 to vector<64x128xf32>
    %77 = arith.maximumf %76, %75 : vector<64x128xf32>
    %78 = vector.broadcast %cst_33 : f32 to vector<64x128xf32>
    %79 = arith.minimumf %78, %77 : vector<64x128xf32>
    %80 = arith.truncf %79 : vector<64x128xf32> to vector<64x128xbf16>
    %cst_34 = arith.constant dense<0.000000e+00> : vector<64x16xf32>
    %81 = tpu.matmul %80, %73, %cst_34 {dimension_numbers = #tpu.dot_dimension_numbers<[1], [1], [0], [0], [0, 0, 1, 0], [], []>} : vector<64x128xbf16>, vector<16x128xbf16>, vector<64x16xf32> -> vector<64x16xf32>
    %cst_35 = arith.constant 9.998000e-01 : f32
    %82 = vector.broadcast %cst_35 : f32 to vector<64x16xf32>
    %83 = arith.mulf %82, %63 : vector<64x16xf32>
    %cst_36 = arith.constant 2.000000e-03 : f32
    %84 = vector.broadcast %cst_36 : f32 to vector<64x16xf32>
    %85 = arith.mulf %84, %81 : vector<64x16xf32>
    %86 = arith.addf %83, %85 : vector<64x16xf32>
    %87 = arith.truncf %86 : vector<64x16xf32> to vector<64x16xbf16>
    %88 = tpu.transpose %86, [1, 0] : vector<64x16xf32> -> vector<16x64xf32>
    %89 = arith.truncf %88 : vector<16x64xf32> to vector<16x64xbf16>
    %cst_37 = arith.constant dense<0.000000e+00> : vector<16x128xf32>
    %90 = tpu.matmul %89, %80, %cst_37 {dimension_numbers = #tpu.dot_dimension_numbers<[1], [0], [0], [1], [0, 0, 1, 1], [], []>} : vector<16x64xbf16>, vector<64x128xbf16>, vector<16x128xf32> -> vector<16x128xf32>
    %cst_38 = arith.constant 9.998000e-01 : f32
    %91 = vector.broadcast %cst_38 : f32 to vector<16x128xf32>
    %92 = arith.mulf %91, %72 : vector<16x128xf32>
    %cst_39 = arith.constant 2.000000e-03 : f32
    %93 = vector.broadcast %cst_39 : f32 to vector<16x128xf32>
    %94 = arith.mulf %93, %90 : vector<16x128xf32>
    %95 = arith.addf %92, %94 : vector<16x128xf32>
    %96 = arith.truncf %95 : vector<16x128xf32> to vector<16x128xbf16>
    %c4_i32 = arith.constant 4 : i32
    %cst_40 = arith.constant dense<0.000000e+00> : vector<64x128xf32>
    %97 = tpu.matmul %87, %96, %cst_40 {dimension_numbers = #tpu.dot_dimension_numbers<[1], [0], [0], [1], [0, 0, 1, 1], [], []>} : vector<64x16xbf16>, vector<16x128xbf16>, vector<64x128xf32> -> vector<64x128xf32>
    %98 = arith.subf %0, %97 : vector<64x128xf32>
    %cst_41 = arith.constant -1.345000e+00 : f32
    %cst_42 = arith.constant 1.345000e+00 : f32
    %99 = vector.broadcast %cst_41 : f32 to vector<64x128xf32>
    %100 = arith.maximumf %99, %98 : vector<64x128xf32>
    %101 = vector.broadcast %cst_42 : f32 to vector<64x128xf32>
    %102 = arith.minimumf %101, %100 : vector<64x128xf32>
    %103 = arith.truncf %102 : vector<64x128xf32> to vector<64x128xbf16>
    %cst_43 = arith.constant dense<0.000000e+00> : vector<64x16xf32>
    %104 = tpu.matmul %103, %96, %cst_43 {dimension_numbers = #tpu.dot_dimension_numbers<[1], [1], [0], [0], [0, 0, 1, 0], [], []>} : vector<64x128xbf16>, vector<16x128xbf16>, vector<64x16xf32> -> vector<64x16xf32>
    %cst_44 = arith.constant 9.998000e-01 : f32
    %105 = vector.broadcast %cst_44 : f32 to vector<64x16xf32>
    %106 = arith.mulf %105, %86 : vector<64x16xf32>
    %cst_45 = arith.constant 2.000000e-03 : f32
    %107 = vector.broadcast %cst_45 : f32 to vector<64x16xf32>
    %108 = arith.mulf %107, %104 : vector<64x16xf32>
    %109 = arith.addf %106, %108 : vector<64x16xf32>
    %110 = arith.truncf %109 : vector<64x16xf32> to vector<64x16xbf16>
    %111 = tpu.transpose %109, [1, 0] : vector<64x16xf32> -> vector<16x64xf32>
    %112 = arith.truncf %111 : vector<16x64xf32> to vector<16x64xbf16>
    %cst_46 = arith.constant dense<0.000000e+00> : vector<16x128xf32>
    %113 = tpu.matmul %112, %103, %cst_46 {dimension_numbers = #tpu.dot_dimension_numbers<[1], [0], [0], [1], [0, 0, 1, 1], [], []>} : vector<16x64xbf16>, vector<64x128xbf16>, vector<16x128xf32> -> vector<16x128xf32>
    %cst_47 = arith.constant 9.998000e-01 : f32
    %114 = vector.broadcast %cst_47 : f32 to vector<16x128xf32>
    %115 = arith.mulf %114, %95 : vector<16x128xf32>
    %cst_48 = arith.constant 2.000000e-03 : f32
    %116 = vector.broadcast %cst_48 : f32 to vector<16x128xf32>
    %117 = arith.mulf %116, %113 : vector<16x128xf32>
    %118 = arith.addf %115, %117 : vector<16x128xf32>
    %119 = arith.truncf %118 : vector<16x128xf32> to vector<16x128xbf16>
    %c5_i32 = arith.constant 5 : i32
    %cst_49 = arith.constant dense<0.000000e+00> : vector<64x128xf32>
    %120 = tpu.matmul %110, %119, %cst_49 {dimension_numbers = #tpu.dot_dimension_numbers<[1], [0], [0], [1], [0, 0, 1, 1], [], []>} : vector<64x16xbf16>, vector<16x128xbf16>, vector<64x128xf32> -> vector<64x128xf32>
    %121 = arith.subf %0, %120 : vector<64x128xf32>
    %cst_50 = arith.constant -1.345000e+00 : f32
    %cst_51 = arith.constant 1.345000e+00 : f32
    %122 = vector.broadcast %cst_50 : f32 to vector<64x128xf32>
    %123 = arith.maximumf %122, %121 : vector<64x128xf32>
    %124 = vector.broadcast %cst_51 : f32 to vector<64x128xf32>
    %125 = arith.minimumf %124, %123 : vector<64x128xf32>
    %126 = arith.truncf %125 : vector<64x128xf32> to vector<64x128xbf16>
    %cst_52 = arith.constant dense<0.000000e+00> : vector<64x16xf32>
    %127 = tpu.matmul %126, %119, %cst_52 {dimension_numbers = #tpu.dot_dimension_numbers<[1], [1], [0], [0], [0, 0, 1, 0], [], []>} : vector<64x128xbf16>, vector<16x128xbf16>, vector<64x16xf32> -> vector<64x16xf32>
    %cst_53 = arith.constant 9.998000e-01 : f32
    %128 = vector.broadcast %cst_53 : f32 to vector<64x16xf32>
    %129 = arith.mulf %128, %109 : vector<64x16xf32>
    %cst_54 = arith.constant 2.000000e-03 : f32
    %130 = vector.broadcast %cst_54 : f32 to vector<64x16xf32>
    %131 = arith.mulf %130, %127 : vector<64x16xf32>
    %132 = arith.addf %129, %131 : vector<64x16xf32>
    %133 = arith.truncf %132 : vector<64x16xf32> to vector<64x16xbf16>
    %134 = tpu.transpose %132, [1, 0] : vector<64x16xf32> -> vector<16x64xf32>
    %135 = arith.truncf %134 : vector<16x64xf32> to vector<16x64xbf16>
    %cst_55 = arith.constant dense<0.000000e+00> : vector<16x128xf32>
    %136 = tpu.matmul %135, %126, %cst_55 {dimension_numbers = #tpu.dot_dimension_numbers<[1], [0], [0], [1], [0, 0, 1, 1], [], []>} : vector<16x64xbf16>, vector<64x128xbf16>, vector<16x128xf32> -> vector<16x128xf32>
    %cst_56 = arith.constant 9.998000e-01 : f32
    %137 = vector.broadcast %cst_56 : f32 to vector<16x128xf32>
    %138 = arith.mulf %137, %118 : vector<16x128xf32>
    %cst_57 = arith.constant 2.000000e-03 : f32
    %139 = vector.broadcast %cst_57 : f32 to vector<16x128xf32>
    %140 = arith.mulf %139, %136 : vector<16x128xf32>
    %141 = arith.addf %138, %140 : vector<16x128xf32>
    %142 = arith.truncf %141 : vector<16x128xf32> to vector<16x128xbf16>
    %c6_i32 = arith.constant 6 : i32
    %cst_58 = arith.constant dense<0.000000e+00> : vector<64x128xf32>
    %143 = tpu.matmul %133, %142, %cst_58 {dimension_numbers = #tpu.dot_dimension_numbers<[1], [0], [0], [1], [0, 0, 1, 1], [], []>} : vector<64x16xbf16>, vector<16x128xbf16>, vector<64x128xf32> -> vector<64x128xf32>
    %144 = arith.subf %0, %143 : vector<64x128xf32>
    %cst_59 = arith.constant -1.345000e+00 : f32
    %cst_60 = arith.constant 1.345000e+00 : f32
    %145 = vector.broadcast %cst_59 : f32 to vector<64x128xf32>
    %146 = arith.maximumf %145, %144 : vector<64x128xf32>
    %147 = vector.broadcast %cst_60 : f32 to vector<64x128xf32>
    %148 = arith.minimumf %147, %146 : vector<64x128xf32>
    %149 = arith.truncf %148 : vector<64x128xf32> to vector<64x128xbf16>
    %cst_61 = arith.constant dense<0.000000e+00> : vector<64x16xf32>
    %150 = tpu.matmul %149, %142, %cst_61 {dimension_numbers = #tpu.dot_dimension_numbers<[1], [1], [0], [0], [0, 0, 1, 0], [], []>} : vector<64x128xbf16>, vector<16x128xbf16>, vector<64x16xf32> -> vector<64x16xf32>
    %cst_62 = arith.constant 9.998000e-01 : f32
    %151 = vector.broadcast %cst_62 : f32 to vector<64x16xf32>
    %152 = arith.mulf %151, %132 : vector<64x16xf32>
    %cst_63 = arith.constant 2.000000e-03 : f32
    %153 = vector.broadcast %cst_63 : f32 to vector<64x16xf32>
    %154 = arith.mulf %153, %150 : vector<64x16xf32>
    %155 = arith.addf %152, %154 : vector<64x16xf32>
    %156 = arith.truncf %155 : vector<64x16xf32> to vector<64x16xbf16>
    %157 = tpu.transpose %155, [1, 0] : vector<64x16xf32> -> vector<16x64xf32>
    %158 = arith.truncf %157 : vector<16x64xf32> to vector<16x64xbf16>
    %cst_64 = arith.constant dense<0.000000e+00> : vector<16x128xf32>
    %159 = tpu.matmul %158, %149, %cst_64 {dimension_numbers = #tpu.dot_dimension_numbers<[1], [0], [0], [1], [0, 0, 1, 1], [], []>} : vector<16x64xbf16>, vector<64x128xbf16>, vector<16x128xf32> -> vector<16x128xf32>
    %cst_65 = arith.constant 9.998000e-01 : f32
    %160 = vector.broadcast %cst_65 : f32 to vector<16x128xf32>
    %161 = arith.mulf %160, %141 : vector<16x128xf32>
    %cst_66 = arith.constant 2.000000e-03 : f32
    %162 = vector.broadcast %cst_66 : f32 to vector<16x128xf32>
    %163 = arith.mulf %162, %159 : vector<16x128xf32>
    %164 = arith.addf %161, %163 : vector<16x128xf32>
    %165 = arith.truncf %164 : vector<16x128xf32> to vector<16x128xbf16>
    %c7_i32 = arith.constant 7 : i32
    %cst_67 = arith.constant dense<0.000000e+00> : vector<64x128xf32>
    %166 = tpu.matmul %156, %165, %cst_67 {dimension_numbers = #tpu.dot_dimension_numbers<[1], [0], [0], [1], [0, 0, 1, 1], [], []>} : vector<64x16xbf16>, vector<16x128xbf16>, vector<64x128xf32> -> vector<64x128xf32>
    %167 = arith.subf %0, %166 : vector<64x128xf32>
    %cst_68 = arith.constant -1.345000e+00 : f32
    %cst_69 = arith.constant 1.345000e+00 : f32
    %168 = vector.broadcast %cst_68 : f32 to vector<64x128xf32>
    %169 = arith.maximumf %168, %167 : vector<64x128xf32>
    %170 = vector.broadcast %cst_69 : f32 to vector<64x128xf32>
    %171 = arith.minimumf %170, %169 : vector<64x128xf32>
    %172 = arith.truncf %171 : vector<64x128xf32> to vector<64x128xbf16>
    %cst_70 = arith.constant dense<0.000000e+00> : vector<64x16xf32>
    %173 = tpu.matmul %172, %165, %cst_70 {dimension_numbers = #tpu.dot_dimension_numbers<[1], [1], [0], [0], [0, 0, 1, 0], [], []>} : vector<64x128xbf16>, vector<16x128xbf16>, vector<64x16xf32> -> vector<64x16xf32>
    %cst_71 = arith.constant 9.998000e-01 : f32
    %174 = vector.broadcast %cst_71 : f32 to vector<64x16xf32>
    %175 = arith.mulf %174, %155 : vector<64x16xf32>
    %cst_72 = arith.constant 2.000000e-03 : f32
    %176 = vector.broadcast %cst_72 : f32 to vector<64x16xf32>
    %177 = arith.mulf %176, %173 : vector<64x16xf32>
    %178 = arith.addf %175, %177 : vector<64x16xf32>
    %179 = arith.truncf %178 : vector<64x16xf32> to vector<64x16xbf16>
    %180 = tpu.transpose %178, [1, 0] : vector<64x16xf32> -> vector<16x64xf32>
    %181 = arith.truncf %180 : vector<16x64xf32> to vector<16x64xbf16>
    %cst_73 = arith.constant dense<0.000000e+00> : vector<16x128xf32>
    %182 = tpu.matmul %181, %172, %cst_73 {dimension_numbers = #tpu.dot_dimension_numbers<[1], [0], [0], [1], [0, 0, 1, 1], [], []>} : vector<16x64xbf16>, vector<64x128xbf16>, vector<16x128xf32> -> vector<16x128xf32>
    %cst_74 = arith.constant 9.998000e-01 : f32
    %183 = vector.broadcast %cst_74 : f32 to vector<16x128xf32>
    %184 = arith.mulf %183, %164 : vector<16x128xf32>
    %cst_75 = arith.constant 2.000000e-03 : f32
    %185 = vector.broadcast %cst_75 : f32 to vector<16x128xf32>
    %186 = arith.mulf %185, %182 : vector<16x128xf32>
    %187 = arith.addf %184, %186 : vector<16x128xf32>
    %188 = arith.truncf %187 : vector<16x128xf32> to vector<16x128xbf16>
    %c8_i32 = arith.constant 8 : i32
    %cst_76 = arith.constant dense<0.000000e+00> : vector<64x128xf32>
    %189 = tpu.matmul %179, %188, %cst_76 {dimension_numbers = #tpu.dot_dimension_numbers<[1], [0], [0], [1], [0, 0, 1, 1], [], []>} : vector<64x16xbf16>, vector<16x128xbf16>, vector<64x128xf32> -> vector<64x128xf32>
    %190 = arith.subf %0, %189 : vector<64x128xf32>
    %cst_77 = arith.constant -1.345000e+00 : f32
    %cst_78 = arith.constant 1.345000e+00 : f32
    %191 = vector.broadcast %cst_77 : f32 to vector<64x128xf32>
    %192 = arith.maximumf %191, %190 : vector<64x128xf32>
    %193 = vector.broadcast %cst_78 : f32 to vector<64x128xf32>
    %194 = arith.minimumf %193, %192 : vector<64x128xf32>
    %195 = arith.truncf %194 : vector<64x128xf32> to vector<64x128xbf16>
    %cst_79 = arith.constant dense<0.000000e+00> : vector<64x16xf32>
    %196 = tpu.matmul %195, %188, %cst_79 {dimension_numbers = #tpu.dot_dimension_numbers<[1], [1], [0], [0], [0, 0, 1, 0], [], []>} : vector<64x128xbf16>, vector<16x128xbf16>, vector<64x16xf32> -> vector<64x16xf32>
    %cst_80 = arith.constant 9.998000e-01 : f32
    %197 = vector.broadcast %cst_80 : f32 to vector<64x16xf32>
    %198 = arith.mulf %197, %178 : vector<64x16xf32>
    %cst_81 = arith.constant 2.000000e-03 : f32
    %199 = vector.broadcast %cst_81 : f32 to vector<64x16xf32>
    %200 = arith.mulf %199, %196 : vector<64x16xf32>
    %201 = arith.addf %198, %200 : vector<64x16xf32>
    %202 = arith.truncf %201 : vector<64x16xf32> to vector<64x16xbf16>
    %203 = tpu.transpose %201, [1, 0] : vector<64x16xf32> -> vector<16x64xf32>
    %204 = arith.truncf %203 : vector<16x64xf32> to vector<16x64xbf16>
    %cst_82 = arith.constant dense<0.000000e+00> : vector<16x128xf32>
    %205 = tpu.matmul %204, %195, %cst_82 {dimension_numbers = #tpu.dot_dimension_numbers<[1], [0], [0], [1], [0, 0, 1, 1], [], []>} : vector<16x64xbf16>, vector<64x128xbf16>, vector<16x128xf32> -> vector<16x128xf32>
    %cst_83 = arith.constant 9.998000e-01 : f32
    %206 = vector.broadcast %cst_83 : f32 to vector<16x128xf32>
    %207 = arith.mulf %206, %187 : vector<16x128xf32>
    %cst_84 = arith.constant 2.000000e-03 : f32
    %208 = vector.broadcast %cst_84 : f32 to vector<16x128xf32>
    %209 = arith.mulf %208, %205 : vector<16x128xf32>
    %210 = arith.addf %207, %209 : vector<16x128xf32>
    %211 = arith.truncf %210 : vector<16x128xf32> to vector<16x128xbf16>
    %c9_i32 = arith.constant 9 : i32
    %cst_85 = arith.constant dense<0.000000e+00> : vector<64x128xf32>
    %212 = tpu.matmul %202, %211, %cst_85 {dimension_numbers = #tpu.dot_dimension_numbers<[1], [0], [0], [1], [0, 0, 1, 1], [], []>} : vector<64x16xbf16>, vector<16x128xbf16>, vector<64x128xf32> -> vector<64x128xf32>
    %213 = arith.subf %0, %212 : vector<64x128xf32>
    %cst_86 = arith.constant -1.345000e+00 : f32
    %cst_87 = arith.constant 1.345000e+00 : f32
    %214 = vector.broadcast %cst_86 : f32 to vector<64x128xf32>
    %215 = arith.maximumf %214, %213 : vector<64x128xf32>
    %216 = vector.broadcast %cst_87 : f32 to vector<64x128xf32>
    %217 = arith.minimumf %216, %215 : vector<64x128xf32>
    %218 = arith.truncf %217 : vector<64x128xf32> to vector<64x128xbf16>
    %cst_88 = arith.constant dense<0.000000e+00> : vector<64x16xf32>
    %219 = tpu.matmul %218, %211, %cst_88 {dimension_numbers = #tpu.dot_dimension_numbers<[1], [1], [0], [0], [0, 0, 1, 0], [], []>} : vector<64x128xbf16>, vector<16x128xbf16>, vector<64x16xf32> -> vector<64x16xf32>
    %cst_89 = arith.constant 9.998000e-01 : f32
    %220 = vector.broadcast %cst_89 : f32 to vector<64x16xf32>
    %221 = arith.mulf %220, %201 : vector<64x16xf32>
    %cst_90 = arith.constant 2.000000e-03 : f32
    %222 = vector.broadcast %cst_90 : f32 to vector<64x16xf32>
    %223 = arith.mulf %222, %219 : vector<64x16xf32>
    %224 = arith.addf %221, %223 : vector<64x16xf32>
    %225 = arith.truncf %224 : vector<64x16xf32> to vector<64x16xbf16>
    %226 = tpu.transpose %224, [1, 0] : vector<64x16xf32> -> vector<16x64xf32>
    %227 = arith.truncf %226 : vector<16x64xf32> to vector<16x64xbf16>
    %cst_91 = arith.constant dense<0.000000e+00> : vector<16x128xf32>
    %228 = tpu.matmul %227, %218, %cst_91 {dimension_numbers = #tpu.dot_dimension_numbers<[1], [0], [0], [1], [0, 0, 1, 1], [], []>} : vector<16x64xbf16>, vector<64x128xbf16>, vector<16x128xf32> -> vector<16x128xf32>
    %cst_92 = arith.constant 9.998000e-01 : f32
    %229 = vector.broadcast %cst_92 : f32 to vector<16x128xf32>
    %230 = arith.mulf %229, %210 : vector<16x128xf32>
    %cst_93 = arith.constant 2.000000e-03 : f32
    %231 = vector.broadcast %cst_93 : f32 to vector<16x128xf32>
    %232 = arith.mulf %231, %228 : vector<16x128xf32>
    %233 = arith.addf %230, %232 : vector<16x128xf32>
    %234 = arith.truncf %233 : vector<16x128xf32> to vector<16x128xbf16>
    %c10_i32 = arith.constant 10 : i32
    %cst_94 = arith.constant dense<0.000000e+00> : vector<64x128xf32>
    %235 = tpu.matmul %225, %234, %cst_94 {dimension_numbers = #tpu.dot_dimension_numbers<[1], [0], [0], [1], [0, 0, 1, 1], [], []>} : vector<64x16xbf16>, vector<16x128xbf16>, vector<64x128xf32> -> vector<64x128xf32>
    %236 = arith.subf %0, %235 : vector<64x128xf32>
    %cst_95 = arith.constant -1.345000e+00 : f32
    %cst_96 = arith.constant 1.345000e+00 : f32
    %237 = vector.broadcast %cst_95 : f32 to vector<64x128xf32>
    %238 = arith.maximumf %237, %236 : vector<64x128xf32>
    %239 = vector.broadcast %cst_96 : f32 to vector<64x128xf32>
    %240 = arith.minimumf %239, %238 : vector<64x128xf32>
    %241 = arith.truncf %240 : vector<64x128xf32> to vector<64x128xbf16>
    %cst_97 = arith.constant dense<0.000000e+00> : vector<64x16xf32>
    %242 = tpu.matmul %241, %234, %cst_97 {dimension_numbers = #tpu.dot_dimension_numbers<[1], [1], [0], [0], [0, 0, 1, 0], [], []>} : vector<64x128xbf16>, vector<16x128xbf16>, vector<64x16xf32> -> vector<64x16xf32>
    %cst_98 = arith.constant 9.998000e-01 : f32
    %243 = vector.broadcast %cst_98 : f32 to vector<64x16xf32>
    %244 = arith.mulf %243, %224 : vector<64x16xf32>
    %cst_99 = arith.constant 2.000000e-03 : f32
    %245 = vector.broadcast %cst_99 : f32 to vector<64x16xf32>
    %246 = arith.mulf %245, %242 : vector<64x16xf32>
    %247 = arith.addf %244, %246 : vector<64x16xf32>
    %248 = arith.truncf %247 : vector<64x16xf32> to vector<64x16xbf16>
    %249 = tpu.transpose %247, [1, 0] : vector<64x16xf32> -> vector<16x64xf32>
    %250 = arith.truncf %249 : vector<16x64xf32> to vector<16x64xbf16>
    %cst_100 = arith.constant dense<0.000000e+00> : vector<16x128xf32>
    %251 = tpu.matmul %250, %241, %cst_100 {dimension_numbers = #tpu.dot_dimension_numbers<[1], [0], [0], [1], [0, 0, 1, 1], [], []>} : vector<16x64xbf16>, vector<64x128xbf16>, vector<16x128xf32> -> vector<16x128xf32>
    %cst_101 = arith.constant 9.998000e-01 : f32
    %252 = vector.broadcast %cst_101 : f32 to vector<16x128xf32>
    %253 = arith.mulf %252, %233 : vector<16x128xf32>
    %cst_102 = arith.constant 2.000000e-03 : f32
    %254 = vector.broadcast %cst_102 : f32 to vector<16x128xf32>
    %255 = arith.mulf %254, %251 : vector<16x128xf32>
    %256 = arith.addf %253, %255 : vector<16x128xf32>
    %257 = arith.truncf %256 : vector<16x128xf32> to vector<16x128xbf16>
    %c11_i32 = arith.constant 11 : i32
    %cst_103 = arith.constant dense<0.000000e+00> : vector<64x128xf32>
    %258 = tpu.matmul %248, %257, %cst_103 {dimension_numbers = #tpu.dot_dimension_numbers<[1], [0], [0], [1], [0, 0, 1, 1], [], []>} : vector<64x16xbf16>, vector<16x128xbf16>, vector<64x128xf32> -> vector<64x128xf32>
    %259 = arith.subf %0, %258 : vector<64x128xf32>
    %cst_104 = arith.constant -1.345000e+00 : f32
    %cst_105 = arith.constant 1.345000e+00 : f32
    %260 = vector.broadcast %cst_104 : f32 to vector<64x128xf32>
    %261 = arith.maximumf %260, %259 : vector<64x128xf32>
    %262 = vector.broadcast %cst_105 : f32 to vector<64x128xf32>
    %263 = arith.minimumf %262, %261 : vector<64x128xf32>
    %264 = arith.truncf %263 : vector<64x128xf32> to vector<64x128xbf16>
    %cst_106 = arith.constant dense<0.000000e+00> : vector<64x16xf32>
    %265 = tpu.matmul %264, %257, %cst_106 {dimension_numbers = #tpu.dot_dimension_numbers<[1], [1], [0], [0], [0, 0, 1, 0], [], []>} : vector<64x128xbf16>, vector<16x128xbf16>, vector<64x16xf32> -> vector<64x16xf32>
    %cst_107 = arith.constant 9.998000e-01 : f32
    %266 = vector.broadcast %cst_107 : f32 to vector<64x16xf32>
    %267 = arith.mulf %266, %247 : vector<64x16xf32>
    %cst_108 = arith.constant 2.000000e-03 : f32
    %268 = vector.broadcast %cst_108 : f32 to vector<64x16xf32>
    %269 = arith.mulf %268, %265 : vector<64x16xf32>
    %270 = arith.addf %267, %269 : vector<64x16xf32>
    %271 = arith.truncf %270 : vector<64x16xf32> to vector<64x16xbf16>
    %272 = tpu.transpose %270, [1, 0] : vector<64x16xf32> -> vector<16x64xf32>
    %273 = arith.truncf %272 : vector<16x64xf32> to vector<16x64xbf16>
    %cst_109 = arith.constant dense<0.000000e+00> : vector<16x128xf32>
    %274 = tpu.matmul %273, %264, %cst_109 {dimension_numbers = #tpu.dot_dimension_numbers<[1], [0], [0], [1], [0, 0, 1, 1], [], []>} : vector<16x64xbf16>, vector<64x128xbf16>, vector<16x128xf32> -> vector<16x128xf32>
    %cst_110 = arith.constant 9.998000e-01 : f32
    %275 = vector.broadcast %cst_110 : f32 to vector<16x128xf32>
    %276 = arith.mulf %275, %256 : vector<16x128xf32>
    %cst_111 = arith.constant 2.000000e-03 : f32
    %277 = vector.broadcast %cst_111 : f32 to vector<16x128xf32>
    %278 = arith.mulf %277, %274 : vector<16x128xf32>
    %279 = arith.addf %276, %278 : vector<16x128xf32>
    %280 = arith.truncf %279 : vector<16x128xf32> to vector<16x128xbf16>
    %c12_i32 = arith.constant 12 : i32
    %cst_112 = arith.constant dense<0.000000e+00> : vector<64x128xf32>
    %281 = tpu.matmul %271, %280, %cst_112 {dimension_numbers = #tpu.dot_dimension_numbers<[1], [0], [0], [1], [0, 0, 1, 1], [], []>} : vector<64x16xbf16>, vector<16x128xbf16>, vector<64x128xf32> -> vector<64x128xf32>
    %282 = arith.subf %0, %281 : vector<64x128xf32>
    %cst_113 = arith.constant -1.345000e+00 : f32
    %cst_114 = arith.constant 1.345000e+00 : f32
    %283 = vector.broadcast %cst_113 : f32 to vector<64x128xf32>
    %284 = arith.maximumf %283, %282 : vector<64x128xf32>
    %285 = vector.broadcast %cst_114 : f32 to vector<64x128xf32>
    %286 = arith.minimumf %285, %284 : vector<64x128xf32>
    %287 = arith.truncf %286 : vector<64x128xf32> to vector<64x128xbf16>
    %cst_115 = arith.constant dense<0.000000e+00> : vector<64x16xf32>
    %288 = tpu.matmul %287, %280, %cst_115 {dimension_numbers = #tpu.dot_dimension_numbers<[1], [1], [0], [0], [0, 0, 1, 0], [], []>} : vector<64x128xbf16>, vector<16x128xbf16>, vector<64x16xf32> -> vector<64x16xf32>
    %cst_116 = arith.constant 9.998000e-01 : f32
    %289 = vector.broadcast %cst_116 : f32 to vector<64x16xf32>
    %290 = arith.mulf %289, %270 : vector<64x16xf32>
    %cst_117 = arith.constant 2.000000e-03 : f32
    %291 = vector.broadcast %cst_117 : f32 to vector<64x16xf32>
    %292 = arith.mulf %291, %288 : vector<64x16xf32>
    %293 = arith.addf %290, %292 : vector<64x16xf32>
    %294 = arith.truncf %293 : vector<64x16xf32> to vector<64x16xbf16>
    %295 = tpu.transpose %293, [1, 0] : vector<64x16xf32> -> vector<16x64xf32>
    %296 = arith.truncf %295 : vector<16x64xf32> to vector<16x64xbf16>
    %cst_118 = arith.constant dense<0.000000e+00> : vector<16x128xf32>
    %297 = tpu.matmul %296, %287, %cst_118 {dimension_numbers = #tpu.dot_dimension_numbers<[1], [0], [0], [1], [0, 0, 1, 1], [], []>} : vector<16x64xbf16>, vector<64x128xbf16>, vector<16x128xf32> -> vector<16x128xf32>
    %cst_119 = arith.constant 9.998000e-01 : f32
    %298 = vector.broadcast %cst_119 : f32 to vector<16x128xf32>
    %299 = arith.mulf %298, %279 : vector<16x128xf32>
    %cst_120 = arith.constant 2.000000e-03 : f32
    %300 = vector.broadcast %cst_120 : f32 to vector<16x128xf32>
    %301 = arith.mulf %300, %297 : vector<16x128xf32>
    %302 = arith.addf %299, %301 : vector<16x128xf32>
    %303 = arith.truncf %302 : vector<16x128xf32> to vector<16x128xbf16>
    %c13_i32 = arith.constant 13 : i32
    %cst_121 = arith.constant dense<0.000000e+00> : vector<64x128xf32>
    %304 = tpu.matmul %294, %303, %cst_121 {dimension_numbers = #tpu.dot_dimension_numbers<[1], [0], [0], [1], [0, 0, 1, 1], [], []>} : vector<64x16xbf16>, vector<16x128xbf16>, vector<64x128xf32> -> vector<64x128xf32>
    %305 = arith.subf %0, %304 : vector<64x128xf32>
    %cst_122 = arith.constant -1.345000e+00 : f32
    %cst_123 = arith.constant 1.345000e+00 : f32
    %306 = vector.broadcast %cst_122 : f32 to vector<64x128xf32>
    %307 = arith.maximumf %306, %305 : vector<64x128xf32>
    %308 = vector.broadcast %cst_123 : f32 to vector<64x128xf32>
    %309 = arith.minimumf %308, %307 : vector<64x128xf32>
    %310 = arith.truncf %309 : vector<64x128xf32> to vector<64x128xbf16>
    %cst_124 = arith.constant dense<0.000000e+00> : vector<64x16xf32>
    %311 = tpu.matmul %310, %303, %cst_124 {dimension_numbers = #tpu.dot_dimension_numbers<[1], [1], [0], [0], [0, 0, 1, 0], [], []>} : vector<64x128xbf16>, vector<16x128xbf16>, vector<64x16xf32> -> vector<64x16xf32>
    %cst_125 = arith.constant 9.998000e-01 : f32
    %312 = vector.broadcast %cst_125 : f32 to vector<64x16xf32>
    %313 = arith.mulf %312, %293 : vector<64x16xf32>
    %cst_126 = arith.constant 2.000000e-03 : f32
    %314 = vector.broadcast %cst_126 : f32 to vector<64x16xf32>
    %315 = arith.mulf %314, %311 : vector<64x16xf32>
    %316 = arith.addf %313, %315 : vector<64x16xf32>
    %317 = arith.truncf %316 : vector<64x16xf32> to vector<64x16xbf16>
    %318 = tpu.transpose %316, [1, 0] : vector<64x16xf32> -> vector<16x64xf32>
    %319 = arith.truncf %318 : vector<16x64xf32> to vector<16x64xbf16>
    %cst_127 = arith.constant dense<0.000000e+00> : vector<16x128xf32>
    %320 = tpu.matmul %319, %310, %cst_127 {dimension_numbers = #tpu.dot_dimension_numbers<[1], [0], [0], [1], [0, 0, 1, 1], [], []>} : vector<16x64xbf16>, vector<64x128xbf16>, vector<16x128xf32> -> vector<16x128xf32>
    %cst_128 = arith.constant 9.998000e-01 : f32
    %321 = vector.broadcast %cst_128 : f32 to vector<16x128xf32>
    %322 = arith.mulf %321, %302 : vector<16x128xf32>
    %cst_129 = arith.constant 2.000000e-03 : f32
    %323 = vector.broadcast %cst_129 : f32 to vector<16x128xf32>
    %324 = arith.mulf %323, %320 : vector<16x128xf32>
    %325 = arith.addf %322, %324 : vector<16x128xf32>
    %326 = arith.truncf %325 : vector<16x128xf32> to vector<16x128xbf16>
    %c14_i32 = arith.constant 14 : i32
    %cst_130 = arith.constant dense<0.000000e+00> : vector<64x128xf32>
    %327 = tpu.matmul %317, %326, %cst_130 {dimension_numbers = #tpu.dot_dimension_numbers<[1], [0], [0], [1], [0, 0, 1, 1], [], []>} : vector<64x16xbf16>, vector<16x128xbf16>, vector<64x128xf32> -> vector<64x128xf32>
    %328 = arith.subf %0, %327 : vector<64x128xf32>
    %cst_131 = arith.constant -1.345000e+00 : f32
    %cst_132 = arith.constant 1.345000e+00 : f32
    %329 = vector.broadcast %cst_131 : f32 to vector<64x128xf32>
    %330 = arith.maximumf %329, %328 : vector<64x128xf32>
    %331 = vector.broadcast %cst_132 : f32 to vector<64x128xf32>
    %332 = arith.minimumf %331, %330 : vector<64x128xf32>
    %333 = arith.truncf %332 : vector<64x128xf32> to vector<64x128xbf16>
    %cst_133 = arith.constant dense<0.000000e+00> : vector<64x16xf32>
    %334 = tpu.matmul %333, %326, %cst_133 {dimension_numbers = #tpu.dot_dimension_numbers<[1], [1], [0], [0], [0, 0, 1, 0], [], []>} : vector<64x128xbf16>, vector<16x128xbf16>, vector<64x16xf32> -> vector<64x16xf32>
    %cst_134 = arith.constant 9.998000e-01 : f32
    %335 = vector.broadcast %cst_134 : f32 to vector<64x16xf32>
    %336 = arith.mulf %335, %316 : vector<64x16xf32>
    %cst_135 = arith.constant 2.000000e-03 : f32
    %337 = vector.broadcast %cst_135 : f32 to vector<64x16xf32>
    %338 = arith.mulf %337, %334 : vector<64x16xf32>
    %339 = arith.addf %336, %338 : vector<64x16xf32>
    %340 = arith.truncf %339 : vector<64x16xf32> to vector<64x16xbf16>
    %341 = tpu.transpose %339, [1, 0] : vector<64x16xf32> -> vector<16x64xf32>
    %342 = arith.truncf %341 : vector<16x64xf32> to vector<16x64xbf16>
    %cst_136 = arith.constant dense<0.000000e+00> : vector<16x128xf32>
    %343 = tpu.matmul %342, %333, %cst_136 {dimension_numbers = #tpu.dot_dimension_numbers<[1], [0], [0], [1], [0, 0, 1, 1], [], []>} : vector<16x64xbf16>, vector<64x128xbf16>, vector<16x128xf32> -> vector<16x128xf32>
    %cst_137 = arith.constant 9.998000e-01 : f32
    %344 = vector.broadcast %cst_137 : f32 to vector<16x128xf32>
    %345 = arith.mulf %344, %325 : vector<16x128xf32>
    %cst_138 = arith.constant 2.000000e-03 : f32
    %346 = vector.broadcast %cst_138 : f32 to vector<16x128xf32>
    %347 = arith.mulf %346, %343 : vector<16x128xf32>
    %348 = arith.addf %345, %347 : vector<16x128xf32>
    %349 = arith.truncf %348 : vector<16x128xf32> to vector<16x128xbf16>
    %cst_139 = arith.constant dense<0.000000e+00> : vector<64x128xf32>
    %350 = tpu.matmul %340, %349, %cst_139 {dimension_numbers = #tpu.dot_dimension_numbers<[1], [0], [0], [1], [0, 0, 1, 1], [], []>} : vector<64x16xbf16>, vector<16x128xbf16>, vector<64x128xf32> -> vector<64x128xf32>
    %c0_140 = arith.constant 0 : index
    %c0_141 = arith.constant 0 : index
    %351 = vector.load %arg3[%c0_140, %c0_141] : memref<64x128xf32, #tpu.memory_space<vmem>>, vector<64x128xf32>
    tpu.vector_store %arg3[%c0_140, %c0_141], %350 {strides = array<i32>} : memref<64x128xf32, #tpu.memory_space<vmem>>, vector<64x128xf32>,
    return
  }
}

</mosaic_0001>

<bundles_post_ra>
// kernel: tpu_custom_call.1
= control target key start
LH: loop header
LB: loop body
LE: loop exit
PB: predicated region body
PF: predicated region fallthrough
CT: control target
= control target key end

     0   :  { %vm39_vm0 = vcmask 130048   ;;  %s6513_s0 = inlined_call_operand.vmem [shape: f32[64,128], index: 0, kind: input, shape index: {}]   ;;  %s6514_s1 = inlined_call_operand.vmem [shape: f32[64,16], index: 1, kind: input, shape index: {}]   ;;  %s6515_s2 = inlined_call_operand.vmem [shape: f32[16,128], index: 2, kind: input, shape index: {}]   ;;  %s6516_s3 = inlined_call_operand.hbm [shape: f32[64,128], index: 3, kind: output, shape index: {}]  }
   0x1   :  { %v5362_v0 = vld [vmem:[%s6515_s2] sm:$0xff]  ;;  %v5367_v1 = vld [vmem:[%s6515_s2 + $0x8] sm:$0xff]  ;;  %v5384_v5 = vld [vmem:[%s6514_s1 + $0x10] sm:$0xff] }
   0x2   :  { %v5372_v2 = vld [vmem:[%s6514_s1] sm:$0xff]  ;;  %v38_v3 = vpack.c.bf16 %v5367_v1, %v5362_v0  ;;  %v5379_v4 = vld [vmem:[%s6514_s1 + $0x8] sm:$0xff]  ;;  %v5389_v6 = vld [vmem:[%s6514_s1 + $0x18] sm:$0xff] }
   0x3   :  { %v34_v7 = vpack.c.bf16 %v5379_v4, %v5372_v2  ;;  %v5396_v8 = vld [vmem:[%s6514_s1 + $0x20] sm:$0xff]  ;;  %v5401_v9 = vld [vmem:[%s6514_s1 + $0x28] sm:$0xff]  ;;  %v35_v10 = vpack.c.bf16 %v5389_v6, %v5384_v5 }
   0x4   :  { %4801 = vmatprep.subr.bf16.mxu0 %v38_v3  ;;  %4811 = vmatprep.subr.bf16.mxu1 %v38_v3 }
   0x5   :  { %8 = vsyncpa [#allocation3], 0  ;;  %4802 = vmatpush3.bf16.msra.mxu0 %v38_v3  ;;  %4803 = vmatprep.mubr.msk.bf16.mxu0 %vm39_vm0, %v34_v7  ;;  %v36_v11 = vpack.c.bf16 %v5401_v9, %v5396_v8  ;;  %v5413_v12 = vld [vmem:[%s6514_s1 + $0x30] sm:$0xff]  ;;  %v5418_v13 = vld [vmem:[%s6514_s1 + $0x38] sm:$0xff]  ;;  %v5334_v15 = vmov 0.0   ;;  %vm5335_vm1 = vmmov 0  }
   0x6   :  { %4812 = vmatpush3.bf16.xpose.msra.mxu1 %v38_v3  ;;  %v37_v14 = vpack.c.bf16 %v5418_v13, %v5413_v12  ;;  %4821 = vmatprep.subr.bf16.mxu0 %v5334_v15  ;;  %v5427_v17 = vld [vmem:[%s6513_s0] sm:$0xff]  ;;  %v5432_v19 = vld [vmem:[%s6513_s0 + $0x18] sm:$0xff]  ;;  %v5437_v20 = vld [vmem:[%s6513_s0 + $0x10] sm:$0xff]  ;;  %v210_v53 = vmul.f32 0.9998, %v5372_v2  ;;  %vm271_vm2 = vcmask 523264  }
   0x7   :  { %v5442_v22 = vld [vmem:[%s6513_s0 + $0x8] sm:$0xff]  ;;  %v5450_v27 = vld [vmem:[%s6513_s0 + $0x30] sm:$0xff]  ;;  %v5456_v31 = vld [vmem:[%s6513_s0 + $0x20] sm:$0xff]  ;;  %v212_v54 = vmul.f32 0.9998, %v5384_v5 }
   0x8   :  { %4804 = vmatmul.mubr.msk.bf16.vlgmr.msra.gmra.mxu0 %vm39_vm0, %v35_v10  ;;  %v5462_v37 = vld [vmem:[%s6513_s0 + $0x38] sm:$0xff]  ;;  %v5468_v42 = vld [vmem:[%s6513_s0 + $0x28] sm:$0xff]  ;;  %v213_v58 = vmul.f32 0.9998, %v5389_v6  ;;  %v211_v60 = vmul.f32 0.9998, %v5379_v4 }
   0x9   :  { %4807 = vmatprep.mubr.msk.bf16.mxu0 %vm39_vm0, %v36_v11  ;;  %v216_v4 = vmul.f32 0.9998, %v5413_v12 }
  0x10   :  { %4808 = vmatmul.mubr.msk.bf16.gmra.mxu0 %vm39_vm0, %v37_v14 }
  0x11   :  { %4829 = vmatprep.mubr.msk.bf16.mxu0 %vm5335_vm1, %v5334_v15 }
  0xc8   :  { %v4805_v16 = vpop.f32.mrf.mxu0 }
  0xc9   :  { %v119_v25 = vsub.f32 %v5437_v20, %v4805_v16  ;;  %v217_v16 = vmul.f32 0.9998, %v5418_v13 }
  0xca   :  { %v86_v18 = vpop.f32.mrf.mxu0 }
  0xcb   :  { %v117_v23 = vsub.f32 %v5427_v17, %v86_v18  ;;  %v4378_v35 = vclamps-f32 %v119_v25, 1.345 }
  0xcc   :  { %v4806_v21 = vpop.f32.mrf.mxu0 }
  0xcd   :  { %v120_v24 = vsub.f32 %v5432_v19, %v4806_v21  ;;  %v4376_v32 = vclamps-f32 %v117_v23, 1.345  ;;  %v214_v21 = vmul.f32 0.9998, %v5396_v8 }
  0xce   :  { %v89_v26 = vpop.f32.mrf.mxu0 }
  0xcf   :  { %v118_v28 = vsub.f32 %v5442_v22, %v89_v26  ;;  %v4379_v29 = vclamps-f32 %v120_v24, 1.345  ;;  %v215_v26 = vmul.f32 0.9998, %v5401_v9 }
  0xd0   :  { %v4809_v30 = vpop.f32.mrf.mxu0 }
  0xd1   :  { %v4377_v33 = vclamps-f32 %v118_v28, 1.345  ;;  %v123_v34 = vsub.f32 %v5450_v27, %v4809_v30  ;;  %v142_v40 = vpack.c.bf16 %v4379_v29, %v4378_v35 }
  0xd2   :  { %v102_v36 = vpop.f32.mrf.mxu0 }
  0xd3   :  { %v121_v38 = vsub.f32 %v5456_v31, %v102_v36  ;;  %v141_v39 = vpack.c.bf16 %v4377_v33, %v4376_v32  ;;  %v4382_v43 = vclamps-f32 %v123_v34, 1.345 }
  0xd4   :  { %v4810_v41 = vpop.f32.mrf.mxu0 }
  0xd5   :  { %v124_v44 = vsub.f32 %v5462_v37, %v4810_v41  ;;  %4813 = vmatprep.mubr.bf16.mxu1 %v141_v39  ;;  %v4380_v46 = vclamps-f32 %v121_v38, 1.345  ;;  %v317_v41 = vmul.f32 0.9998, %v5367_v1 }
  0xd6   :  { %v105_v45 = vpop.f32.mrf.mxu0  ;;  %4814 = vmatmul.mubr.bf16.vlgmr.msra.gmra.mxu1 %v142_v40 }
  0xd7   :  { %v4383_v47 = vclamps-f32 %v124_v44, 1.345  ;;  %v122_v48 = vsub.f32 %v5468_v42, %v105_v45 }
  0xd9   :  { %v144_v49 = vpack.c.bf16 %v4383_v47, %v4382_v43  ;;  %v4381_v50 = vclamps-f32 %v122_v48, 1.345 }
  0xdb   :  { %4822 = vmatpush3.bf16.msra.mxu0 %v144_v49  ;;  %v143_v51 = vpack.c.bf16 %v4381_v50, %v4380_v46 }
  0xdc   :  { %4823 = vmatprep.subr.bf16.mxu0 %v5334_v15 }
  0xdd   :  { %4817 = vmatprep.mubr.bf16.mxu1 %v143_v51 }
  0xde   :  { %4818 = vmatmul.mubr.bf16.gmra.mxu1 %v144_v49 }
  0xdf   :  { %4824 = vmatpush3.bf16.msra.mxu0 %v143_v51 }
  0xe0   :  { %4825 = vmatprep.subr.bf16.mxu0 %v5334_v15 }
  0xe3   :  { %4826 = vmatpush3.bf16.msra.mxu0 %v142_v40 }
  0xe4   :  { %4827 = vmatprep.subr.bf16.mxu0 %v5334_v15 }
  0xe7   :  { %4828 = vmatpush3.bf16.msra.mxu0 %v141_v39  ;;  %v316_v39 = vmul.f32 0.9998, %v5362_v0 }
 0x196   :  { %v4815_v52 = vpop.f32.mrf.mxu1 }
 0x197   :  { %v220_v56 = vmul.f32 0.002, %v4815_v52 }
 0x198   :  { %v179_v55 = vpop.f32.mrf.mxu1 }
 0x199   :  { %v218_v57 = vmul.f32 0.002, %v179_v55  ;;  %v5481_v3 = vadd.f32 %v220_v56, %v212_v54 }
 0x19a   :  { %v4816_v59 = vpop.f32.mrf.mxu1 }
 0x19b   :  { %v5479_v61 = vadd.f32 %v218_v57, %v210_v53  ;;  %v221_v62 = vmul.f32 0.002, %v4816_v59 }
 0x19c   :  { %v182_v63 = vpop.f32.mrf.mxu1 }
 0x19d   :  { %v5483_v7 = vadd.f32 %v221_v62, %v213_v58  ;;  %v219_v10 = vmul.f32 0.002, %v182_v63  ;;  %238 = vxpose.xlu0.b32.start [1/8] (short) (narrow) %v5479_v61, 16 }
 0x19e   :  { %v4819_v2 = vpop.f32.mrf.mxu1 }
 0x19f   :  { %v235_v5 = vpack.c.bf16 %v5483_v7, %v5481_v3  ;;  %v5488_v11 = vadd.f32 %v219_v10, %v211_v60  ;;  %v224_v14 = vmul.f32 0.002, %v4819_v2 }
 0x1a0   :  { %v195_v6 = vpop.f32.mrf.mxu1 }
 0x1a1   :  { %239 = vxpose.xlu0.b32.cont [2/8] (short) (narrow) %v5488_v11, 16  ;;  %v234_v18 = vpack.c.bf16 %v5488_v11, %v5479_v61  ;;  %v222_v24 = vmul.f32 0.002, %v195_v6  ;;  %v5500_v12 = vadd.f32 %v224_v14, %v216_v4 }
 0x1a2   :  { %v4820_v23 = vpop.f32.mrf.mxu1 }
 0x1a3   :  { %v225_v25 = vmul.f32 0.002, %v4820_v23  ;;  %4835 = vmatprep.mubr.msk.bf16.mxu1 %vm39_vm0, %v234_v18  ;;  %v5505_v13 = vadd.f32 %v222_v24, %v214_v21 }
 0x1a4   :  { %v198_v28 = vpop.f32.mrf.mxu1 }
 0x1a5   :  { %v5502_v29 = vadd.f32 %v225_v25, %v217_v16  ;;  %v223_v30 = vmul.f32 0.002, %v198_v28  ;;  %240 = vxpose.xlu0.b32.cont [3/8] (short) (narrow) %v5481_v3, 16 }
 0x1a7   :  { %v237_v8 = vpack.c.bf16 %v5502_v29, %v5500_v12  ;;  %v5509_v32 = vadd.f32 %v223_v30, %v215_v26 }
 0x1a9   :  { %241 = vxpose.xlu0.b32.cont [4/8] (short) (narrow) %v5483_v7, 16  ;;  %v236_v9 = vpack.c.bf16 %v5509_v32, %v5505_v13 }
 0x1ad   :  { %242 = vxpose.xlu0.b32.cont [5/8] (short) (narrow) %v5505_v13, 16 }
 0x1b1   :  { %243 = vxpose.xlu0.b32.cont [6/8] (short) (narrow) %v5509_v32, 16 }
 0x1b5   :  { %244 = vxpose.xlu0.b32.cont [7/8] (short) (narrow) %v5500_v12, 16 }
 0x1b9   :  { %245 = vxpose.xlu0.b32.end [8/8] (short) (narrow) %v5502_v29, 16 }
 0x219   :  { %v254_v33 = vpop.trf.xlu0 }
 0x21d   :  { %v255_v34 = vpop.trf.xlu0 }
 0x21e   :  { %v270_v35 = vpack.c.bf16 %v255_v34, %v254_v33  ;;  %v495_v34 = vmul.f32 0.9998, %v5481_v3 }
 0x220   :  { %4830 = vmatmul.mubr.msk.bf16.vlgmr.msra.gmra.mxu0 %vm271_vm2, %v270_v35 }
 0x2e0   :  { %v309_v36 = vpop.f32.mrf.mxu0 }
 0x2e1   :  { %v318_v40 = vmul.f32 0.002, %v309_v36  ;;  %v496_v36 = vmul.f32 0.9998, %v5483_v7 }
 0x2e2   :  { %v4831_v38 = vpop.f32.mrf.mxu0 }
 0x2e3   :  { %v5521_v46 = vadd.f32 %v318_v40, %v316_v39 }
 0x2e4   :  { %v312_v43 = vpop.f32.mrf.mxu0 }
 0x2e5   :  { %v319_v44 = vmul.f32 0.002, %v312_v43  ;;  %v494_v43 = vmul.f32 0.9998, %v5488_v11 }
 0x2e6   :  { %v4832_v45 = vpop.f32.mrf.mxu0 }
 0x2e7   :  { %v5523_v47 = vadd.f32 %v319_v44, %v317_v41 }
 0x2e9   :  { %v322_v48 = vpack.c.bf16 %v5523_v47, %v5521_v46 }
 0x2eb   :  { %4833 = vmatprep.subr.bf16.mxu1 %v322_v48  ;;  %4843 = vmatprep.subr.bf16.mxu0 %v322_v48 }
 0x2ec   :  { %4834 = vmatpush3.bf16.msra.mxu1 %v322_v48  ;;  %4844 = vmatpush3.bf16.xpose.msra.mxu0 %v322_v48 }
 0x2ed   :  { %4853 = vmatprep.subr.bf16.mxu0 %v5334_v15 }
 0x2ef   :  { %4836 = vmatmul.mubr.msk.bf16.vlgmr.msra.gmra.mxu1 %vm39_vm0, %v235_v5 }
 0x2f0   :  { %4839 = vmatprep.mubr.msk.bf16.mxu1 %vm39_vm0, %v236_v9 }
 0x2f7   :  { %4840 = vmatmul.mubr.msk.bf16.gmra.mxu1 %vm39_vm0, %v237_v8  ;;  %v493_v8 = vmul.f32 0.9998, %v5479_v61 }
 0x3af   :  { %v4837_v0 = vpop.f32.mrf.mxu1 }
 0x3b0   :  { %v402_v52 = vsub.f32 %v5437_v20, %v4837_v0 }
 0x3b1   :  { %v369_v1 = vpop.f32.mrf.mxu1 }
 0x3b2   :  { %v400_v50 = vsub.f32 %v5427_v17, %v369_v1  ;;  %v4391_v59 = vclamps-f32 %v402_v52, 1.345  ;;  %v499_v1 = vmul.f32 0.9998, %v5500_v12  ;;  %v497_v52 = vmul.f32 0.9998, %v5505_v13 }
 0x3b3   :  { %v4838_v49 = vpop.f32.mrf.mxu1 }
 0x3b4   :  { %v403_v51 = vsub.f32 %v5432_v19, %v4838_v49  ;;  %v4389_v57 = vclamps-f32 %v400_v50, 1.345  ;;  %v500_v50 = vmul.f32 0.9998, %v5502_v29 }
 0x3b5   :  { %v372_v53 = vpop.f32.mrf.mxu1 }
 0x3b6   :  { %v401_v54 = vsub.f32 %v5442_v22, %v372_v53  ;;  %v4392_v55 = vclamps-f32 %v403_v51, 1.345 }
 0x3b7   :  { %v4841_v56 = vpop.f32.mrf.mxu1 }
 0x3b8   :  { %v4390_v58 = vclamps-f32 %v401_v54, 1.345  ;;  %v406_v62 = vsub.f32 %v5450_v27, %v4841_v56  ;;  %v425_v10 = vpack.c.bf16 %v4392_v55, %v4391_v59  ;;  %v498_v56 = vmul.f32 0.9998, %v5509_v32 }
 0x3b9   :  { %v385_v60 = vpop.f32.mrf.mxu1 }
 0x3ba   :  { %v424_v63 = vpack.c.bf16 %v4390_v58, %v4389_v57  ;;  %v404_v5 = vsub.f32 %v5456_v31, %v385_v60  ;;  %v4395_v14 = vclamps-f32 %v406_v62, 1.345 }
 0x3bb   :  { %v4842_v2 = vpop.f32.mrf.mxu1 }
 0x3bc   :  { %v407_v4 = vsub.f32 %v5462_v37, %v4842_v2  ;;  %4845 = vmatprep.mubr.bf16.mxu0 %v424_v63  ;;  %v4393_v21 = vclamps-f32 %v404_v5, 1.345  ;;  %v598_v5 = vmul.f32 0.9998, %v5521_v46 }
 0x3bd   :  { %v388_v6 = vpop.f32.mrf.mxu1  ;;  %4846 = vmatmul.mubr.bf16.vlgmr.msra.gmra.mxu0 %v425_v10 }
 0x3be   :  { %v4396_v16 = vclamps-f32 %v407_v4, 1.345  ;;  %v405_v18 = vsub.f32 %v5468_v42, %v388_v6  ;;  %v599_v4 = vmul.f32 0.9998, %v5523_v47 }
 0x3c0   :  { %v427_v23 = vpack.c.bf16 %v4396_v16, %v4395_v14  ;;  %v4394_v24 = vclamps-f32 %v405_v18, 1.345 }
 0x3c2   :  { %4854 = vmatpush3.bf16.msra.mxu0 %v427_v23  ;;  %v426_v25 = vpack.c.bf16 %v4394_v24, %v4393_v21 }
 0x3c3   :  { %4855 = vmatprep.subr.bf16.mxu0 %v5334_v15 }
 0x3c4   :  { %4849 = vmatprep.mubr.bf16.mxu0 %v426_v25 }
 0x3c5   :  { %4850 = vmatmul.mubr.bf16.gmra.mxu0 %v427_v23 }
 0x3c6   :  { %4856 = vmatpush3.bf16.msra.mxu0 %v426_v25  ;;  %4861 = vmatprep.mubr.msk.bf16.mxu0 %vm5335_vm1, %v5334_v15 }
 0x3c7   :  { %4857 = vmatprep.subr.bf16.mxu0 %v5334_v15 }
 0x3ca   :  { %4858 = vmatpush3.bf16.msra.mxu0 %v425_v10 }
 0x3cb   :  { %4859 = vmatprep.subr.bf16.mxu0 %v5334_v15 }
 0x3ce   :  { %4860 = vmatpush3.bf16.msra.mxu0 %v424_v63 }
 0x47d   :  { %v4847_v26 = vpop.f32.mrf.mxu0 }
 0x47e   :  { %v503_v30 = vmul.f32 0.002, %v4847_v26 }
 0x47f   :  { %v462_v28 = vpop.f32.mrf.mxu0 }
 0x480   :  { %v501_v9 = vmul.f32 0.002, %v462_v28  ;;  %v5549_v40 = vadd.f32 %v503_v30, %v495_v34 }
 0x481   :  { %v4848_v33 = vpop.f32.mrf.mxu0 }
 0x482   :  { %v5546_v35 = vadd.f32 %v501_v9, %v493_v8  ;;  %v504_v38 = vmul.f32 0.002, %v4848_v33 }
 0x483   :  { %v465_v39 = vpop.f32.mrf.mxu0 }
 0x484   :  { %v5551_v41 = vadd.f32 %v504_v38, %v496_v36  ;;  %v502_v44 = vmul.f32 0.002, %v465_v39  ;;  %521 = vxpose.xlu1.b32.start [1/8] (short) (narrow) %v5546_v35, 16 }
 0x485   :  { %v4851_v61 = vpop.f32.mrf.mxu0 }
 0x486   :  { %v518_v45 = vpack.c.bf16 %v5551_v41, %v5549_v40  ;;  %v5557_v3 = vadd.f32 %v502_v44, %v494_v43  ;;  %v507_v0 = vmul.f32 0.002, %v4851_v61 }
 0x487   :  { %v478_v48 = vpop.f32.mrf.mxu0 }
 0x488   :  { %522 = vxpose.xlu1.b32.cont [2/8] (short) (narrow) %v5557_v3, 16  ;;  %v517_v7 = vpack.c.bf16 %v5557_v3, %v5546_v35  ;;  %v505_v11 = vmul.f32 0.002, %v478_v48  ;;  %v5565_v54 = vadd.f32 %v507_v0, %v499_v1 }
 0x489   :  { %v4852_v49 = vpop.f32.mrf.mxu0 }
 0x48a   :  { %v508_v51 = vmul.f32 0.002, %v4852_v49  ;;  %v5571_v58 = vadd.f32 %v505_v11, %v497_v52 }
 0x48b   :  { %v481_v53 = vpop.f32.mrf.mxu0 }
 0x48c   :  { %v5567_v55 = vadd.f32 %v508_v51, %v500_v50  ;;  %v506_v57 = vmul.f32 0.002, %v481_v53  ;;  %523 = vxpose.xlu1.b32.cont [3/8] (short) (narrow) %v5549_v40, 16 }
 0x48e   :  { %v520_v12 = vpack.c.bf16 %v5567_v55, %v5565_v54  ;;  %v5575_v59 = vadd.f32 %v506_v57, %v498_v56 }
 0x490   :  { %524 = vxpose.xlu1.b32.cont [4/8] (short) (narrow) %v5551_v41, 16  ;;  %v519_v29 = vpack.c.bf16 %v5575_v59, %v5571_v58 }
 0x494   :  { %525 = vxpose.xlu1.b32.cont [5/8] (short) (narrow) %v5571_v58, 16 }
 0x498   :  { %526 = vxpose.xlu1.b32.cont [6/8] (short) (narrow) %v5575_v59, 16 }
 0x49c   :  { %527 = vxpose.xlu1.b32.cont [7/8] (short) (narrow) %v5565_v54, 16 }
 0x4a0   :  { %528 = vxpose.xlu1.b32.end [8/8] (short) (narrow) %v5567_v55, 16 }
 0x500   :  { %v537_v13 = vpop.trf.xlu1 }
 0x504   :  { %v538_v32 = vpop.trf.xlu1 }
 0x505   :  { %v553_v60 = vpack.c.bf16 %v538_v32, %v537_v13  ;;  %v777_v32 = vmul.f32 0.9998, %v5549_v40 }
 0x507   :  { %4862 = vmatmul.mubr.msk.bf16.vlgmr.msra.gmra.mxu0 %vm271_vm2, %v553_v60 }
 0x508   :  { %4867 = vmatprep.mubr.msk.bf16.mxu0 %vm39_vm0, %v517_v7 }
 0x5c7   :  { %v591_v62 = vpop.f32.mrf.mxu0 }
 0x5c8   :  { %v600_v10 = vmul.f32 0.002, %v591_v62  ;;  %v778_v62 = vmul.f32 0.9998, %v5551_v41 }
 0x5c9   :  { %v4863_v63 = vpop.f32.mrf.mxu0 }
 0x5ca   :  { %v5588_v16 = vadd.f32 %v600_v10, %v598_v5 }
 0x5cb   :  { %v594_v2 = vpop.f32.mrf.mxu0 }
 0x5cc   :  { %v601_v6 = vmul.f32 0.002, %v594_v2 }
 0x5cd   :  { %v4864_v14 = vpop.f32.mrf.mxu0 }
 0x5ce   :  { %v5590_v18 = vadd.f32 %v601_v6, %v599_v4  ;;  %v776_v4 = vmul.f32 0.9998, %v5557_v3 }
 0x5d0   :  { %v604_v21 = vpack.c.bf16 %v5590_v18, %v5588_v16 }
 0x5d2   :  { %4865 = vmatprep.subr.bf16.mxu0 %v604_v21  ;;  %4875 = vmatprep.subr.bf16.mxu1 %v604_v21 }
 0x5d3   :  { %4866 = vmatpush3.bf16.msra.mxu0 %v604_v21  ;;  %4876 = vmatpush3.bf16.xpose.msra.mxu1 %v604_v21 }
 0x5d4   :  { %4885 = vmatprep.subr.bf16.mxu0 %v5334_v15 }
 0x5d6   :  { %4868 = vmatmul.mubr.msk.bf16.vlgmr.msra.gmra.mxu0 %vm39_vm0, %v518_v45 }
 0x5d7   :  { %4871 = vmatprep.mubr.msk.bf16.mxu0 %vm39_vm0, %v519_v29 }
 0x5de   :  { %4872 = vmatmul.mubr.msk.bf16.gmra.mxu0 %vm39_vm0, %v520_v12  ;;  %v775_v12 = vmul.f32 0.9998, %v5546_v35 }
 0x5df   :  { %4893 = vmatprep.mubr.msk.bf16.mxu0 %vm5335_vm1, %v5334_v15 }
 0x696   :  { %v4869_v46 = vpop.f32.mrf.mxu0 }
 0x697   :  { %v684_v26 = vsub.f32 %v5437_v20, %v4869_v46 }
 0x698   :  { %v651_v47 = vpop.f32.mrf.mxu0 }
 0x699   :  { %v682_v24 = vsub.f32 %v5427_v17, %v651_v47  ;;  %v4404_v36 = vclamps-f32 %v684_v26, 1.345  ;;  %v781_v47 = vmul.f32 0.9998, %v5565_v54  ;;  %v779_v26 = vmul.f32 0.9998, %v5571_v58 }
 0x69a   :  { %v4870_v23 = vpop.f32.mrf.mxu0 }
 0x69b   :  { %v685_v25 = vsub.f32 %v5432_v19, %v4870_v23  ;;  %v4402_v33 = vclamps-f32 %v682_v24, 1.345  ;;  %v782_v24 = vmul.f32 0.9998, %v5567_v55 }
 0x69c   :  { %v654_v28 = vpop.f32.mrf.mxu0 }
 0x69d   :  { %v683_v30 = vsub.f32 %v5442_v22, %v654_v28  ;;  %v4405_v8 = vclamps-f32 %v685_v25, 1.345 }
 0x69e   :  { %v4873_v9 = vpop.f32.mrf.mxu0 }
 0x69f   :  { %v4403_v34 = vclamps-f32 %v683_v30, 1.345  ;;  %v688_v39 = vsub.f32 %v5450_v27, %v4873_v9  ;;  %v707_v44 = vpack.c.bf16 %v4405_v8, %v4404_v36  ;;  %v780_v9 = vmul.f32 0.9998, %v5575_v59 }
 0x6a0   :  { %v667_v38 = vpop.f32.mrf.mxu0 }
 0x6a1   :  { %v706_v43 = vpack.c.bf16 %v4403_v34, %v4402_v33  ;;  %v686_v45 = vsub.f32 %v5456_v31, %v667_v38  ;;  %v4408_v7 = vclamps-f32 %v688_v39, 1.345 }
 0x6a2   :  { %v4874_v61 = vpop.f32.mrf.mxu0 }
 0x6a3   :  { %v689_v48 = vsub.f32 %v5462_v37, %v4874_v61  ;;  %4877 = vmatprep.mubr.bf16.mxu1 %v706_v43  ;;  %v4406_v11 = vclamps-f32 %v686_v45, 1.345  ;;  %v880_v45 = vmul.f32 0.9998, %v5588_v16 }
 0x6a4   :  { %v670_v0 = vpop.f32.mrf.mxu0  ;;  %4878 = vmatmul.mubr.bf16.vlgmr.msra.gmra.mxu1 %v707_v44 }
 0x6a5   :  { %v4409_v1 = vclamps-f32 %v689_v48, 1.345  ;;  %v687_v49 = vsub.f32 %v5468_v42, %v670_v0  ;;  %v881_v48 = vmul.f32 0.9998, %v5590_v18 }
 0x6a7   :  { %v709_v50 = vpack.c.bf16 %v4409_v1, %v4408_v7  ;;  %v4407_v51 = vclamps-f32 %v687_v49, 1.345 }
 0x6a9   :  { %4886 = vmatpush3.bf16.msra.mxu0 %v709_v50  ;;  %v708_v52 = vpack.c.bf16 %v4407_v51, %v4406_v11 }
 0x6aa   :  { %4887 = vmatprep.subr.bf16.mxu0 %v5334_v15 }
 0x6ab   :  { %4881 = vmatprep.mubr.bf16.mxu1 %v708_v52 }
 0x6ac   :  { %4882 = vmatmul.mubr.bf16.gmra.mxu1 %v709_v50 }
 0x6ad   :  { %4888 = vmatpush3.bf16.msra.mxu0 %v708_v52 }
 0x6ae   :  { %4889 = vmatprep.subr.bf16.mxu0 %v5334_v15 }
 0x6b1   :  { %4890 = vmatpush3.bf16.msra.mxu0 %v707_v44 }
 0x6b2   :  { %4891 = vmatprep.subr.bf16.mxu0 %v5334_v15 }
 0x6b5   :  { %4892 = vmatpush3.bf16.msra.mxu0 %v706_v43 }
 0x764   :  { %v4879_v53 = vpop.f32.mrf.mxu1 }
 0x765   :  { %v785_v57 = vmul.f32 0.002, %v4879_v53 }
 0x766   :  { %v744_v56 = vpop.f32.mrf.mxu1 }
 0x767   :  { %v783_v29 = vmul.f32 0.002, %v744_v56  ;;  %v5616_v2 = vadd.f32 %v785_v57, %v777_v32 }
 0x768   :  { %v4880_v13 = vpop.f32.mrf.mxu1 }
 0x769   :  { %v5613_v60 = vadd.f32 %v783_v29, %v775_v12  ;;  %v786_v63 = vmul.f32 0.002, %v4880_v13 }
 0x76a   :  { %v747_v10 = vpop.f32.mrf.mxu1 }
 0x76b   :  { %v5618_v5 = vadd.f32 %v786_v63, %v778_v62  ;;  %v784_v6 = vmul.f32 0.002, %v747_v10  ;;  %803 = vxpose.xlu0.b32.start [1/8] (short) (narrow) %v5613_v60, 16 }
 0x76c   :  { %v4883_v35 = vpop.f32.mrf.mxu1 }
 0x76d   :  { %v800_v14 = vpack.c.bf16 %v5618_v5, %v5616_v2  ;;  %v5624_v40 = vadd.f32 %v784_v6, %v776_v4  ;;  %v789_v46 = vmul.f32 0.002, %v4883_v35 }
 0x76e   :  { %v760_v21 = vpop.f32.mrf.mxu1 }
 0x76f   :  { %804 = vxpose.xlu0.b32.cont [2/8] (short) (narrow) %v5624_v40, 16  ;;  %v799_v41 = vpack.c.bf16 %v5624_v40, %v5613_v60  ;;  %v787_v3 = vmul.f32 0.002, %v760_v21  ;;  %v5633_v30 = vadd.f32 %v789_v46, %v781_v47 }
 0x770   :  { %v4884_v23 = vpop.f32.mrf.mxu1 }
 0x771   :  { %v790_v25 = vmul.f32 0.002, %v4884_v23  ;;  %4899 = vmatprep.mubr.msk.bf16.mxu1 %vm39_vm0, %v799_v41  ;;  %v5639_v54 = vadd.f32 %v787_v3, %v779_v26 }
 0x772   :  { %v763_v28 = vpop.f32.mrf.mxu1 }
 0x773   :  { %v5635_v8 = vadd.f32 %v790_v25, %v782_v24  ;;  %v788_v33 = vmul.f32 0.002, %v763_v28  ;;  %805 = vxpose.xlu0.b32.cont [3/8] (short) (narrow) %v5616_v2, 16 }
 0x775   :  { %v802_v55 = vpack.c.bf16 %v5635_v8, %v5633_v30  ;;  %v5643_v34 = vadd.f32 %v788_v33, %v780_v9 }
 0x777   :  { %806 = vxpose.xlu0.b32.cont [4/8] (short) (narrow) %v5618_v5, 16  ;;  %v801_v58 = vpack.c.bf16 %v5643_v34, %v5639_v54 }
 0x77b   :  { %807 = vxpose.xlu0.b32.cont [5/8] (short) (narrow) %v5639_v54, 16 }
 0x77f   :  { %808 = vxpose.xlu0.b32.cont [6/8] (short) (narrow) %v5643_v34, 16 }
 0x783   :  { %809 = vxpose.xlu0.b32.cont [7/8] (short) (narrow) %v5633_v30, 16 }
 0x787   :  { %810 = vxpose.xlu0.b32.end [8/8] (short) (narrow) %v5635_v8, 16 }
 0x7e7   :  { %v819_v59 = vpop.trf.xlu0 }
 0x7eb   :  { %v820_v36 = vpop.trf.xlu0 }
 0x7ec   :  { %v835_v38 = vpack.c.bf16 %v820_v36, %v819_v59  ;;  %v1059_v36 = vmul.f32 0.9998, %v5616_v2 }
 0x7ee   :  { %4894 = vmatmul.mubr.msk.bf16.vlgmr.msra.gmra.mxu0 %vm271_vm2, %v835_v38 }
 0x8ae   :  { %v873_v39 = vpop.f32.mrf.mxu0 }
 0x8af   :  { %v882_v44 = vmul.f32 0.002, %v873_v39  ;;  %v1060_v39 = vmul.f32 0.9998, %v5618_v5 }
 0x8b0   :  { %v4895_v43 = vpop.f32.mrf.mxu0 }
 0x8b1   :  { %v5655_v1 = vadd.f32 %v882_v44, %v880_v45 }
 0x8b2   :  { %v876_v61 = vpop.f32.mrf.mxu0 }
 0x8b3   :  { %v883_v0 = vmul.f32 0.002, %v876_v61 }
 0x8b4   :  { %v4896_v7 = vpop.f32.mrf.mxu0 }
 0x8b5   :  { %v5657_v49 = vadd.f32 %v883_v0, %v881_v48  ;;  %v1058_v48 = vmul.f32 0.9998, %v5624_v40 }
 0x8b7   :  { %v886_v11 = vpack.c.bf16 %v5657_v49, %v5655_v1 }
 0x8b9   :  { %4897 = vmatprep.subr.bf16.mxu1 %v886_v11  ;;  %4907 = vmatprep.subr.bf16.mxu0 %v886_v11 }
 0x8ba   :  { %4898 = vmatpush3.bf16.msra.mxu1 %v886_v11  ;;  %4908 = vmatpush3.bf16.xpose.msra.mxu0 %v886_v11 }
 0x8bb   :  { %4917 = vmatprep.subr.bf16.mxu1 %v5334_v15 }
 0x8bd   :  { %4900 = vmatmul.mubr.msk.bf16.vlgmr.msra.gmra.mxu1 %vm39_vm0, %v800_v14 }
 0x8be   :  { %4903 = vmatprep.mubr.msk.bf16.mxu1 %vm39_vm0, %v801_v58 }
 0x8c5   :  { %4904 = vmatmul.mubr.msk.bf16.gmra.mxu1 %vm39_vm0, %v802_v55  ;;  %v1057_v55 = vmul.f32 0.9998, %v5613_v60 }
 0x8c6   :  { %4925 = vmatprep.mubr.msk.bf16.mxu1 %vm5335_vm1, %v5334_v15 }
 0x97d   :  { %v4901_v16 = vpop.f32.mrf.mxu1 }
 0x97e   :  { %v966_v53 = vsub.f32 %v5437_v20, %v4901_v16 }
 0x97f   :  { %v933_v18 = vpop.f32.mrf.mxu1 }
 0x980   :  { %v964_v51 = vsub.f32 %v5427_v17, %v933_v18  ;;  %v4417_v62 = vclamps-f32 %v966_v53, 1.345  ;;  %v1063_v18 = vmul.f32 0.9998, %v5633_v30  ;;  %v1061_v53 = vmul.f32 0.9998, %v5639_v54 }
 0x981   :  { %v4902_v50 = vpop.f32.mrf.mxu1 }
 0x982   :  { %v967_v52 = vsub.f32 %v5432_v19, %v4902_v50  ;;  %v4415_v13 = vclamps-f32 %v964_v51, 1.345  ;;  %v1064_v51 = vmul.f32 0.9998, %v5635_v8 }
 0x983   :  { %v936_v56 = vpop.f32.mrf.mxu1 }
 0x984   :  { %v965_v57 = vsub.f32 %v5442_v22, %v936_v56  ;;  %v4418_v12 = vclamps-f32 %v967_v52, 1.345 }
 0x985   :  { %v4905_v29 = vpop.f32.mrf.mxu1 }
 0x986   :  { %v4416_v32 = vclamps-f32 %v965_v57, 1.345  ;;  %v970_v10 = vsub.f32 %v5450_v27, %v4905_v29  ;;  %v989_v6 = vpack.c.bf16 %v4418_v12, %v4417_v62  ;;  %v1062_v29 = vmul.f32 0.9998, %v5643_v34 }
 0x987   :  { %v949_v63 = vpop.f32.mrf.mxu1 }
 0x988   :  { %v988_v4 = vpack.c.bf16 %v4416_v32, %v4415_v13  ;;  %v968_v14 = vsub.f32 %v5456_v31, %v949_v63  ;;  %v4421_v41 = vclamps-f32 %v970_v10, 1.345 }
 0x989   :  { %v4906_v35 = vpop.f32.mrf.mxu1 }
 0x98a   :  { %v971_v21 = vsub.f32 %v5462_v37, %v4906_v35  ;;  %4909 = vmatprep.mubr.bf16.mxu0 %v988_v4  ;;  %v4419_v3 = vclamps-f32 %v968_v14, 1.345  ;;  %v1162_v14 = vmul.f32 0.9998, %v5655_v1 }
 0x98b   :  { %v952_v46 = vpop.f32.mrf.mxu1  ;;  %4910 = vmatmul.mubr.bf16.vlgmr.msra.gmra.mxu0 %v989_v6 }
 0x98c   :  { %v4422_v47 = vclamps-f32 %v971_v21, 1.345  ;;  %v969_v23 = vsub.f32 %v5468_v42, %v952_v46  ;;  %v1163_v21 = vmul.f32 0.9998, %v5657_v49 }
 0x98e   :  { %v991_v24 = vpack.c.bf16 %v4422_v47, %v4421_v41  ;;  %v4420_v25 = vclamps-f32 %v969_v23, 1.345 }
 0x990   :  { %4918 = vmatpush3.bf16.msra.mxu1 %v991_v24  ;;  %v990_v26 = vpack.c.bf16 %v4420_v25, %v4419_v3 }
 0x991   :  { %4919 = vmatprep.subr.bf16.mxu1 %v5334_v15 }
 0x992   :  { %4913 = vmatprep.mubr.bf16.mxu0 %v990_v26 }
 0x993   :  { %4914 = vmatmul.mubr.bf16.gmra.mxu0 %v991_v24 }
 0x994   :  { %4920 = vmatpush3.bf16.msra.mxu1 %v990_v26 }
 0x995   :  { %4921 = vmatprep.subr.bf16.mxu1 %v5334_v15 }
 0x998   :  { %4922 = vmatpush3.bf16.msra.mxu1 %v989_v6 }
 0x999   :  { %4923 = vmatprep.subr.bf16.mxu1 %v5334_v15 }
 0x99c   :  { %4924 = vmatpush3.bf16.msra.mxu1 %v988_v4 }
 0xa4b   :  { %v4911_v28 = vpop.f32.mrf.mxu0 }
 0xa4c   :  { %v1067_v33 = vmul.f32 0.002, %v4911_v28 }
 0xa4d   :  { %v1026_v9 = vpop.f32.mrf.mxu0 }
 0xa4e   :  { %v1065_v58 = vmul.f32 0.002, %v1026_v9  ;;  %v5683_v61 = vadd.f32 %v1067_v33, %v1059_v36 }
 0xa4f   :  { %v4912_v59 = vpop.f32.mrf.mxu0 }
 0xa50   :  { %v5680_v38 = vadd.f32 %v1065_v58, %v1057_v55  ;;  %v1068_v43 = vmul.f32 0.002, %v4912_v59 }
 0xa51   :  { %v1029_v44 = vpop.f32.mrf.mxu0 }
 0xa52   :  { %v5685_v45 = vadd.f32 %v1068_v43, %v1060_v39  ;;  %v1066_v0 = vmul.f32 0.002, %v1029_v44  ;;  %1085 = vxpose.xlu1.b32.start [1/8] (short) (narrow) %v5680_v38, 16 }
 0xa53   :  { %v4915_v60 = vpop.f32.mrf.mxu0 }
 0xa54   :  { %v1082_v7 = vpack.c.bf16 %v5685_v45, %v5683_v61  ;;  %v5691_v2 = vadd.f32 %v1066_v0, %v1058_v48  ;;  %v1071_v16 = vmul.f32 0.002, %v4915_v60 }
 0xa55   :  { %v1042_v11 = vpop.f32.mrf.mxu0 }
 0xa56   :  { %1086 = vxpose.xlu1.b32.cont [2/8] (short) (narrow) %v5691_v2, 16  ;;  %v1081_v5 = vpack.c.bf16 %v5691_v2, %v5680_v38  ;;  %v1069_v40 = vmul.f32 0.002, %v1042_v11  ;;  %v5700_v57 = vadd.f32 %v1071_v16, %v1063_v18 }
 0xa57   :  { %v4916_v50 = vpop.f32.mrf.mxu0 }
 0xa58   :  { %v1072_v52 = vmul.f32 0.002, %v4916_v50  ;;  %4931 = vmatprep.mubr.msk.bf16.mxu0 %vm39_vm0, %v1081_v5  ;;  %v5706_v30 = vadd.f32 %v1069_v40, %v1061_v53 }
 0xa59   :  { %v1045_v56 = vpop.f32.mrf.mxu0 }
 0xa5a   :  { %v5702_v12 = vadd.f32 %v1072_v52, %v1064_v51  ;;  %v1070_v13 = vmul.f32 0.002, %v1045_v56  ;;  %1087 = vxpose.xlu1.b32.cont [3/8] (short) (narrow) %v5683_v61, 16  ;;  %v1341_v52 = vmul.f32 0.9998, %v5683_v61 }
 0xa5b   :  { %v1342_v56 = vmul.f32 0.9998, %v5685_v45 }
 0xa5c   :  { %v1084_v8 = vpack.c.bf16 %v5702_v12, %v5700_v57  ;;  %v5710_v32 = vadd.f32 %v1070_v13, %v1062_v29 }
 0xa5e   :  { %1088 = vxpose.xlu1.b32.cont [4/8] (short) (narrow) %v5685_v45, 16  ;;  %v1083_v54 = vpack.c.bf16 %v5710_v32, %v5706_v30 }
 0xa62   :  { %1089 = vxpose.xlu1.b32.cont [5/8] (short) (narrow) %v5706_v30, 16 }
 0xa66   :  { %1090 = vxpose.xlu1.b32.cont [6/8] (short) (narrow) %v5710_v32, 16 }
 0xa6a   :  { %1091 = vxpose.xlu1.b32.cont [7/8] (short) (narrow) %v5700_v57, 16 }
 0xa6e   :  { %1092 = vxpose.xlu1.b32.end [8/8] (short) (narrow) %v5702_v12, 16 }
 0xace   :  { %v1101_v34 = vpop.trf.xlu1 }
 0xad2   :  { %v1102_v62 = vpop.trf.xlu1 }
 0xad3   :  { %v1117_v63 = vpack.c.bf16 %v1102_v62, %v1101_v34  ;;  %v1340_v34 = vmul.f32 0.9998, %v5691_v2 }
 0xad5   :  { %4926 = vmatmul.mubr.msk.bf16.vlgmr.msra.gmra.mxu1 %vm271_vm2, %v1117_v63 }
 0xb95   :  { %v1155_v10 = vpop.f32.mrf.mxu1 }
 0xb96   :  { %v1164_v6 = vmul.f32 0.002, %v1155_v10 }
 0xb97   :  { %v4927_v4 = vpop.f32.mrf.mxu1 }
 0xb98   :  { %v5722_v47 = vadd.f32 %v1164_v6, %v1162_v14  ;;  %v1345_v6 = vmul.f32 0.9998, %v5700_v57  ;;  %v1346_v14 = vmul.f32 0.9998, %v5702_v12 }
 0xb99   :  { %v1158_v35 = vpop.f32.mrf.mxu1 }
 0xb9a   :  { %v1165_v46 = vmul.f32 0.002, %v1158_v35 }
 0xb9b   :  { %v4928_v41 = vpop.f32.mrf.mxu1 }
 0xb9c   :  { %v5724_v23 = vadd.f32 %v1165_v46, %v1163_v21  ;;  %v1343_v46 = vmul.f32 0.9998, %v5706_v30 }
 0xb9e   :  { %v1168_v3 = vpack.c.bf16 %v5724_v23, %v5722_v47 }
 0xba0   :  { %4929 = vmatprep.subr.bf16.mxu0 %v1168_v3  ;;  %4939 = vmatprep.subr.bf16.mxu1 %v1168_v3 }
 0xba1   :  { %4930 = vmatpush3.bf16.msra.mxu0 %v1168_v3  ;;  %4940 = vmatpush3.bf16.xpose.msra.mxu1 %v1168_v3 }
 0xba2   :  { %4949 = vmatprep.subr.bf16.mxu0 %v5334_v15 }
 0xba4   :  { %4932 = vmatmul.mubr.msk.bf16.vlgmr.msra.gmra.mxu0 %vm39_vm0, %v1082_v7 }
 0xba5   :  { %4935 = vmatprep.mubr.msk.bf16.mxu0 %vm39_vm0, %v1083_v54 }
 0xbac   :  { %4936 = vmatmul.mubr.msk.bf16.gmra.mxu0 %vm39_vm0, %v1084_v8 }
 0xbad   :  { %4957 = vmatprep.mubr.msk.bf16.mxu0 %vm5335_vm1, %v5334_v15 }
 0xc64   :  { %v4933_v1 = vpop.f32.mrf.mxu0 }
 0xc65   :  { %v1248_v28 = vsub.f32 %v5437_v20, %v4933_v1 }
 0xc66   :  { %v1215_v49 = vpop.f32.mrf.mxu0 }
 0xc67   :  { %v1246_v25 = vsub.f32 %v5427_v17, %v1215_v49  ;;  %v4430_v39 = vclamps-f32 %v1248_v28, 1.345  ;;  %v1344_v49 = vmul.f32 0.9998, %v5710_v32 }
 0xc68   :  { %v4934_v24 = vpop.f32.mrf.mxu0 }
 0xc69   :  { %v1249_v26 = vsub.f32 %v5432_v19, %v4934_v24  ;;  %v4428_v59 = vclamps-f32 %v1246_v25, 1.345 }
 0xc6a   :  { %v1218_v9 = vpop.f32.mrf.mxu0 }
 0xc6b   :  { %v1247_v33 = vsub.f32 %v5442_v22, %v1218_v9  ;;  %v4431_v55 = vclamps-f32 %v1249_v26, 1.345 }
 0xc6c   :  { %v4937_v58 = vpop.f32.mrf.mxu0 }
 0xc6d   :  { %v4429_v36 = vclamps-f32 %v1247_v33, 1.345  ;;  %v1252_v48 = vsub.f32 %v5450_v27, %v4937_v58  ;;  %v1271_v0 = vpack.c.bf16 %v4431_v55, %v4430_v39 }
 0xc6e   :  { %v1231_v43 = vpop.f32.mrf.mxu0 }
 0xc6f   :  { %v1270_v44 = vpack.c.bf16 %v4429_v36, %v4428_v59  ;;  %v1250_v17 = vsub.f32 %v5456_v31, %v1231_v43  ;;  %v4434_v7 = vclamps-f32 %v1252_v48, 1.345  ;;  %v1444_v59 = vmul.f32 0.9998, %v5722_v47 }
 0xc70   :  { %v4938_v60 = vpop.f32.mrf.mxu0  ;;  %v1445_v36 = vmul.f32 0.9998, %v5724_v23 }
 0xc71   :  { %v1253_v19 = vsub.f32 %v5462_v37, %v4938_v60  ;;  %4941 = vmatprep.mubr.bf16.mxu1 %v1270_v44  ;;  %v4432_v16 = vclamps-f32 %v1250_v17, 1.345  ;;  %v5804_v17 = vld [vmem:[%s6513_s0] sm:$0xff] }
 0xc72   :  { %v1234_v20 = vpop.f32.mrf.mxu0  ;;  %4942 = vmatmul.mubr.bf16.vlgmr.msra.gmra.mxu1 %v1271_v0 }
 0xc73   :  { %v4435_v22 = vclamps-f32 %v1253_v19, 1.345  ;;  %v1251_v11 = vsub.f32 %v5468_v42, %v1234_v20  ;;  %v1339_v42 = vmul.f32 0.9998, %v5680_v38  ;;  %v5810_v20 = vld [vmem:[%s6513_s0 + $0x18] sm:$0xff] }
 0xc75   :  { %v1273_v5 = vpack.c.bf16 %v4435_v22, %v4434_v7  ;;  %v4433_v18 = vclamps-f32 %v1251_v11, 1.345  ;;  %v5816_v22 = vld [vmem:[%s6513_s0 + $0x10] sm:$0xff] }
 0xc77   :  { %v1272_v50 = vpack.c.bf16 %v4433_v18, %v4432_v16  ;;  %4950 = vmatpush3.bf16.msra.mxu0 %v1273_v5 }
 0xc78   :  { %4951 = vmatprep.subr.bf16.mxu0 %v5334_v15 }
 0xc79   :  { %4945 = vmatprep.mubr.bf16.mxu1 %v1272_v50 }
 0xc7a   :  { %4946 = vmatmul.mubr.bf16.gmra.mxu1 %v1273_v5  ;;  %v5822_v5 = vld [vmem:[%s6513_s0 + $0x8] sm:$0xff] }
 0xc7b   :  { %4952 = vmatpush3.bf16.msra.mxu0 %v1272_v50 }
 0xc7c   :  { %4953 = vmatprep.subr.bf16.mxu0 %v5334_v15 }
 0xc7f   :  { %4954 = vmatpush3.bf16.msra.mxu0 %v1271_v0 }
 0xc80   :  { %4955 = vmatprep.subr.bf16.mxu0 %v5334_v15 }
 0xc83   :  { %4956 = vmatpush3.bf16.msra.mxu0 %v1270_v44 }
 0xd32   :  { %v4943_v27 = vpop.f32.mrf.mxu1 }
 0xd33   :  { %v1349_v37 = vmul.f32 0.002, %v4943_v27 }
 0xd34   :  { %v1308_v31 = vpop.f32.mrf.mxu1 }
 0xd35   :  { %v1347_v40 = vmul.f32 0.002, %v1308_v31  ;;  %v5750_v8 = vadd.f32 %v1349_v37, %v1341_v52  ;;  %v5828_v52 = vld [vmem:[%s6513_s0 + $0x30] sm:$0xff] }
 0xd36   :  { %v4944_v51 = vpop.f32.mrf.mxu1 }
 0xd37   :  { %v5747_v53 = vadd.f32 %v1347_v40, %v1339_v42  ;;  %v1350_v29 = vmul.f32 0.002, %v4944_v51 }
 0xd38   :  { %v1311_v13 = vpop.f32.mrf.mxu1 }
 0xd39   :  { %v5752_v54 = vadd.f32 %v1350_v29, %v1342_v56  ;;  %v1348_v62 = vmul.f32 0.002, %v1311_v13  ;;  %1367 = vxpose.xlu0.b32.start [1/8] (short) (narrow) %v5747_v53, 16 }
 0xd3a   :  { %v4947_v38 = vpop.f32.mrf.mxu1 }
 0xd3b   :  { %v1364_v63 = vpack.c.bf16 %v5752_v54, %v5750_v8  ;;  %v5758_v61 = vadd.f32 %v1348_v62, %v1340_v34  ;;  %v1353_v4 = vmul.f32 0.002, %v4947_v38  ;;  %v5834_v34 = vld [vmem:[%s6513_s0 + $0x20] sm:$0xff]  ;;  %v5840_v38 = vld [vmem:[%s6513_s0 + $0x38] sm:$0xff] }
 0xd3c   :  { %v1324_v10 = vpop.f32.mrf.mxu1 }
 0xd3d   :  { %1368 = vxpose.xlu0.b32.cont [2/8] (short) (narrow) %v5758_v61, 16  ;;  %v1363_v45 = vpack.c.bf16 %v5758_v61, %v5747_v53  ;;  %v1351_v2 = vmul.f32 0.002, %v1324_v10  ;;  %v5767_v3 = vadd.f32 %v1353_v4, %v1345_v6  ;;  %v5846_v6 = vld [vmem:[%s6513_s0 + $0x28] sm:$0xff] }
 0xd3e   :  { %v4948_v35 = vpop.f32.mrf.mxu1 }
 0xd3f   :  { %v1354_v21 = vmul.f32 0.002, %v4948_v35  ;;  %4963 = vmatprep.mubr.msk.bf16.mxu1 %vm39_vm0, %v1363_v45  ;;  %v5773_v57 = vadd.f32 %v1351_v2, %v1343_v46 }
 0xd40   :  { %v1327_v41 = vpop.f32.mrf.mxu1 }
 0xd41   :  { %v5769_v1 = vadd.f32 %v1354_v21, %v1346_v14  ;;  %v1352_v24 = vmul.f32 0.002, %v1327_v41  ;;  %1369 = vxpose.xlu0.b32.cont [3/8] (short) (narrow) %v5750_v8, 16 }
 0xd43   :  { %v1366_v12 = vpack.c.bf16 %v5769_v1, %v5767_v3  ;;  %v5777_v25 = vadd.f32 %v1352_v24, %v1344_v49 }
 0xd45   :  { %v1365_v30 = vpack.c.bf16 %v5777_v25, %v5773_v57  ;;  %1370 = vxpose.xlu0.b32.cont [4/8] (short) (narrow) %v5752_v54, 16 }
 0xd49   :  { %1371 = vxpose.xlu0.b32.cont [5/8] (short) (narrow) %v5773_v57, 16 }
 0xd4d   :  { %1372 = vxpose.xlu0.b32.cont [6/8] (short) (narrow) %v5777_v25, 16 }
 0xd51   :  { %1373 = vxpose.xlu0.b32.cont [7/8] (short) (narrow) %v5767_v3, 16 }
 0xd55   :  { %1374 = vxpose.xlu0.b32.end [8/8] (short) (narrow) %v5769_v1, 16 }
 0xdb5   :  { %v1383_v32 = vpop.trf.xlu0 }
 0xdb9   :  { %v1384_v26 = vpop.trf.xlu0 }
 0xdba   :  { %v1399_v28 = vpack.c.bf16 %v1384_v26, %v1383_v32  ;;  %v1623_v26 = vmul.f32 0.9998, %v5750_v8 }
 0xdbc   :  { %4958 = vmatmul.mubr.msk.bf16.vlgmr.msra.gmra.mxu0 %vm271_vm2, %v1399_v28 }
 0xe7c   :  { %v1437_v9 = vpop.f32.mrf.mxu0 }
 0xe7d   :  { %v1446_v55 = vmul.f32 0.002, %v1437_v9  ;;  %v1624_v9 = vmul.f32 0.9998, %v5752_v54 }
 0xe7e   :  { %v4959_v33 = vpop.f32.mrf.mxu0 }
 0xe7f   :  { %v5789_v44 = vadd.f32 %v1446_v55, %v1444_v59 }
 0xe80   :  { %v1440_v58 = vpop.f32.mrf.mxu0 }
 0xe81   :  { %v1447_v39 = vmul.f32 0.002, %v1440_v58 }
 0xe82   :  { %v4960_v43 = vpop.f32.mrf.mxu0 }
 0xe83   :  { %v5791_v48 = vadd.f32 %v1447_v39, %v1445_v36  ;;  %v1622_v36 = vmul.f32 0.9998, %v5758_v61 }
 0xe85   :  { %v1450_v0 = vpack.c.bf16 %v5791_v48, %v5789_v44 }
 0xe87   :  { %4961 = vmatprep.subr.bf16.mxu1 %v1450_v0  ;;  %4971 = vmatprep.subr.bf16.mxu0 %v1450_v0 }
 0xe88   :  { %4962 = vmatpush3.bf16.msra.mxu1 %v1450_v0  ;;  %4972 = vmatpush3.bf16.xpose.msra.mxu0 %v1450_v0 }
 0xe89   :  { %4981 = vmatprep.subr.bf16.mxu1 %v5334_v15 }
 0xe8b   :  { %4964 = vmatmul.mubr.msk.bf16.vlgmr.msra.gmra.mxu1 %vm39_vm0, %v1364_v63 }
 0xe8c   :  { %4967 = vmatprep.mubr.msk.bf16.mxu1 %vm39_vm0, %v1365_v30 }
 0xe93   :  { %4968 = vmatmul.mubr.msk.bf16.gmra.mxu1 %vm39_vm0, %v1366_v12  ;;  %v1621_v12 = vmul.f32 0.9998, %v5747_v53 }
 0xe94   :  { %4989 = vmatprep.mubr.msk.bf16.mxu1 %vm5335_vm1, %v5334_v15 }
 0xf4b   :  { %v4965_v47 = vpop.f32.mrf.mxu1 }
 0xf4c   :  { %v1530_v11 = vsub.f32 %v5816_v22, %v4965_v47 }
 0xf4d   :  { %v1497_v23 = vpop.f32.mrf.mxu1 }
 0xf4e   :  { %v1528_v19 = vsub.f32 %v5804_v17, %v1497_v23  ;;  %v4443_v42 = vclamps-f32 %v1530_v11, 1.345  ;;  %v1627_v23 = vmul.f32 0.9998, %v5767_v3  ;;  %v1625_v11 = vmul.f32 0.9998, %v5773_v57 }
 0xf4f   :  { %v4966_v60 = vpop.f32.mrf.mxu1 }
 0xf50   :  { %v1531_v7 = vsub.f32 %v5810_v20, %v4966_v60  ;;  %v4441_v31 = vclamps-f32 %v1528_v19, 1.345  ;;  %v1628_v19 = vmul.f32 0.9998, %v5769_v1 }
 0xf51   :  { %v1500_v16 = vpop.f32.mrf.mxu1 }
 0xf52   :  { %v1529_v18 = vsub.f32 %v5822_v5, %v1500_v16  ;;  %v4444_v50 = vclamps-f32 %v1531_v7, 1.345 }
 0xf53   :  { %v4969_v27 = vpop.f32.mrf.mxu1 }
 0xf54   :  { %v4442_v37 = vclamps-f32 %v1529_v18, 1.345  ;;  %v1534_v56 = vsub.f32 %v5828_v52, %v4969_v27  ;;  %v1553_v29 = vpack.c.bf16 %v4444_v50, %v4443_v42  ;;  %v1626_v27 = vmul.f32 0.9998, %v5777_v25 }
 0xf55   :  { %v1513_v40 = vpop.f32.mrf.mxu1 }
 0xf56   :  { %v1552_v51 = vpack.c.bf16 %v4442_v37, %v4441_v31  ;;  %v1532_v62 = vsub.f32 %v5834_v34, %v1513_v40  ;;  %v4447_v4 = vclamps-f32 %v1534_v56, 1.345 }
 0xf57   :  { %v4970_v13 = vpop.f32.mrf.mxu1 }
 0xf58   :  { %v1535_v63 = vsub.f32 %v5840_v38, %v4970_v13  ;;  %4973 = vmatprep.mubr.bf16.mxu0 %v1552_v51  ;;  %v4445_v2 = vclamps-f32 %v1532_v62, 1.345  ;;  %v1726_v62 = vmul.f32 0.9998, %v5789_v44 }
 0xf59   :  { %v1516_v10 = vpop.f32.mrf.mxu1  ;;  %4974 = vmatmul.mubr.bf16.vlgmr.msra.gmra.mxu0 %v1553_v29 }
 0xf5a   :  { %v4448_v45 = vclamps-f32 %v1535_v63, 1.345  ;;  %v1533_v35 = vsub.f32 %v5846_v6, %v1516_v10  ;;  %v1727_v63 = vmul.f32 0.9998, %v5791_v48 }
 0xf5c   :  { %v1555_v14 = vpack.c.bf16 %v4448_v45, %v4447_v4  ;;  %v4446_v21 = vclamps-f32 %v1533_v35, 1.345 }
 0xf5e   :  { %v1554_v46 = vpack.c.bf16 %v4446_v21, %v4445_v2  ;;  %4982 = vmatpush3.bf16.msra.mxu1 %v1555_v14 }
 0xf5f   :  { %4983 = vmatprep.subr.bf16.mxu1 %v5334_v15 }
 0xf60   :  { %4977 = vmatprep.mubr.bf16.mxu0 %v1554_v46 }
 0xf61   :  { %4978 = vmatmul.mubr.bf16.gmra.mxu0 %v1555_v14 }
 0xf62   :  { %4984 = vmatpush3.bf16.msra.mxu1 %v1554_v46 }
 0xf63   :  { %4985 = vmatprep.subr.bf16.mxu1 %v5334_v15 }
 0xf66   :  { %4986 = vmatpush3.bf16.msra.mxu1 %v1553_v29 }
 0xf67   :  { %4987 = vmatprep.subr.bf16.mxu1 %v5334_v15 }
 0xf6a   :  { %4988 = vmatpush3.bf16.msra.mxu1 %v1552_v51 }
0x1019   :  { %v4975_v41 = vpop.f32.mrf.mxu0 }
0x101a   :  { %v1631_v24 = vmul.f32 0.002, %v4975_v41 }
0x101b   :  { %v1590_v49 = vpop.f32.mrf.mxu0 }
0x101c   :  { %v1629_v30 = vmul.f32 0.002, %v1590_v49  ;;  %v5857_v58 = vadd.f32 %v1631_v24, %v1623_v26 }
0x101d   :  { %v4976_v32 = vpop.f32.mrf.mxu0 }
0x101e   :  { %v5854_v28 = vadd.f32 %v1629_v30, %v1621_v12  ;;  %v1632_v33 = vmul.f32 0.002, %v4976_v32 }
0x101f   :  { %v1593_v55 = vpop.f32.mrf.mxu0 }
0x1020   :  { %v5859_v59 = vadd.f32 %v1632_v33, %v1624_v9  ;;  %v1630_v39 = vmul.f32 0.002, %v1593_v55  ;;  %1649 = vxpose.xlu1.b32.start [1/8] (short) (narrow) %v5854_v28, 16 }
0x1021   :  { %v4979_v53 = vpop.f32.mrf.mxu0 }
0x1022   :  { %v1646_v43 = vpack.c.bf16 %v5859_v59, %v5857_v58  ;;  %v5865_v8 = vadd.f32 %v1630_v39, %v1622_v36  ;;  %v1635_v47 = vmul.f32 0.002, %v4979_v53 }
0x1023   :  { %v1606_v0 = vpop.f32.mrf.mxu0 }
0x1024   :  { %v1645_v54 = vpack.c.bf16 %v5865_v8, %v5854_v28  ;;  %1650 = vxpose.xlu1.b32.cont [2/8] (short) (narrow) %v5865_v8, 16  ;;  %v1633_v61 = vmul.f32 0.002, %v1606_v0  ;;  %v5874_v18 = vadd.f32 %v1635_v47, %v1627_v23 }
0x1025   :  { %v4980_v60 = vpop.f32.mrf.mxu0 }
0x1026   :  { %v1636_v7 = vmul.f32 0.002, %v4980_v60  ;;  %4995 = vmatprep.mubr.msk.bf16.mxu0 %vm39_vm0, %v1645_v54  ;;  %v5880_v3 = vadd.f32 %v1633_v61, %v1625_v11 }
0x1027   :  { %v1609_v16 = vpop.f32.mrf.mxu0 }
0x1028   :  { %v5876_v50 = vadd.f32 %v1636_v7, %v1628_v19  ;;  %v1634_v31 = vmul.f32 0.002, %v1609_v16  ;;  %1651 = vxpose.xlu1.b32.cont [3/8] (short) (narrow) %v5857_v58, 16 }
0x102a   :  { %v1648_v1 = vpack.c.bf16 %v5876_v50, %v5874_v18  ;;  %v5884_v37 = vadd.f32 %v1634_v31, %v1626_v27 }
0x102c   :  { %v1647_v57 = vpack.c.bf16 %v5884_v37, %v5880_v3  ;;  %1652 = vxpose.xlu1.b32.cont [4/8] (short) (narrow) %v5859_v59, 16 }
0x1030   :  { %1653 = vxpose.xlu1.b32.cont [5/8] (short) (narrow) %v5880_v3, 16 }
0x1034   :  { %1654 = vxpose.xlu1.b32.cont [6/8] (short) (narrow) %v5884_v37, 16 }
0x1038   :  { %1655 = vxpose.xlu1.b32.cont [7/8] (short) (narrow) %v5874_v18, 16 }
0x103c   :  { %1656 = vxpose.xlu1.b32.end [8/8] (short) (narrow) %v5876_v50, 16 }
0x109c   :  { %v1665_v25 = vpop.trf.xlu1 }
0x10a0   :  { %v1666_v42 = vpop.trf.xlu1 }
0x10a1   :  { %v1681_v40 = vpack.c.bf16 %v1666_v42, %v1665_v25  ;;  %v1905_v42 = vmul.f32 0.9998, %v5857_v58 }
0x10a3   :  { %4990 = vmatmul.mubr.msk.bf16.vlgmr.msra.gmra.mxu1 %vm271_vm2, %v1681_v40 }
0x1163   :  { %v1719_v51 = vpop.f32.mrf.mxu1 }
0x1164   :  { %v1728_v29 = vmul.f32 0.002, %v1719_v51  ;;  %v1906_v51 = vmul.f32 0.9998, %v5859_v59 }
0x1165   :  { %v4991_v56 = vpop.f32.mrf.mxu1 }
0x1166   :  { %v5896_v45 = vadd.f32 %v1728_v29, %v1726_v62 }
0x1167   :  { %v1722_v13 = vpop.f32.mrf.mxu1 }
0x1168   :  { %v1729_v10 = vmul.f32 0.002, %v1722_v13 }
0x1169   :  { %v4992_v4 = vpop.f32.mrf.mxu1 }
0x116a   :  { %v5898_v35 = vadd.f32 %v1729_v10, %v1727_v63  ;;  %v1904_v63 = vmul.f32 0.9998, %v5865_v8 }
0x116c   :  { %v1732_v2 = vpack.c.bf16 %v5898_v35, %v5896_v45 }
0x116e   :  { %4993 = vmatprep.subr.bf16.mxu0 %v1732_v2  ;;  %5003 = vmatprep.subr.bf16.mxu1 %v1732_v2 }
0x116f   :  { %4994 = vmatpush3.bf16.msra.mxu0 %v1732_v2  ;;  %5004 = vmatpush3.bf16.xpose.msra.mxu1 %v1732_v2 }
0x1170   :  { %5013 = vmatprep.subr.bf16.mxu0 %v5334_v15 }
0x1172   :  { %4996 = vmatmul.mubr.msk.bf16.vlgmr.msra.gmra.mxu0 %vm39_vm0, %v1646_v43 }
0x1173   :  { %4999 = vmatprep.mubr.msk.bf16.mxu0 %vm39_vm0, %v1647_v57 }
0x117a   :  { %5000 = vmatmul.mubr.msk.bf16.gmra.mxu0 %vm39_vm0, %v1648_v1  ;;  %v1903_v1 = vmul.f32 0.9998, %v5854_v28 }
0x117b   :  { %5021 = vmatprep.mubr.msk.bf16.mxu0 %vm5335_vm1, %v5334_v15 }
0x1232   :  { %v4997_v44 = vpop.f32.mrf.mxu0 }
0x1233   :  { %v1812_v41 = vsub.f32 %v5816_v22, %v4997_v44 }
0x1234   :  { %v1779_v48 = vpop.f32.mrf.mxu0 }
0x1235   :  { %v1810_v21 = vsub.f32 %v5804_v17, %v1779_v48  ;;  %v4456_v9 = vclamps-f32 %v1812_v41, 1.345  ;;  %v1909_v48 = vmul.f32 0.9998, %v5874_v18  ;;  %v1907_v41 = vmul.f32 0.9998, %v5880_v3 }
0x1236   :  { %v4998_v14 = vpop.f32.mrf.mxu0 }
0x1237   :  { %v1813_v46 = vsub.f32 %v5810_v20, %v4998_v14  ;;  %v4454_v32 = vclamps-f32 %v1810_v21, 1.345  ;;  %v1910_v21 = vmul.f32 0.9998, %v5876_v50 }
0x1238   :  { %v1782_v49 = vpop.f32.mrf.mxu0 }
0x1239   :  { %v1811_v24 = vsub.f32 %v5822_v5, %v1782_v49  ;;  %v4457_v12 = vclamps-f32 %v1813_v46, 1.345 }
0x123a   :  { %v5001_v30 = vpop.f32.mrf.mxu0 }
0x123b   :  { %v4455_v26 = vclamps-f32 %v1811_v24, 1.345  ;;  %v1816_v36 = vsub.f32 %v5828_v52, %v5001_v30  ;;  %v1835_v39 = vpack.c.bf16 %v4457_v12, %v4456_v9  ;;  %v1908_v30 = vmul.f32 0.9998, %v5884_v37 }
0x123c   :  { %v1795_v33 = vpop.f32.mrf.mxu0 }
0x123d   :  { %v1834_v55 = vpack.c.bf16 %v4455_v26, %v4454_v32  ;;  %v1814_v43 = vsub.f32 %v5834_v34, %v1795_v33  ;;  %v4460_v47 = vclamps-f32 %v1816_v36, 1.345 }
0x123e   :  { %v5002_v53 = vpop.f32.mrf.mxu0 }
0x123f   :  { %v1817_v0 = vsub.f32 %v5840_v38, %v5002_v53  ;;  %5005 = vmatprep.mubr.bf16.mxu1 %v1834_v55  ;;  %v4458_v61 = vclamps-f32 %v1814_v43, 1.345  ;;  %v2008_v43 = vmul.f32 0.9998, %v5896_v45 }
0x1240   :  { %v1798_v54 = vpop.f32.mrf.mxu0  ;;  %5006 = vmatmul.mubr.bf16.vlgmr.msra.gmra.mxu1 %v1835_v39 }
0x1241   :  { %v4461_v23 = vclamps-f32 %v1817_v0, 1.345  ;;  %v1815_v60 = vsub.f32 %v5846_v6, %v1798_v54  ;;  %v2009_v0 = vmul.f32 0.9998, %v5898_v35 }
0x1243   :  { %v1837_v19 = vpack.c.bf16 %v4461_v23, %v4460_v47  ;;  %v4459_v7 = vclamps-f32 %v1815_v60, 1.345 }
0x1245   :  { %v1836_v11 = vpack.c.bf16 %v4459_v7, %v4458_v61  ;;  %5014 = vmatpush3.bf16.msra.mxu0 %v1837_v19 }
0x1246   :  { %5015 = vmatprep.subr.bf16.mxu0 %v5334_v15 }
0x1247   :  { %5009 = vmatprep.mubr.bf16.mxu1 %v1836_v11 }
0x1248   :  { %5010 = vmatmul.mubr.bf16.gmra.mxu1 %v1837_v19 }
0x1249   :  { %5016 = vmatpush3.bf16.msra.mxu0 %v1836_v11 }
0x124a   :  { %5017 = vmatprep.subr.bf16.mxu0 %v5334_v15 }
0x124d   :  { %5018 = vmatpush3.bf16.msra.mxu0 %v1835_v39 }
0x124e   :  { %5019 = vmatprep.subr.bf16.mxu0 %v5334_v15 }
0x1251   :  { %5020 = vmatpush3.bf16.msra.mxu0 %v1834_v55 }
0x1300   :  { %v5007_v16 = vpop.f32.mrf.mxu1 }
0x1301   :  { %v1913_v31 = vmul.f32 0.002, %v5007_v16 }
0x1302   :  { %v1872_v27 = vpop.f32.mrf.mxu1 }
0x1303   :  { %v1911_v57 = vmul.f32 0.002, %v1872_v27  ;;  %v5924_v13 = vadd.f32 %v1913_v31, %v1905_v42 }
0x1304   :  { %v5008_v25 = vpop.f32.mrf.mxu1 }
0x1305   :  { %v5921_v40 = vadd.f32 %v1911_v57, %v1903_v1  ;;  %v1914_v56 = vmul.f32 0.002, %v5008_v25 }
0x1306   :  { %v1875_v29 = vpop.f32.mrf.mxu1 }
0x1307   :  { %v5926_v62 = vadd.f32 %v1914_v56, %v1906_v51  ;;  %v1912_v10 = vmul.f32 0.002, %v1875_v29  ;;  %1931 = vxpose.xlu0.b32.start [1/8] (short) (narrow) %v5921_v40, 16 }
0x1308   :  { %v5011_v28 = vpop.f32.mrf.mxu1 }
0x1309   :  { %v1928_v4 = vpack.c.bf16 %v5926_v62, %v5924_v13  ;;  %v5932_v58 = vadd.f32 %v1912_v10, %v1904_v63  ;;  %v1917_v44 = vmul.f32 0.002, %v5011_v28 }
0x130a   :  { %v1888_v2 = vpop.f32.mrf.mxu1 }
0x130b   :  { %v1927_v59 = vpack.c.bf16 %v5932_v58, %v5921_v40  ;;  %1932 = vxpose.xlu0.b32.cont [2/8] (short) (narrow) %v5932_v58, 16  ;;  %v1915_v8 = vmul.f32 0.002, %v1888_v2  ;;  %v5941_v24 = vadd.f32 %v1917_v44, %v1909_v48 }
0x130c   :  { %v5012_v14 = vpop.f32.mrf.mxu1 }
0x130d   :  { %v1918_v46 = vmul.f32 0.002, %v5012_v14  ;;  %5027 = vmatprep.mubr.msk.bf16.mxu1 %vm39_vm0, %v1927_v59  ;;  %v5947_v18 = vadd.f32 %v1915_v8, %v1907_v41 }
0x130e   :  { %v1891_v49 = vpop.f32.mrf.mxu1 }
0x130f   :  { %v5943_v12 = vadd.f32 %v1918_v46, %v1910_v21  ;;  %v1916_v32 = vmul.f32 0.002, %v1891_v49  ;;  %1933 = vxpose.xlu0.b32.cont [3/8] (short) (narrow) %v5924_v13, 16 }
0x1311   :  { %v1930_v50 = vpack.c.bf16 %v5943_v12, %v5941_v24  ;;  %v5951_v26 = vadd.f32 %v1916_v32, %v1908_v30 }
0x1313   :  { %v1929_v3 = vpack.c.bf16 %v5951_v26, %v5947_v18  ;;  %1934 = vxpose.xlu0.b32.cont [4/8] (short) (narrow) %v5926_v62, 16 }
0x1317   :  { %1935 = vxpose.xlu0.b32.cont [5/8] (short) (narrow) %v5947_v18, 16 }
0x131b   :  { %1936 = vxpose.xlu0.b32.cont [6/8] (short) (narrow) %v5951_v26, 16 }
0x131f   :  { %1937 = vxpose.xlu0.b32.cont [7/8] (short) (narrow) %v5941_v24, 16 }
0x1323   :  { %1938 = vxpose.xlu0.b32.end [8/8] (short) (narrow) %v5943_v12, 16 }
0x1383   :  { %v1947_v37 = vpop.trf.xlu0 }
0x1387   :  { %v1948_v9 = vpop.trf.xlu0 }
0x1388   :  { %v1963_v33 = vpack.c.bf16 %v1948_v9, %v1947_v37  ;;  %v2187_v9 = vmul.f32 0.9998, %v5924_v13 }
0x138a   :  { %5022 = vmatmul.mubr.msk.bf16.vlgmr.msra.gmra.mxu0 %vm271_vm2, %v1963_v33 }
0x144a   :  { %v2001_v55 = vpop.f32.mrf.mxu0 }
0x144b   :  { %v2010_v39 = vmul.f32 0.002, %v2001_v55  ;;  %v2188_v55 = vmul.f32 0.9998, %v5926_v62 }
0x144c   :  { %v5023_v36 = vpop.f32.mrf.mxu0 }
0x144d   :  { %v5963_v23 = vadd.f32 %v2010_v39, %v2008_v43 }
0x144e   :  { %v2004_v53 = vpop.f32.mrf.mxu0 }
0x144f   :  { %v2011_v54 = vmul.f32 0.002, %v2004_v53 }
0x1450   :  { %v5024_v47 = vpop.f32.mrf.mxu0 }
0x1451   :  { %v5965_v60 = vadd.f32 %v2011_v54, %v2009_v0  ;;  %v2186_v0 = vmul.f32 0.9998, %v5932_v58 }
0x1453   :  { %v2014_v61 = vpack.c.bf16 %v5965_v60, %v5963_v23 }
0x1455   :  { %5025 = vmatprep.subr.bf16.mxu1 %v2014_v61  ;;  %5035 = vmatprep.subr.bf16.mxu0 %v2014_v61 }
0x1456   :  { %5026 = vmatpush3.bf16.msra.mxu1 %v2014_v61  ;;  %5036 = vmatpush3.bf16.xpose.msra.mxu0 %v2014_v61 }
0x1457   :  { %5045 = vmatprep.subr.bf16.mxu1 %v5334_v15 }
0x1459   :  { %5028 = vmatmul.mubr.msk.bf16.vlgmr.msra.gmra.mxu1 %vm39_vm0, %v1928_v4 }
0x145a   :  { %5031 = vmatprep.mubr.msk.bf16.mxu1 %vm39_vm0, %v1929_v3 }
0x1461   :  { %5032 = vmatmul.mubr.msk.bf16.gmra.mxu1 %vm39_vm0, %v1930_v50  ;;  %v2185_v50 = vmul.f32 0.9998, %v5921_v40 }
0x1462   :  { %5053 = vmatprep.mubr.msk.bf16.mxu1 %vm5335_vm1, %v5334_v15 }
0x1519   :  { %v5029_v45 = vpop.f32.mrf.mxu1 }
0x151a   :  { %v2094_v16 = vsub.f32 %v5816_v22, %v5029_v45 }
0x151b   :  { %v2061_v35 = vpop.f32.mrf.mxu1 }
0x151c   :  { %v2092_v7 = vsub.f32 %v5804_v17, %v2061_v35  ;;  %v4469_v51 = vclamps-f32 %v2094_v16, 1.345  ;;  %v2191_v35 = vmul.f32 0.9998, %v5941_v24  ;;  %v2189_v16 = vmul.f32 0.9998, %v5947_v18 }
0x151d   :  { %v5030_v19 = vpop.f32.mrf.mxu1 }
0x151e   :  { %v2095_v11 = vsub.f32 %v5810_v20, %v5030_v19  ;;  %v4467_v25 = vclamps-f32 %v2092_v7, 1.345  ;;  %v2192_v7 = vmul.f32 0.9998, %v5943_v12 }
0x151f   :  { %v2064_v27 = vpop.f32.mrf.mxu1 }
0x1520   :  { %v2093_v31 = vsub.f32 %v5822_v5, %v2064_v27  ;;  %v4470_v1 = vclamps-f32 %v2095_v11, 1.345 }
0x1521   :  { %v5033_v57 = vpop.f32.mrf.mxu1 }
0x1522   :  { %v4468_v42 = vclamps-f32 %v2093_v31, 1.345  ;;  %v2098_v63 = vsub.f32 %v5828_v52, %v5033_v57  ;;  %v2117_v10 = vpack.c.bf16 %v4470_v1, %v4469_v51  ;;  %v2190_v57 = vmul.f32 0.9998, %v5951_v26 }
0x1523   :  { %v2077_v56 = vpop.f32.mrf.mxu1 }
0x1524   :  { %v2116_v29 = vpack.c.bf16 %v4468_v42, %v4467_v25  ;;  %v2096_v4 = vsub.f32 %v5834_v34, %v2077_v56  ;;  %v4473_v44 = vclamps-f32 %v2098_v63, 1.345 }
0x1525   :  { %v5034_v28 = vpop.f32.mrf.mxu1 }
0x1526   :  { %v2099_v2 = vsub.f32 %v5840_v38, %v5034_v28  ;;  %5037 = vmatprep.mubr.bf16.mxu0 %v2116_v29  ;;  %v4471_v8 = vclamps-f32 %v2096_v4, 1.345  ;;  %v2290_v4 = vmul.f32 0.9998, %v5963_v23 }
0x1527   :  { %v2080_v59 = vpop.f32.mrf.mxu1  ;;  %5038 = vmatmul.mubr.bf16.vlgmr.msra.gmra.mxu0 %v2117_v10 }
0x1528   :  { %v4474_v48 = vclamps-f32 %v2099_v2, 1.345  ;;  %v2097_v14 = vsub.f32 %v5846_v6, %v2080_v59  ;;  %v2291_v2 = vmul.f32 0.9998, %v5965_v60 }
0x152a   :  { %v2119_v21 = vpack.c.bf16 %v4474_v48, %v4473_v44  ;;  %v4472_v46 = vclamps-f32 %v2097_v14, 1.345 }
0x152c   :  { %v2118_v41 = vpack.c.bf16 %v4472_v46, %v4471_v8  ;;  %5046 = vmatpush3.bf16.msra.mxu1 %v2119_v21 }
0x152d   :  { %5047 = vmatprep.subr.bf16.mxu1 %v5334_v15 }
0x152e   :  { %5041 = vmatprep.mubr.bf16.mxu0 %v2118_v41 }
0x152f   :  { %5042 = vmatmul.mubr.bf16.gmra.mxu0 %v2119_v21 }
0x1530   :  { %5048 = vmatpush3.bf16.msra.mxu1 %v2118_v41 }
0x1531   :  { %5049 = vmatprep.subr.bf16.mxu1 %v5334_v15 }
0x1534   :  { %5050 = vmatpush3.bf16.msra.mxu1 %v2117_v10 }
0x1535   :  { %5051 = vmatprep.subr.bf16.mxu1 %v5334_v15 }
0x1538   :  { %5052 = vmatpush3.bf16.msra.mxu1 %v2116_v29 }
0x15e7   :  { %v5039_v49 = vpop.f32.mrf.mxu0 }
0x15e8   :  { %v2195_v32 = vmul.f32 0.002, %v5039_v49 }
0x15e9   :  { %v2154_v30 = vpop.f32.mrf.mxu0 }
0x15ea   :  { %v2193_v3 = vmul.f32 0.002, %v2154_v30  ;;  %v5991_v53 = vadd.f32 %v2195_v32, %v2187_v9 }
0x15eb   :  { %v5040_v37 = vpop.f32.mrf.mxu0 }
0x15ec   :  { %v5988_v33 = vadd.f32 %v2193_v3, %v2185_v50  ;;  %v2196_v36 = vmul.f32 0.002, %v5040_v37 }
0x15ed   :  { %v2157_v39 = vpop.f32.mrf.mxu0 }
0x15ee   :  { %v5993_v43 = vadd.f32 %v2196_v36, %v2188_v55  ;;  %v2194_v54 = vmul.f32 0.002, %v2157_v39  ;;  %2213 = vxpose.xlu1.b32.start [1/8] (short) (narrow) %v5988_v33, 16 }
0x15ef   :  { %v5043_v40 = vpop.f32.mrf.mxu0 }
0x15f0   :  { %v2210_v47 = vpack.c.bf16 %v5993_v43, %v5991_v53  ;;  %v5999_v13 = vadd.f32 %v2194_v54, %v2186_v0  ;;  %v2199_v45 = vmul.f32 0.002, %v5043_v40 }
0x15f1   :  { %v2170_v61 = vpop.f32.mrf.mxu0 }
0x15f2   :  { %v2209_v62 = vpack.c.bf16 %v5999_v13, %v5988_v33  ;;  %2214 = vxpose.xlu1.b32.cont [2/8] (short) (narrow) %v5999_v13, 16  ;;  %v2197_v58 = vmul.f32 0.002, %v2170_v61  ;;  %v6008_v31 = vadd.f32 %v2199_v45, %v2191_v35 }
0x15f3   :  { %v5044_v19 = vpop.f32.mrf.mxu0 }
0x15f4   :  { %v2200_v11 = vmul.f32 0.002, %v5044_v19  ;;  %5059 = vmatprep.mubr.msk.bf16.mxu0 %vm39_vm0, %v2209_v62  ;;  %v6014_v24 = vadd.f32 %v2197_v58, %v2189_v16 }
0x15f5   :  { %v2173_v27 = vpop.f32.mrf.mxu0 }
0x15f6   :  { %v6010_v1 = vadd.f32 %v2200_v11, %v2192_v7  ;;  %v2198_v25 = vmul.f32 0.002, %v2173_v27  ;;  %2215 = vxpose.xlu1.b32.cont [3/8] (short) (narrow) %v5991_v53, 16 }
0x15f8   :  { %v2212_v12 = vpack.c.bf16 %v6010_v1, %v6008_v31  ;;  %v6018_v42 = vadd.f32 %v2198_v25, %v2190_v57 }
0x15fa   :  { %v2211_v18 = vpack.c.bf16 %v6018_v42, %v6014_v24  ;;  %2216 = vxpose.xlu1.b32.cont [4/8] (short) (narrow) %v5993_v43, 16 }
0x15fe   :  { %2217 = vxpose.xlu1.b32.cont [5/8] (short) (narrow) %v6014_v24, 16 }
0x1602   :  { %2218 = vxpose.xlu1.b32.cont [6/8] (short) (narrow) %v6018_v42, 16 }
0x1606   :  { %2219 = vxpose.xlu1.b32.cont [7/8] (short) (narrow) %v6008_v31, 16 }
0x160a   :  { %2220 = vxpose.xlu1.b32.end [8/8] (short) (narrow) %v6010_v1, 16 }
0x166a   :  { %v2229_v26 = vpop.trf.xlu1 }
0x166e   :  { %v2230_v51 = vpop.trf.xlu1 }
0x166f   :  { %v2245_v56 = vpack.c.bf16 %v2230_v51, %v2229_v26  ;;  %v2469_v51 = vmul.f32 0.9998, %v5991_v53 }
0x1671   :  { %5054 = vmatmul.mubr.msk.bf16.vlgmr.msra.gmra.mxu1 %vm271_vm2, %v2245_v56 }
0x1731   :  { %v2283_v29 = vpop.f32.mrf.mxu1 }
0x1732   :  { %v2292_v10 = vmul.f32 0.002, %v2283_v29  ;;  %v2470_v29 = vmul.f32 0.9998, %v5993_v43 }
0x1733   :  { %v5055_v63 = vpop.f32.mrf.mxu1 }
0x1734   :  { %v6030_v48 = vadd.f32 %v2292_v10, %v2290_v4 }
0x1735   :  { %v2286_v28 = vpop.f32.mrf.mxu1 }
0x1736   :  { %v2293_v59 = vmul.f32 0.002, %v2286_v28 }
0x1737   :  { %v5056_v44 = vpop.f32.mrf.mxu1 }
0x1738   :  { %v6032_v14 = vadd.f32 %v2293_v59, %v2291_v2  ;;  %v2468_v2 = vmul.f32 0.9998, %v5999_v13 }
0x173a   :  { %v2296_v8 = vpack.c.bf16 %v6032_v14, %v6030_v48 }
0x173c   :  { %5057 = vmatprep.subr.bf16.mxu0 %v2296_v8  ;;  %5067 = vmatprep.subr.bf16.mxu1 %v2296_v8 }
0x173d   :  { %5058 = vmatpush3.bf16.msra.mxu0 %v2296_v8  ;;  %5068 = vmatpush3.bf16.xpose.msra.mxu1 %v2296_v8 }
0x173e   :  { %5077 = vmatprep.subr.bf16.mxu0 %v5334_v15 }
0x1740   :  { %5060 = vmatmul.mubr.msk.bf16.vlgmr.msra.gmra.mxu0 %vm39_vm0, %v2210_v47 }
0x1741   :  { %5063 = vmatprep.mubr.msk.bf16.mxu0 %vm39_vm0, %v2211_v18 }
0x1748   :  { %5064 = vmatmul.mubr.msk.bf16.gmra.mxu0 %vm39_vm0, %v2212_v12  ;;  %v2467_v12 = vmul.f32 0.9998, %v5988_v33 }
0x1749   :  { %5085 = vmatprep.mubr.msk.bf16.mxu0 %vm5335_vm1, %v5334_v15 }
0x1800   :  { %v5061_v23 = vpop.f32.mrf.mxu0 }
0x1801   :  { %v2376_v49 = vsub.f32 %v5816_v22, %v5061_v23 }
0x1802   :  { %v2343_v60 = vpop.f32.mrf.mxu0 }
0x1803   :  { %v2374_v46 = vsub.f32 %v5804_v17, %v2343_v60  ;;  %v4482_v55 = vclamps-f32 %v2376_v49, 1.345  ;;  %v2473_v60 = vmul.f32 0.9998, %v6008_v31  ;;  %v2471_v49 = vmul.f32 0.9998, %v6014_v24 }
0x1804   :  { %v5062_v21 = vpop.f32.mrf.mxu0 }
0x1805   :  { %v2377_v41 = vsub.f32 %v5810_v20, %v5062_v21  ;;  %v4480_v37 = vclamps-f32 %v2374_v46, 1.345  ;;  %v2474_v46 = vmul.f32 0.9998, %v6010_v1 }
0x1806   :  { %v2346_v30 = vpop.f32.mrf.mxu0 }
0x1807   :  { %v2375_v32 = vsub.f32 %v5822_v5, %v2346_v30  ;;  %v4483_v50 = vclamps-f32 %v2377_v41, 1.345 }
0x1808   :  { %v5065_v3 = vpop.f32.mrf.mxu0 }
0x1809   :  { %v4481_v9 = vclamps-f32 %v2375_v32, 1.345  ;;  %v2380_v0 = vsub.f32 %v5828_v52, %v5065_v3  ;;  %v2399_v54 = vpack.c.bf16 %v4483_v50, %v4482_v55  ;;  %v2472_v3 = vmul.f32 0.9998, %v6018_v42 }
0x180a   :  { %v2359_v36 = vpop.f32.mrf.mxu0 }
0x180b   :  { %v2398_v39 = vpack.c.bf16 %v4481_v9, %v4480_v37  ;;  %v2378_v47 = vsub.f32 %v5834_v34, %v2359_v36  ;;  %v4486_v45 = vclamps-f32 %v2380_v0, 1.345 }
0x180c   :  { %v5066_v40 = vpop.f32.mrf.mxu0 }
0x180d   :  { %v2381_v61 = vsub.f32 %v5840_v38, %v5066_v40  ;;  %5069 = vmatprep.mubr.bf16.mxu1 %v2398_v39  ;;  %v4484_v58 = vclamps-f32 %v2378_v47, 1.345  ;;  %v2572_v47 = vmul.f32 0.9998, %v6030_v48 }
0x180e   :  { %v2362_v62 = vpop.f32.mrf.mxu0  ;;  %5070 = vmatmul.mubr.bf16.vlgmr.msra.gmra.mxu1 %v2399_v54 }
0x180f   :  { %v4487_v35 = vclamps-f32 %v2381_v61, 1.345  ;;  %v2379_v19 = vsub.f32 %v5846_v6, %v2362_v62  ;;  %v2573_v61 = vmul.f32 0.9998, %v6032_v14 }
0x1811   :  { %v2401_v7 = vpack.c.bf16 %v4487_v35, %v4486_v45  ;;  %v4485_v11 = vclamps-f32 %v2379_v19, 1.345 }
0x1813   :  { %v2400_v16 = vpack.c.bf16 %v4485_v11, %v4484_v58  ;;  %5078 = vmatpush3.bf16.msra.mxu0 %v2401_v7 }
0x1814   :  { %5079 = vmatprep.subr.bf16.mxu0 %v5334_v15 }
0x1815   :  { %5073 = vmatprep.mubr.bf16.mxu1 %v2400_v16 }
0x1816   :  { %5074 = vmatmul.mubr.bf16.gmra.mxu1 %v2401_v7 }
0x1817   :  { %5080 = vmatpush3.bf16.msra.mxu0 %v2400_v16 }
0x1818   :  { %5081 = vmatprep.subr.bf16.mxu0 %v5334_v15 }
0x181b   :  { %5082 = vmatpush3.bf16.msra.mxu0 %v2399_v54 }
0x181c   :  { %5083 = vmatprep.subr.bf16.mxu0 %v5334_v15 }
0x181f   :  { %5084 = vmatpush3.bf16.msra.mxu0 %v2398_v39 }
0x18ce   :  { %v5071_v27 = vpop.f32.mrf.mxu1 }
0x18cf   :  { %v2477_v25 = vmul.f32 0.002, %v5071_v27 }
0x18d0   :  { %v2436_v57 = vpop.f32.mrf.mxu1 }
0x18d1   :  { %v2475_v18 = vmul.f32 0.002, %v2436_v57  ;;  %v6058_v28 = vadd.f32 %v2477_v25, %v2469_v51 }
0x18d2   :  { %v5072_v26 = vpop.f32.mrf.mxu1 }
0x18d3   :  { %v6055_v56 = vadd.f32 %v2475_v18, %v2467_v12  ;;  %v2478_v63 = vmul.f32 0.002, %v5072_v26 }
0x18d4   :  { %v2439_v10 = vpop.f32.mrf.mxu1 }
0x18d5   :  { %v6060_v4 = vadd.f32 %v2478_v63, %v2470_v29  ;;  %v2476_v59 = vmul.f32 0.002, %v2439_v10  ;;  %2495 = vxpose.xlu0.b32.start [1/8] (short) (narrow) %v6055_v56, 16 }
0x18d6   :  { %v5075_v33 = vpop.f32.mrf.mxu1 }
0x18d7   :  { %v2492_v44 = vpack.c.bf16 %v6060_v4, %v6058_v28  ;;  %v6066_v53 = vadd.f32 %v2476_v59, %v2468_v2  ;;  %v2481_v23 = vmul.f32 0.002, %v5075_v33 }
0x18d8   :  { %v2452_v8 = vpop.f32.mrf.mxu1 }
0x18d9   :  { %v2491_v43 = vpack.c.bf16 %v6066_v53, %v6055_v56  ;;  %2496 = vxpose.xlu0.b32.cont [2/8] (short) (narrow) %v6066_v53, 16  ;;  %v2479_v13 = vmul.f32 0.002, %v2452_v8  ;;  %v6075_v32 = vadd.f32 %v2481_v23, %v2473_v60 }
0x18da   :  { %v5076_v21 = vpop.f32.mrf.mxu1 }
0x18db   :  { %v2482_v41 = vmul.f32 0.002, %v5076_v21  ;;  %5091 = vmatprep.mubr.msk.bf16.mxu1 %vm39_vm0, %v2491_v43  ;;  %v6081_v31 = vadd.f32 %v2479_v13, %v2471_v49 }
0x18dc   :  { %v2455_v30 = vpop.f32.mrf.mxu1 }
0x18dd   :  { %v6077_v50 = vadd.f32 %v2482_v41, %v2474_v46  ;;  %v2480_v37 = vmul.f32 0.002, %v2455_v30  ;;  %2497 = vxpose.xlu0.b32.cont [3/8] (short) (narrow) %v6058_v28, 16  ;;  %v2751_v41 = vmul.f32 0.9998, %v6058_v28 }
0x18de   :  { %v2752_v30 = vmul.f32 0.9998, %v6060_v4 }
0x18df   :  { %v2494_v1 = vpack.c.bf16 %v6077_v50, %v6075_v32  ;;  %v6085_v9 = vadd.f32 %v2480_v37, %v2472_v3 }
0x18e1   :  { %v2493_v24 = vpack.c.bf16 %v6085_v9, %v6081_v31  ;;  %2498 = vxpose.xlu0.b32.cont [4/8] (short) (narrow) %v6060_v4, 16 }
0x18e5   :  { %2499 = vxpose.xlu0.b32.cont [5/8] (short) (narrow) %v6081_v31, 16 }
0x18e9   :  { %2500 = vxpose.xlu0.b32.cont [6/8] (short) (narrow) %v6085_v9, 16 }
0x18ed   :  { %2501 = vxpose.xlu0.b32.cont [7/8] (short) (narrow) %v6075_v32, 16 }
0x18f1   :  { %2502 = vxpose.xlu0.b32.end [8/8] (short) (narrow) %v6077_v50, 16 }
0x1951   :  { %v2511_v42 = vpop.trf.xlu0 }
0x1955   :  { %v2512_v55 = vpop.trf.xlu0 }
0x1956   :  { %v2527_v36 = vpack.c.bf16 %v2512_v55, %v2511_v42  ;;  %v2750_v42 = vmul.f32 0.9998, %v6066_v53 }
0x1958   :  { %5086 = vmatmul.mubr.msk.bf16.vlgmr.msra.gmra.mxu0 %vm271_vm2, %v2527_v36 }
0x1a18   :  { %v2565_v39 = vpop.f32.mrf.mxu0 }
0x1a19   :  { %v2574_v54 = vmul.f32 0.002, %v2565_v39 }
0x1a1a   :  { %v5087_v0 = vpop.f32.mrf.mxu0 }
0x1a1b   :  { %v6097_v35 = vadd.f32 %v2574_v54, %v2572_v47  ;;  %v2755_v54 = vmul.f32 0.9998, %v6075_v32  ;;  %v2756_v47 = vmul.f32 0.9998, %v6077_v50 }
0x1a1c   :  { %v2568_v40 = vpop.f32.mrf.mxu0 }
0x1a1d   :  { %v2575_v62 = vmul.f32 0.002, %v2568_v40 }
0x1a1e   :  { %v5088_v45 = vpop.f32.mrf.mxu0 }
0x1a1f   :  { %v6099_v19 = vadd.f32 %v2575_v62, %v2573_v61  ;;  %v2753_v62 = vmul.f32 0.9998, %v6081_v31 }
0x1a21   :  { %v2578_v58 = vpack.c.bf16 %v6099_v19, %v6097_v35 }
0x1a23   :  { %5089 = vmatprep.subr.bf16.mxu1 %v2578_v58  ;;  %5099 = vmatprep.subr.bf16.mxu0 %v2578_v58 }
0x1a24   :  { %5090 = vmatpush3.bf16.msra.mxu1 %v2578_v58  ;;  %5100 = vmatpush3.bf16.xpose.msra.mxu0 %v2578_v58 }
0x1a25   :  { %5109 = vmatprep.subr.bf16.mxu1 %v5334_v15 }
0x1a27   :  { %5092 = vmatmul.mubr.msk.bf16.vlgmr.msra.gmra.mxu1 %vm39_vm0, %v2492_v44 }
0x1a28   :  { %5095 = vmatprep.mubr.msk.bf16.mxu1 %vm39_vm0, %v2493_v24 }
0x1a2f   :  { %5096 = vmatmul.mubr.msk.bf16.gmra.mxu1 %vm39_vm0, %v2494_v1 }
0x1a30   :  { %5117 = vmatprep.mubr.msk.bf16.mxu1 %vm5335_vm1, %v5334_v15 }
0x1ae7   :  { %v5093_v48 = vpop.f32.mrf.mxu1 }
0x1ae8   :  { %v2658_v27 = vsub.f32 %v5816_v22, %v5093_v48 }
0x1ae9   :  { %v2625_v14 = vpop.f32.mrf.mxu1 }
0x1aea   :  { %v2656_v11 = vsub.f32 %v5804_v17, %v2625_v14  ;;  %v4495_v29 = vclamps-f32 %v2658_v27, 1.345  ;;  %v2754_v14 = vmul.f32 0.9998, %v6085_v9 }
0x1aeb   :  { %v5094_v7 = vpop.f32.mrf.mxu1 }
0x1aec   :  { %v2659_v16 = vsub.f32 %v5810_v20, %v5094_v7  ;;  %v4493_v26 = vclamps-f32 %v2656_v11, 1.345 }
0x1aed   :  { %v2628_v57 = vpop.f32.mrf.mxu1 }
0x1aee   :  { %v2657_v25 = vsub.f32 %v5822_v5, %v2628_v57  ;;  %v4496_v12 = vclamps-f32 %v2659_v16, 1.345 }
0x1aef   :  { %v5097_v18 = vpop.f32.mrf.mxu1 }
0x1af0   :  { %v4494_v51 = vclamps-f32 %v2657_v25, 1.345  ;;  %v2662_v2 = vsub.f32 %v5828_v52, %v5097_v18  ;;  %v2681_v59 = vpack.c.bf16 %v4496_v12, %v4495_v29 }
0x1af1   :  { %v2641_v63 = vpop.f32.mrf.mxu1 }
0x1af2   :  { %v2680_v10 = vpack.c.bf16 %v4494_v51, %v4493_v26  ;;  %v2660_v17 = vsub.f32 %v5834_v34, %v2641_v63  ;;  %v4499_v44 = vclamps-f32 %v2662_v2, 1.345  ;;  %v2854_v26 = vmul.f32 0.9998, %v6097_v35 }
0x1af3   :  { %v5098_v33 = vpop.f32.mrf.mxu1  ;;  %v2855_v51 = vmul.f32 0.9998, %v6099_v19 }
0x1af4   :  { %v2663_v20 = vsub.f32 %v5840_v38, %v5098_v33  ;;  %5101 = vmatprep.mubr.bf16.mxu0 %v2680_v10  ;;  %v4497_v43 = vclamps-f32 %v2660_v17, 1.345  ;;  %v6179_v17 = vld [vmem:[%s6513_s0] sm:$0xff] }
0x1af5   :  { %v2644_v22 = vpop.f32.mrf.mxu1  ;;  %5102 = vmatmul.mubr.bf16.vlgmr.msra.gmra.mxu0 %v2681_v59 }
0x1af6   :  { %v4500_v5 = vclamps-f32 %v2663_v20, 1.345  ;;  %v2661_v8 = vsub.f32 %v5846_v6, %v2644_v22  ;;  %v2749_v6 = vmul.f32 0.9998, %v6055_v56  ;;  %v6185_v22 = vld [vmem:[%s6513_s0 + $0x18] sm:$0xff] }
0x1af8   :  { %v2683_v23 = vpack.c.bf16 %v4500_v5, %v4499_v44  ;;  %v4498_v60 = vclamps-f32 %v2661_v8, 1.345  ;;  %v6191_v5 = vld [vmem:[%s6513_s0 + $0x10] sm:$0xff] }
0x1afa   :  { %v2682_v21 = vpack.c.bf16 %v4498_v60, %v4497_v43  ;;  %5110 = vmatpush3.bf16.msra.mxu1 %v2683_v23 }
0x1afb   :  { %5111 = vmatprep.subr.bf16.mxu1 %v5334_v15 }
0x1afc   :  { %5105 = vmatprep.mubr.bf16.mxu0 %v2682_v21 }
0x1afd   :  { %5106 = vmatmul.mubr.bf16.gmra.mxu0 %v2683_v23  ;;  %v6197_v23 = vld [vmem:[%s6513_s0 + $0x8] sm:$0xff] }
0x1afe   :  { %5112 = vmatpush3.bf16.msra.mxu1 %v2682_v21 }
0x1aff   :  { %5113 = vmatprep.subr.bf16.mxu1 %v5334_v15 }
0x1b02   :  { %5114 = vmatpush3.bf16.msra.mxu1 %v2681_v59 }
0x1b03   :  { %5115 = vmatprep.subr.bf16.mxu1 %v5334_v15 }
0x1b06   :  { %5116 = vmatpush3.bf16.msra.mxu1 %v2680_v10 }
0x1bb5   :  { %v5103_v52 = vpop.f32.mrf.mxu0 }
0x1bb6   :  { %v2759_v38 = vmul.f32 0.002, %v5103_v52 }
0x1bb7   :  { %v2718_v34 = vpop.f32.mrf.mxu0 }
0x1bb8   :  { %v2757_v13 = vmul.f32 0.002, %v2718_v34  ;;  %v6125_v1 = vadd.f32 %v2759_v38, %v2751_v41  ;;  %v6203_v41 = vld [vmem:[%s6513_s0 + $0x30] sm:$0xff] }
0x1bb9   :  { %v5104_v46 = vpop.f32.mrf.mxu0 }
0x1bba   :  { %v6122_v49 = vadd.f32 %v2757_v13, %v2749_v6  ;;  %v2760_v3 = vmul.f32 0.002, %v5104_v46 }
0x1bbb   :  { %v2721_v37 = vpop.f32.mrf.mxu0 }
0x1bbc   :  { %v6127_v24 = vadd.f32 %v2760_v3, %v2752_v30  ;;  %v2758_v55 = vmul.f32 0.002, %v2721_v37  ;;  %2777 = vxpose.xlu1.b32.start [1/8] (short) (narrow) %v6122_v49, 16 }
0x1bbd   :  { %v5107_v56 = vpop.f32.mrf.mxu0 }
0x1bbe   :  { %v2774_v36 = vpack.c.bf16 %v6127_v24, %v6125_v1  ;;  %v6133_v28 = vadd.f32 %v2758_v55, %v2750_v42  ;;  %v2763_v0 = vmul.f32 0.002, %v5107_v56  ;;  %v6209_v42 = vld [vmem:[%s6513_s0 + $0x20] sm:$0xff]  ;;  %v6215_v56 = vld [vmem:[%s6513_s0 + $0x38] sm:$0xff] }
0x1bbf   :  { %v2734_v39 = vpop.f32.mrf.mxu0 }
0x1bc0   :  { %v2773_v4 = vpack.c.bf16 %v6133_v28, %v6122_v49  ;;  %2778 = vxpose.xlu1.b32.cont [2/8] (short) (narrow) %v6133_v28, 16  ;;  %v2761_v53 = vmul.f32 0.002, %v2734_v39  ;;  %v6142_v58 = vadd.f32 %v2763_v0, %v2755_v54  ;;  %v6221_v54 = vld [vmem:[%s6513_s0 + $0x28] sm:$0xff]  ;;  %s5336_s0 = smov [#allocation2]  }
0x1bc1   :  { %v5108_v40 = vpop.f32.mrf.mxu0  ;;  %s4361_s2 = sshll.u32 %s5336_s0, 4  ;;  %s4362_s2 = int_to_ptr.vmem [resolvable:$true] %s4361_s2 }
0x1bc2   :  { %v2764_v61 = vmul.f32 0.002, %v5108_v40  ;;  %5123 = vmatprep.mubr.msk.bf16.mxu0 %vm39_vm0, %v2773_v4  ;;  %v6148_v32 = vadd.f32 %v2761_v53, %v2753_v62  ;;  %s5312_s22 = scalar_lea.vmem %s4362_s2, 1024  ;;  %p5317_p1 = scmp.lt.s32.totalorder %s4362_s2, %s4362_s2 }
0x1bc3   :  { %v2737_v45 = vpop.f32.mrf.mxu0  ;;  %p5313_p0 = scmp.ne.s32.totalorder %s4362_s2, %s5312_s22  ;;  %p5318_p2 = scmp.lt.s32.totalorder %s5312_s22, %s5312_s22 }
0x1bc4   :  { %v6144_v48 = vadd.f32 %v2764_v61, %v2756_v47  ;;  %v2762_v7 = vmul.f32 0.002, %v2737_v45  ;;  %2779 = vxpose.xlu1.b32.cont [3/8] (short) (narrow) %v6125_v1, 16 }
0x1bc5   :  { %p5319_p3 = por %p5318_p2, %p5317_p1 }
0x1bc6   :  { %v2776_v50 = vpack.c.bf16 %v6144_v48, %v6142_v58  ;;  %v6152_v11 = vadd.f32 %v2762_v7, %v2754_v14 }
0x1bc7   :  { %p5320_p4 = pnand %p5319_p3, %p5313_p0 }
0x1bc8   :  { %v2775_v31 = vpack.c.bf16 %v6152_v11, %v6148_v32  ;;  %2780 = vxpose.xlu1.b32.cont [4/8] (short) (narrow) %v6127_v24, 16 }
0x1bcc   :  { %2781 = vxpose.xlu1.b32.cont [5/8] (short) (narrow) %v6148_v32, 16 }
0x1bd0   :  { %2782 = vxpose.xlu1.b32.cont [6/8] (short) (narrow) %v6152_v11, 16 }
0x1bd4   :  { %2783 = vxpose.xlu1.b32.cont [7/8] (short) (narrow) %v6142_v58, 16 }
0x1bd8   :  { %2784 = vxpose.xlu1.b32.end [8/8] (short) (narrow) %v6144_v48, 16 }
0x1c38   :  { %v2793_v9 = vpop.trf.xlu1 }
0x1c3c   :  { %v2794_v16 = vpop.trf.xlu1 }
0x1c3d   :  { %v2809_v27 = vpack.c.bf16 %v2794_v16, %v2793_v9  ;;  %v3033_v16 = vmul.f32 0.9998, %v6125_v1 }
0x1c3f   :  { %5118 = vmatmul.mubr.msk.bf16.vlgmr.msra.gmra.mxu1 %vm271_vm2, %v2809_v27 }
0x1cff   :  { %v2847_v57 = vpop.f32.mrf.mxu1 }
0x1d00   :  { %v2856_v12 = vmul.f32 0.002, %v2847_v57  ;;  %v3034_v57 = vmul.f32 0.9998, %v6127_v24 }
0x1d01   :  { %v5119_v25 = vpop.f32.mrf.mxu1 }
0x1d02   :  { %v6164_v10 = vadd.f32 %v2856_v12, %v2854_v26 }
0x1d03   :  { %v2850_v18 = vpop.f32.mrf.mxu1 }
0x1d04   :  { %v2857_v29 = vmul.f32 0.002, %v2850_v18 }
0x1d05   :  { %v5120_v63 = vpop.f32.mrf.mxu1 }
0x1d06   :  { %v6166_v2 = vadd.f32 %v2857_v29, %v2855_v51  ;;  %v3032_v51 = vmul.f32 0.9998, %v6133_v28 }
0x1d08   :  { %v2860_v59 = vpack.c.bf16 %v6166_v2, %v6164_v10 }
0x1d0a   :  { %5121 = vmatprep.subr.bf16.mxu0 %v2860_v59  ;;  %5131 = vmatprep.subr.bf16.mxu1 %v2860_v59 }
0x1d0b   :  { %5122 = vmatpush3.bf16.msra.mxu0 %v2860_v59  ;;  %5132 = vmatpush3.bf16.xpose.msra.mxu1 %v2860_v59 }
0x1d0c   :  { %5141 = vmatprep.subr.bf16.mxu0 %v5334_v15 }
0x1d0e   :  { %5124 = vmatmul.mubr.msk.bf16.vlgmr.msra.gmra.mxu0 %vm39_vm0, %v2774_v36 }
0x1d0f   :  { %5127 = vmatprep.mubr.msk.bf16.mxu0 %vm39_vm0, %v2775_v31 }
0x1d16   :  { %5128 = vmatmul.mubr.msk.bf16.gmra.mxu0 %vm39_vm0, %v2776_v50  ;;  %v3031_v50 = vmul.f32 0.9998, %v6122_v49 }
0x1d17   :  { %5149 = vmatprep.mubr.msk.bf16.mxu0 %vm5335_vm1, %v5334_v15 }
0x1dce   :  { %v5125_v35 = vpop.f32.mrf.mxu0 }
0x1dcf   :  { %v2940_v8 = vsub.f32 %v6191_v5, %v5125_v35 }
0x1dd0   :  { %v2907_v19 = vpop.f32.mrf.mxu0 }
0x1dd1   :  { %v2938_v20 = vsub.f32 %v6179_v17, %v2907_v19  ;;  %v4508_v6 = vclamps-f32 %v2940_v8, 1.345  ;;  %v3037_v19 = vmul.f32 0.9998, %v6142_v58  ;;  %v3035_v8 = vmul.f32 0.9998, %v6148_v32 }
0x1dd2   :  { %v5126_v33 = vpop.f32.mrf.mxu0 }
0x1dd3   :  { %v2941_v44 = vsub.f32 %v6185_v22, %v5126_v33  ;;  %v4506_v34 = vclamps-f32 %v2938_v20, 1.345  ;;  %v3038_v20 = vmul.f32 0.9998, %v6144_v48 }
0x1dd4   :  { %v2910_v43 = vpop.f32.mrf.mxu0 }
0x1dd5   :  { %v2939_v60 = vsub.f32 %v6197_v23, %v2910_v43  ;;  %v4509_v21 = vclamps-f32 %v2941_v44, 1.345 }
0x1dd6   :  { %v5129_v52 = vpop.f32.mrf.mxu0 }
0x1dd7   :  { %v4507_v38 = vclamps-f32 %v2939_v60, 1.345  ;;  %v2944_v30 = vsub.f32 %v6203_v41, %v5129_v52  ;;  %v2963_v3 = vpack.c.bf16 %v4509_v21, %v4508_v6  ;;  %v3036_v52 = vmul.f32 0.9998, %v6152_v11 }
0x1dd8   :  { %v2923_v13 = vpop.f32.mrf.mxu0 }
0x1dd9   :  { %v2962_v46 = vpack.c.bf16 %v4507_v38, %v4506_v34  ;;  %v2942_v55 = vsub.f32 %v6209_v42, %v2923_v13  ;;  %v4512_v4 = vclamps-f32 %v2944_v30, 1.345 }
0x1dda   :  { %v5130_v37 = vpop.f32.mrf.mxu0 }
0x1ddb   :  { %v2945_v36 = vsub.f32 %v6215_v56, %v5130_v37  ;;  %5133 = vmatprep.mubr.bf16.mxu1 %v2962_v46  ;;  %v4510_v53 = vclamps-f32 %v2942_v55, 1.345  ;;  %v3136_v55 = vmul.f32 0.9998, %v6164_v10 }
0x1ddc   :  { %v2926_v39 = vpop.f32.mrf.mxu0  ;;  %5134 = vmatmul.mubr.bf16.vlgmr.msra.gmra.mxu1 %v2963_v3 }
0x1ddd   :  { %v4513_v0 = vclamps-f32 %v2945_v36, 1.345  ;;  %v2943_v40 = vsub.f32 %v6221_v54, %v2926_v39  ;;  %v3137_v36 = vmul.f32 0.9998, %v6166_v2 }
0x1ddf   :  { %v2965_v47 = vpack.c.bf16 %v4513_v0, %v4512_v4  ;;  %v4511_v61 = vclamps-f32 %v2943_v40, 1.345 }
0x1de1   :  { %v2964_v62 = vpack.c.bf16 %v4511_v61, %v4510_v53  ;;  %5142 = vmatpush3.bf16.msra.mxu0 %v2965_v47 }
0x1de2   :  { %5143 = vmatprep.subr.bf16.mxu0 %v5334_v15 }
0x1de3   :  { %5137 = vmatprep.mubr.bf16.mxu1 %v2964_v62 }
0x1de4   :  { %5138 = vmatmul.mubr.bf16.gmra.mxu1 %v2965_v47 }
0x1de5   :  { %5144 = vmatpush3.bf16.msra.mxu0 %v2964_v62 }
0x1de6   :  { %5145 = vmatprep.subr.bf16.mxu0 %v5334_v15 }
0x1de9   :  { %5146 = vmatpush3.bf16.msra.mxu0 %v2963_v3 }
0x1dea   :  { %5147 = vmatprep.subr.bf16.mxu0 %v5334_v15 }
0x1ded   :  { %5148 = vmatpush3.bf16.msra.mxu0 %v2962_v46 }
0x1e9c   :  { %v5135_v45 = vpop.f32.mrf.mxu1 }
0x1e9d   :  { %v3041_v7 = vmul.f32 0.002, %v5135_v45 }
0x1e9e   :  { %v3000_v14 = vpop.f32.mrf.mxu1 }
0x1e9f   :  { %v3039_v31 = vmul.f32 0.002, %v3000_v14  ;;  %v6232_v18 = vadd.f32 %v3041_v7, %v3033_v16 }
0x1ea0   :  { %v5136_v9 = vpop.f32.mrf.mxu1 }
0x1ea1   :  { %v6229_v27 = vadd.f32 %v3039_v31, %v3031_v50  ;;  %v3042_v25 = vmul.f32 0.002, %v5136_v9 }
0x1ea2   :  { %v3003_v12 = vpop.f32.mrf.mxu1 }
0x1ea3   :  { %v6234_v26 = vadd.f32 %v3042_v25, %v3034_v57  ;;  %v3040_v29 = vmul.f32 0.002, %v3003_v12  ;;  %3059 = vxpose.xlu0.b32.start [1/8] (short) (narrow) %v6229_v27, 16 }
0x1ea4   :  { %v5139_v49 = vpop.f32.mrf.mxu1 }
0x1ea5   :  { %v3056_v63 = vpack.c.bf16 %v6234_v26, %v6232_v18  ;;  %v6240_v1 = vadd.f32 %v3040_v29, %v3032_v51  ;;  %v3045_v35 = vmul.f32 0.002, %v5139_v49 }
0x1ea6   :  { %v3016_v59 = vpop.f32.mrf.mxu1 }
0x1ea7   :  { %v3055_v24 = vpack.c.bf16 %v6240_v1, %v6229_v27  ;;  %3060 = vxpose.xlu0.b32.cont [2/8] (short) (narrow) %v6240_v1, 16  ;;  %v3043_v28 = vmul.f32 0.002, %v3016_v59  ;;  %v6249_v60 = vadd.f32 %v3045_v35, %v3037_v19 }
0x1ea8   :  { %v5140_v33 = vpop.f32.mrf.mxu1 }
0x1ea9   :  { %v3046_v44 = vmul.f32 0.002, %v5140_v33  ;;  %5155 = vmatprep.mubr.msk.bf16.mxu1 %vm39_vm0, %v3055_v24  ;;  %v6255_v58 = vadd.f32 %v3043_v28, %v3035_v8 }
0x1eaa   :  { %v3019_v43 = vpop.f32.mrf.mxu1 }
0x1eab   :  { %v6251_v21 = vadd.f32 %v3046_v44, %v3038_v20  ;;  %v3044_v34 = vmul.f32 0.002, %v3019_v43  ;;  %3061 = vxpose.xlu0.b32.cont [3/8] (short) (narrow) %v6232_v18, 16 }
0x1ead   :  { %v3058_v48 = vpack.c.bf16 %v6251_v21, %v6249_v60  ;;  %v6259_v38 = vadd.f32 %v3044_v34, %v3036_v52 }
0x1eaf   :  { %v3057_v32 = vpack.c.bf16 %v6259_v38, %v6255_v58  ;;  %3062 = vxpose.xlu0.b32.cont [4/8] (short) (narrow) %v6234_v26, 16 }
0x1eb3   :  { %3063 = vxpose.xlu0.b32.cont [5/8] (short) (narrow) %v6255_v58, 16 }
0x1eb7   :  { %3064 = vxpose.xlu0.b32.cont [6/8] (short) (narrow) %v6259_v38, 16 }
0x1ebb   :  { %3065 = vxpose.xlu0.b32.cont [7/8] (short) (narrow) %v6249_v60, 16 }
0x1ebf   :  { %3066 = vxpose.xlu0.b32.end [8/8] (short) (narrow) %v6251_v21, 16 }
0x1f1f   :  { %v3075_v11 = vpop.trf.xlu0 }
0x1f23   :  { %v3076_v6 = vpop.trf.xlu0 }
0x1f24   :  { %v3091_v13 = vpack.c.bf16 %v3076_v6, %v3075_v11  ;;  %v3315_v6 = vmul.f32 0.9998, %v6232_v18 }
0x1f26   :  { %5150 = vmatmul.mubr.msk.bf16.vlgmr.msra.gmra.mxu0 %vm271_vm2, %v3091_v13 }
0x1fe6   :  { %v3129_v46 = vpop.f32.mrf.mxu0 }
0x1fe7   :  { %v3138_v3 = vmul.f32 0.002, %v3129_v46  ;;  %v3316_v46 = vmul.f32 0.9998, %v6234_v26 }
0x1fe8   :  { %v5151_v30 = vpop.f32.mrf.mxu0 }
0x1fe9   :  { %v6271_v0 = vadd.f32 %v3138_v3, %v3136_v55 }
0x1fea   :  { %v3132_v37 = vpop.f32.mrf.mxu0 }
0x1feb   :  { %v3139_v39 = vmul.f32 0.002, %v3132_v37 }
0x1fec   :  { %v5152_v4 = vpop.f32.mrf.mxu0 }
0x1fed   :  { %v6273_v40 = vadd.f32 %v3139_v39, %v3137_v36  ;;  %v3314_v36 = vmul.f32 0.9998, %v6240_v1 }
0x1fef   :  { %v3142_v53 = vpack.c.bf16 %v6273_v40, %v6271_v0 }
0x1ff1   :  { %5153 = vmatprep.subr.bf16.mxu1 %v3142_v53  ;;  %5163 = vmatprep.subr.bf16.mxu0 %v3142_v53 }
0x1ff2   :  { %5154 = vmatpush3.bf16.msra.mxu1 %v3142_v53  ;;  %5164 = vmatpush3.bf16.xpose.msra.mxu0 %v3142_v53 }
0x1ff3   :  { %5173 = vmatprep.subr.bf16.mxu1 %v5334_v15 }
0x1ff5   :  { %5156 = vmatmul.mubr.msk.bf16.vlgmr.msra.gmra.mxu1 %vm39_vm0, %v3056_v63 }
0x1ff6   :  { %5159 = vmatprep.mubr.msk.bf16.mxu1 %vm39_vm0, %v3057_v32 }
0x1ffd   :  { %5160 = vmatmul.mubr.msk.bf16.gmra.mxu1 %vm39_vm0, %v3058_v48  ;;  %v3313_v48 = vmul.f32 0.9998, %v6229_v27 }
0x1ffe   :  { %5181 = vmatprep.mubr.msk.bf16.mxu1 %vm5335_vm1, %v5334_v15 }
0x20b5   :  { %v5157_v10 = vpop.f32.mrf.mxu1 }
0x20b6   :  { %v3222_v45 = vsub.f32 %v6191_v5, %v5157_v10 }
0x20b7   :  { %v3189_v2 = vpop.f32.mrf.mxu1 }
0x20b8   :  { %v3220_v61 = vsub.f32 %v6179_v17, %v3189_v2  ;;  %v4521_v57 = vclamps-f32 %v3222_v45, 1.345  ;;  %v3319_v2 = vmul.f32 0.9998, %v6249_v60  ;;  %v3317_v45 = vmul.f32 0.9998, %v6255_v58 }
0x20b9   :  { %v5158_v47 = vpop.f32.mrf.mxu1 }
0x20ba   :  { %v3223_v62 = vsub.f32 %v6185_v22, %v5158_v47  ;;  %v4519_v9 = vclamps-f32 %v3220_v61, 1.345  ;;  %v3320_v61 = vmul.f32 0.9998, %v6251_v21 }
0x20bb   :  { %v3192_v14 = vpop.f32.mrf.mxu1 }
0x20bc   :  { %v3221_v7 = vsub.f32 %v6197_v23, %v3192_v14  ;;  %v4522_v50 = vclamps-f32 %v3223_v62, 1.345 }
0x20bd   :  { %v5161_v31 = vpop.f32.mrf.mxu1 }
0x20be   :  { %v4520_v16 = vclamps-f32 %v3221_v7, 1.345  ;;  %v3226_v51 = vsub.f32 %v6203_v41, %v5161_v31  ;;  %v3245_v29 = vpack.c.bf16 %v4522_v50, %v4521_v57  ;;  %v3318_v31 = vmul.f32 0.9998, %v6259_v38 }
0x20bf   :  { %v3205_v25 = vpop.f32.mrf.mxu1 }
0x20c0   :  { %v3244_v12 = vpack.c.bf16 %v4520_v16, %v4519_v9  ;;  %v3224_v63 = vsub.f32 %v6209_v42, %v3205_v25  ;;  %v4525_v35 = vclamps-f32 %v3226_v51, 1.345 }
0x20c1   :  { %v5162_v49 = vpop.f32.mrf.mxu1 }
0x20c2   :  { %v3227_v59 = vsub.f32 %v6215_v56, %v5162_v49  ;;  %5165 = vmatprep.mubr.bf16.mxu0 %v3244_v12  ;;  %v4523_v28 = vclamps-f32 %v3224_v63, 1.345  ;;  %v3418_v63 = vmul.f32 0.9998, %v6271_v0 }
0x20c3   :  { %v3208_v24 = vpop.f32.mrf.mxu1  ;;  %5166 = vmatmul.mubr.bf16.vlgmr.msra.gmra.mxu0 %v3245_v29 }
0x20c4   :  { %v4526_v19 = vclamps-f32 %v3227_v59, 1.345  ;;  %v3225_v33 = vsub.f32 %v6221_v54, %v3208_v24  ;;  %v3419_v59 = vmul.f32 0.9998, %v6273_v40 }
0x20c6   :  { %v3247_v20 = vpack.c.bf16 %v4526_v19, %v4525_v35  ;;  %v4524_v44 = vclamps-f32 %v3225_v33, 1.345 }
0x20c8   :  { %v3246_v8 = vpack.c.bf16 %v4524_v44, %v4523_v28  ;;  %5174 = vmatpush3.bf16.msra.mxu1 %v3247_v20 }
0x20c9   :  { %5175 = vmatprep.subr.bf16.mxu1 %v5334_v15 }
0x20ca   :  { %5169 = vmatprep.mubr.bf16.mxu0 %v3246_v8 }
0x20cb   :  { %5170 = vmatmul.mubr.bf16.gmra.mxu0 %v3247_v20 }
0x20cc   :  { %5176 = vmatpush3.bf16.msra.mxu1 %v3246_v8 }
0x20cd   :  { %5177 = vmatprep.subr.bf16.mxu1 %v5334_v15 }
0x20d0   :  { %5178 = vmatpush3.bf16.msra.mxu1 %v3245_v29 }
0x20d1   :  { %5179 = vmatprep.subr.bf16.mxu1 %v5334_v15 }
0x20d4   :  { %5180 = vmatpush3.bf16.msra.mxu1 %v3244_v12 }
0x2183   :  { %v5167_v43 = vpop.f32.mrf.mxu0 }
0x2184   :  { %v3323_v34 = vmul.f32 0.002, %v5167_v43 }
0x2185   :  { %v3282_v52 = vpop.f32.mrf.mxu0 }
0x2186   :  { %v3321_v32 = vmul.f32 0.002, %v3282_v52  ;;  %v6299_v37 = vadd.f32 %v3323_v34, %v3315_v6 }
0x2187   :  { %v5168_v11 = vpop.f32.mrf.mxu0 }
0x2188   :  { %v6296_v13 = vadd.f32 %v3321_v32, %v3313_v48  ;;  %v3324_v30 = vmul.f32 0.002, %v5168_v11 }
0x2189   :  { %v3285_v3 = vpop.f32.mrf.mxu0 }
0x218a   :  { %v6301_v55 = vadd.f32 %v3324_v30, %v3316_v46  ;;  %v3322_v39 = vmul.f32 0.002, %v3285_v3  ;;  %3341 = vxpose.xlu1.b32.start [1/8] (short) (narrow) %v6296_v13, 16 }
0x218b   :  { %v5171_v27 = vpop.f32.mrf.mxu0 }
0x218c   :  { %v3338_v4 = vpack.c.bf16 %v6301_v55, %v6299_v37  ;;  %v6307_v18 = vadd.f32 %v3322_v39, %v3314_v36  ;;  %v3327_v10 = vmul.f32 0.002, %v5171_v27 }
0x218d   :  { %v3298_v53 = vpop.f32.mrf.mxu0 }
0x218e   :  { %v3337_v26 = vpack.c.bf16 %v6307_v18, %v6296_v13  ;;  %3342 = vxpose.xlu1.b32.cont [2/8] (short) (narrow) %v6307_v18, 16  ;;  %v3325_v1 = vmul.f32 0.002, %v3298_v53  ;;  %v6316_v7 = vadd.f32 %v3327_v10, %v3319_v2 }
0x218f   :  { %v5172_v47 = vpop.f32.mrf.mxu0 }
0x2190   :  { %v3328_v62 = vmul.f32 0.002, %v5172_v47  ;;  %5187 = vmatprep.mubr.msk.bf16.mxu0 %vm39_vm0, %v3337_v26  ;;  %v6322_v60 = vadd.f32 %v3325_v1, %v3317_v45 }
0x2191   :  { %v3301_v14 = vpop.f32.mrf.mxu0 }
0x2192   :  { %v6318_v50 = vadd.f32 %v3328_v62, %v3320_v61  ;;  %v3326_v9 = vmul.f32 0.002, %v3301_v14  ;;  %3343 = vxpose.xlu1.b32.cont [3/8] (short) (narrow) %v6299_v37, 16 }
0x2194   :  { %v3340_v21 = vpack.c.bf16 %v6318_v50, %v6316_v7  ;;  %v6326_v16 = vadd.f32 %v3326_v9, %v3318_v31 }
0x2196   :  { %v3339_v58 = vpack.c.bf16 %v6326_v16, %v6322_v60  ;;  %3344 = vxpose.xlu1.b32.cont [4/8] (short) (narrow) %v6301_v55, 16 }
0x219a   :  { %3345 = vxpose.xlu1.b32.cont [5/8] (short) (narrow) %v6322_v60, 16 }
0x219e   :  { %3346 = vxpose.xlu1.b32.cont [6/8] (short) (narrow) %v6326_v16, 16 }
0x21a2   :  { %3347 = vxpose.xlu1.b32.cont [7/8] (short) (narrow) %v6316_v7, 16 }
0x21a6   :  { %3348 = vxpose.xlu1.b32.end [8/8] (short) (narrow) %v6318_v50, 16 }
0x2206   :  { %v3357_v38 = vpop.trf.xlu1 }
0x220a   :  { %v3358_v57 = vpop.trf.xlu1 }
0x220b   :  { %v3373_v25 = vpack.c.bf16 %v3358_v57, %v3357_v38  ;;  %v3597_v57 = vmul.f32 0.9998, %v6299_v37 }
0x220d   :  { %5182 = vmatmul.mubr.msk.bf16.vlgmr.msra.gmra.mxu1 %vm271_vm2, %v3373_v25 }
0x22cd   :  { %v3411_v12 = vpop.f32.mrf.mxu1 }
0x22ce   :  { %v3420_v29 = vmul.f32 0.002, %v3411_v12  ;;  %v3598_v12 = vmul.f32 0.9998, %v6301_v55 }
0x22cf   :  { %v5183_v51 = vpop.f32.mrf.mxu1 }
0x22d0   :  { %v6338_v19 = vadd.f32 %v3420_v29, %v3418_v63 }
0x22d1   :  { %v3414_v49 = vpop.f32.mrf.mxu1 }
0x22d2   :  { %v3421_v24 = vmul.f32 0.002, %v3414_v49 }
0x22d3   :  { %v5184_v35 = vpop.f32.mrf.mxu1 }
0x22d4   :  { %v6340_v33 = vadd.f32 %v3421_v24, %v3419_v59  ;;  %v3596_v59 = vmul.f32 0.9998, %v6307_v18 }
0x22d6   :  { %v3424_v28 = vpack.c.bf16 %v6340_v33, %v6338_v19 }
0x22d8   :  { %5185 = vmatprep.subr.bf16.mxu0 %v3424_v28  ;;  %5195 = vmatprep.subr.bf16.mxu1 %v3424_v28 }
0x22d9   :  { %5186 = vmatpush3.bf16.msra.mxu0 %v3424_v28  ;;  %5196 = vmatpush3.bf16.xpose.msra.mxu1 %v3424_v28 }
0x22da   :  { %5205 = vmatprep.subr.bf16.mxu0 %v5334_v15 }
0x22dc   :  { %5188 = vmatmul.mubr.msk.bf16.vlgmr.msra.gmra.mxu0 %vm39_vm0, %v3338_v4 }
0x22dd   :  { %5191 = vmatprep.mubr.msk.bf16.mxu0 %vm39_vm0, %v3339_v58 }
0x22e4   :  { %5192 = vmatmul.mubr.msk.bf16.gmra.mxu0 %vm39_vm0, %v3340_v21  ;;  %v3595_v21 = vmul.f32 0.9998, %v6296_v13 }
0x22e5   :  { %5213 = vmatprep.mubr.msk.bf16.mxu0 %vm5335_vm1, %v5334_v15 }
0x239c   :  { %v5189_v0 = vpop.f32.mrf.mxu0 }
0x239d   :  { %v3504_v43 = vsub.f32 %v6191_v5, %v5189_v0 }
0x239e   :  { %v3471_v40 = vpop.f32.mrf.mxu0 }
0x239f   :  { %v3502_v44 = vsub.f32 %v6179_v17, %v3471_v40  ;;  %v4534_v46 = vclamps-f32 %v3504_v43, 1.345  ;;  %v3601_v40 = vmul.f32 0.9998, %v6316_v7  ;;  %v3599_v43 = vmul.f32 0.9998, %v6322_v60 }
0x23a0   :  { %v5190_v20 = vpop.f32.mrf.mxu0 }
0x23a1   :  { %v3505_v8 = vsub.f32 %v6185_v22, %v5190_v20  ;;  %v4532_v11 = vclamps-f32 %v3502_v44, 1.345  ;;  %v3602_v44 = vmul.f32 0.9998, %v6318_v50 }
0x23a2   :  { %v3474_v52 = vpop.f32.mrf.mxu0 }
0x23a3   :  { %v3503_v34 = vsub.f32 %v6197_v23, %v3474_v52  ;;  %v4535_v48 = vclamps-f32 %v3505_v8, 1.345 }
0x23a4   :  { %v5193_v32 = vpop.f32.mrf.mxu0 }
0x23a5   :  { %v4533_v6 = vclamps-f32 %v3503_v34, 1.345  ;;  %v3508_v36 = vsub.f32 %v6203_v41, %v5193_v32  ;;  %v3527_v39 = vpack.c.bf16 %v4535_v48, %v4534_v46  ;;  %v3600_v32 = vmul.f32 0.9998, %v6326_v16 }
0x23a6   :  { %v3487_v30 = vpop.f32.mrf.mxu0 }
0x23a7   :  { %v3526_v3 = vpack.c.bf16 %v4533_v6, %v4532_v11  ;;  %v3506_v4 = vsub.f32 %v6209_v42, %v3487_v30  ;;  %v4538_v10 = vclamps-f32 %v3508_v36, 1.345 }
0x23a8   :  { %v5194_v27 = vpop.f32.mrf.mxu0 }
0x23a9   :  { %v3509_v53 = vsub.f32 %v6215_v56, %v5194_v27  ;;  %5197 = vmatprep.mubr.bf16.mxu1 %v3526_v3  ;;  %v4536_v1 = vclamps-f32 %v3506_v4, 1.345  ;;  %v3700_v4 = vmul.f32 0.9998, %v6338_v19 }
0x23aa   :  { %v3490_v26 = vpop.f32.mrf.mxu0  ;;  %5198 = vmatmul.mubr.bf16.vlgmr.msra.gmra.mxu1 %v3527_v39 }
0x23ab   :  { %v4539_v2 = vclamps-f32 %v3509_v53, 1.345  ;;  %v3507_v47 = vsub.f32 %v6221_v54, %v3490_v26  ;;  %v3701_v53 = vmul.f32 0.9998, %v6340_v33 }
0x23ad   :  { %v3529_v61 = vpack.c.bf16 %v4539_v2, %v4538_v10  ;;  %v4537_v62 = vclamps-f32 %v3507_v47, 1.345 }
0x23af   :  { %v3528_v45 = vpack.c.bf16 %v4537_v62, %v4536_v1  ;;  %5206 = vmatpush3.bf16.msra.mxu0 %v3529_v61 }
0x23b0   :  { %5207 = vmatprep.subr.bf16.mxu0 %v5334_v15 }
0x23b1   :  { %5201 = vmatprep.mubr.bf16.mxu1 %v3528_v45 }
0x23b2   :  { %5202 = vmatmul.mubr.bf16.gmra.mxu1 %v3529_v61 }
0x23b3   :  { %5208 = vmatpush3.bf16.msra.mxu0 %v3528_v45 }
0x23b4   :  { %5209 = vmatprep.subr.bf16.mxu0 %v5334_v15 }
0x23b7   :  { %5210 = vmatpush3.bf16.msra.mxu0 %v3527_v39 }
0x23b8   :  { %5211 = vmatprep.subr.bf16.mxu0 %v5334_v15 }
0x23bb   :  { %5212 = vmatpush3.bf16.msra.mxu0 %v3526_v3 }
0x246a   :  { %v5199_v14 = vpop.f32.mrf.mxu1 }
0x246b   :  { %v3605_v9 = vmul.f32 0.002, %v5199_v14 }
0x246c   :  { %v3564_v31 = vpop.f32.mrf.mxu1 }
0x246d   :  { %v3603_v58 = vmul.f32 0.002, %v3564_v31  ;;  %v6366_v49 = vadd.f32 %v3605_v9, %v3597_v57 }
0x246e   :  { %v5200_v38 = vpop.f32.mrf.mxu1 }
0x246f   :  { %v6363_v25 = vadd.f32 %v3603_v58, %v3595_v21  ;;  %v3606_v51 = vmul.f32 0.002, %v5200_v38 }
0x2470   :  { %v3567_v29 = vpop.f32.mrf.mxu1 }
0x2471   :  { %v6368_v63 = vadd.f32 %v3606_v51, %v3598_v12  ;;  %v3604_v24 = vmul.f32 0.002, %v3567_v29  ;;  %3623 = vxpose.xlu0.b32.start [1/8] (short) (narrow) %v6363_v25, 16 }
0x2472   :  { %v5203_v13 = vpop.f32.mrf.mxu1 }
0x2473   :  { %v3620_v35 = vpack.c.bf16 %v6368_v63, %v6366_v49  ;;  %v6374_v37 = vadd.f32 %v3604_v24, %v3596_v59  ;;  %v3609_v0 = vmul.f32 0.002, %v5203_v13 }
0x2474   :  { %v3580_v28 = vpop.f32.mrf.mxu1 }
0x2475   :  { %v3619_v55 = vpack.c.bf16 %v6374_v37, %v6363_v25  ;;  %3624 = vxpose.xlu0.b32.cont [2/8] (short) (narrow) %v6374_v37, 16  ;;  %v3607_v18 = vmul.f32 0.002, %v3580_v28  ;;  %v6383_v34 = vadd.f32 %v3609_v0, %v3601_v40 }
0x2476   :  { %v5204_v20 = vpop.f32.mrf.mxu1 }
0x2477   :  { %v3610_v8 = vmul.f32 0.002, %v5204_v20  ;;  %5219 = vmatprep.mubr.msk.bf16.mxu1 %vm39_vm0, %v3619_v55  ;;  %v6389_v7 = vadd.f32 %v3607_v18, %v3599_v43 }
0x2478   :  { %v3583_v52 = vpop.f32.mrf.mxu1 }
0x2479   :  { %v6385_v48 = vadd.f32 %v3610_v8, %v3602_v44  ;;  %v3608_v11 = vmul.f32 0.002, %v3583_v52  ;;  %3625 = vxpose.xlu0.b32.cont [3/8] (short) (narrow) %v6366_v49, 16 }
0x247b   :  { %v3622_v50 = vpack.c.bf16 %v6385_v48, %v6383_v34  ;;  %v6393_v6 = vadd.f32 %v3608_v11, %v3600_v32 }
0x247d   :  { %v3621_v60 = vpack.c.bf16 %v6393_v6, %v6389_v7  ;;  %3626 = vxpose.xlu0.b32.cont [4/8] (short) (narrow) %v6368_v63, 16 }
0x2481   :  { %3627 = vxpose.xlu0.b32.cont [5/8] (short) (narrow) %v6389_v7, 16 }
0x2485   :  { %3628 = vxpose.xlu0.b32.cont [6/8] (short) (narrow) %v6393_v6, 16 }
0x2489   :  { %3629 = vxpose.xlu0.b32.cont [7/8] (short) (narrow) %v6383_v34, 16 }
0x248d   :  { %3630 = vxpose.xlu0.b32.end [8/8] (short) (narrow) %v6385_v48, 16 }
0x24ed   :  { %v3639_v16 = vpop.trf.xlu0 }
0x24f1   :  { %v3640_v46 = vpop.trf.xlu0 }
0x24f2   :  { %v3655_v30 = vpack.c.bf16 %v3640_v46, %v3639_v16  ;;  %v3879_v46 = vmul.f32 0.9998, %v6366_v49 }
0x24f4   :  { %5214 = vmatmul.mubr.msk.bf16.vlgmr.msra.gmra.mxu0 %vm271_vm2, %v3655_v30 }
0x25b4   :  { %v3693_v3 = vpop.f32.mrf.mxu0 }
0x25b5   :  { %v3702_v39 = vmul.f32 0.002, %v3693_v3  ;;  %v3880_v3 = vmul.f32 0.9998, %v6368_v63 }
0x25b6   :  { %v5215_v36 = vpop.f32.mrf.mxu0 }
0x25b7   :  { %v6405_v2 = vadd.f32 %v3702_v39, %v3700_v4 }
0x25b8   :  { %v3696_v27 = vpop.f32.mrf.mxu0 }
0x25b9   :  { %v3703_v26 = vmul.f32 0.002, %v3696_v27 }
0x25ba   :  { %v5216_v10 = vpop.f32.mrf.mxu0 }
0x25bb   :  { %v6407_v47 = vadd.f32 %v3703_v26, %v3701_v53  ;;  %v3878_v53 = vmul.f32 0.9998, %v6374_v37 }
0x25bd   :  { %v3706_v1 = vpack.c.bf16 %v6407_v47, %v6405_v2 }
0x25bf   :  { %5217 = vmatprep.subr.bf16.mxu1 %v3706_v1  ;;  %5227 = vmatprep.subr.bf16.mxu0 %v3706_v1 }
0x25c0   :  { %5218 = vmatpush3.bf16.msra.mxu1 %v3706_v1  ;;  %5228 = vmatpush3.bf16.xpose.msra.mxu0 %v3706_v1 }
0x25c1   :  { %5237 = vmatprep.subr.bf16.mxu1 %v5334_v15 }
0x25c3   :  { %5220 = vmatmul.mubr.msk.bf16.vlgmr.msra.gmra.mxu1 %vm39_vm0, %v3620_v35 }
0x25c4   :  { %5223 = vmatprep.mubr.msk.bf16.mxu1 %vm39_vm0, %v3621_v60 }
0x25cb   :  { %5224 = vmatmul.mubr.msk.bf16.gmra.mxu1 %vm39_vm0, %v3622_v50  ;;  %v3877_v50 = vmul.f32 0.9998, %v6363_v25 }
0x25cc   :  { %5245 = vmatprep.mubr.msk.bf16.mxu1 %vm5335_vm1, %v5334_v15 }
0x2683   :  { %v5221_v19 = vpop.f32.mrf.mxu1 }
0x2684   :  { %v3786_v14 = vsub.f32 %v6191_v5, %v5221_v19 }
0x2685   :  { %v3753_v33 = vpop.f32.mrf.mxu1 }
0x2686   :  { %v3784_v62 = vsub.f32 %v6179_v17, %v3753_v33  ;;  %v4547_v12 = vclamps-f32 %v3786_v14, 1.345  ;;  %v3883_v33 = vmul.f32 0.9998, %v6383_v34  ;;  %v3881_v14 = vmul.f32 0.9998, %v6389_v7 }
0x2687   :  { %v5222_v61 = vpop.f32.mrf.mxu1 }
0x2688   :  { %v3787_v45 = vsub.f32 %v6185_v22, %v5222_v61  ;;  %v4545_v38 = vclamps-f32 %v3784_v62, 1.345  ;;  %v3884_v62 = vmul.f32 0.9998, %v6385_v48 }
0x2689   :  { %v3756_v31 = vpop.f32.mrf.mxu1 }
0x268a   :  { %v3785_v9 = vsub.f32 %v6197_v23, %v3756_v31  ;;  %v4548_v21 = vclamps-f32 %v3787_v45, 1.345 }
0x268b   :  { %v5225_v58 = vpop.f32.mrf.mxu1 }
0x268c   :  { %v4546_v57 = vclamps-f32 %v3785_v9, 1.345  ;;  %v3790_v59 = vsub.f32 %v6203_v41, %v5225_v58  ;;  %v3809_v24 = vpack.c.bf16 %v4548_v21, %v4547_v12  ;;  %v3882_v58 = vmul.f32 0.9998, %v6393_v6 }
0x268d   :  { %v3769_v51 = vpop.f32.mrf.mxu1 }
0x268e   :  { %v3808_v29 = vpack.c.bf16 %v4546_v57, %v4545_v38  ;;  %v3788_v35 = vsub.f32 %v6209_v42, %v3769_v51  ;;  %v4551_v0 = vclamps-f32 %v3790_v59, 1.345 }
0x268f   :  { %v5226_v13 = vpop.f32.mrf.mxu1 }
0x2690   :  { %v3791_v28 = vsub.f32 %v6215_v56, %v5226_v13  ;;  %5229 = vmatprep.mubr.bf16.mxu0 %v3808_v29  ;;  %v4549_v18 = vclamps-f32 %v3788_v35, 1.345  ;;  %v3982_v35 = vmul.f32 0.9998, %v6405_v2 }
0x2691   :  { %v3772_v55 = vpop.f32.mrf.mxu1  ;;  %5230 = vmatmul.mubr.bf16.vlgmr.msra.gmra.mxu0 %v3809_v24 }
0x2692   :  { %v4552_v40 = vclamps-f32 %v3791_v28, 1.345  ;;  %v3789_v20 = vsub.f32 %v6221_v54, %v3772_v55  ;;  %v3983_v28 = vmul.f32 0.9998, %v6407_v47 }
0x2694   :  { %v3811_v44 = vpack.c.bf16 %v4552_v40, %v4551_v0  ;;  %v4550_v8 = vclamps-f32 %v3789_v20, 1.345 }
0x2696   :  { %v3810_v43 = vpack.c.bf16 %v4550_v8, %v4549_v18  ;;  %5238 = vmatpush3.bf16.msra.mxu1 %v3811_v44 }
0x2697   :  { %5239 = vmatprep.subr.bf16.mxu1 %v5334_v15 }
0x2698   :  { %5233 = vmatprep.mubr.bf16.mxu0 %v3810_v43 }
0x2699   :  { %5234 = vmatmul.mubr.bf16.gmra.mxu0 %v3811_v44 }
0x269a   :  { %5240 = vmatpush3.bf16.msra.mxu1 %v3810_v43 }
0x269b   :  { %5241 = vmatprep.subr.bf16.mxu1 %v5334_v15 }
0x269e   :  { %5242 = vmatpush3.bf16.msra.mxu1 %v3809_v24 }
0x269f   :  { %5243 = vmatprep.subr.bf16.mxu1 %v5334_v15 }
0x26a2   :  { %5244 = vmatpush3.bf16.msra.mxu1 %v3808_v29 }
0x2751   :  { %v5231_v52 = vpop.f32.mrf.mxu0 }
0x2752   :  { %v3887_v11 = vmul.f32 0.002, %v5231_v52 }
0x2753   :  { %v3846_v32 = vpop.f32.mrf.mxu0 }
0x2754   :  { %v3885_v60 = vmul.f32 0.002, %v3846_v32  ;;  %v6433_v27 = vadd.f32 %v3887_v11, %v3879_v46 }
0x2755   :  { %v5232_v16 = vpop.f32.mrf.mxu0 }
0x2756   :  { %v6430_v30 = vadd.f32 %v3885_v60, %v3877_v50  ;;  %v3888_v36 = vmul.f32 0.002, %v5232_v16 }
0x2757   :  { %v3849_v39 = vpop.f32.mrf.mxu0 }
0x2758   :  { %v6435_v4 = vadd.f32 %v3888_v36, %v3880_v3  ;;  %v3886_v26 = vmul.f32 0.002, %v3849_v39  ;;  %3905 = vxpose.xlu1.b32.start [1/8] (short) (narrow) %v6430_v30, 16 }
0x2759   :  { %v5235_v25 = vpop.f32.mrf.mxu0 }
0x275a   :  { %v3902_v10 = vpack.c.bf16 %v6435_v4, %v6433_v27  ;;  %v6441_v49 = vadd.f32 %v3886_v26, %v3878_v53  ;;  %v3891_v19 = vmul.f32 0.002, %v5235_v25 }
0x275b   :  { %v3862_v1 = vpop.f32.mrf.mxu0 }
0x275c   :  { %v3901_v63 = vpack.c.bf16 %v6441_v49, %v6430_v30  ;;  %3906 = vxpose.xlu1.b32.cont [2/8] (short) (narrow) %v6441_v49, 16  ;;  %v3889_v37 = vmul.f32 0.002, %v3862_v1  ;;  %v6450_v9 = vadd.f32 %v3891_v19, %v3883_v33 }
0x275d   :  { %v5236_v61 = vpop.f32.mrf.mxu0 }
0x275e   :  { %v3892_v45 = vmul.f32 0.002, %v5236_v61  ;;  %5251 = vmatprep.mubr.msk.bf16.mxu0 %vm39_vm0, %v3901_v63  ;;  %v6456_v34 = vadd.f32 %v3889_v37, %v3881_v14  ;;  %v4159_v37 = vmul.f32 0.9998, %v6430_v30  ;;  %v4162_v14 = vmul.f32 0.9998, %v6435_v4 }
0x275f   :  { %v3865_v31 = vpop.f32.mrf.mxu0 }
0x2760   :  { %v6452_v21 = vadd.f32 %v3892_v45, %v3884_v62  ;;  %v3890_v38 = vmul.f32 0.002, %v3865_v31  ;;  %3907 = vxpose.xlu1.b32.cont [3/8] (short) (narrow) %v6433_v27, 16  ;;  %v4161_v45 = vmul.f32 0.9998, %v6433_v27 }
0x2761   :  { %v4165_v27 = vmul.f32 0.9998, %v6450_v9 }
0x2762   :  { %v3904_v48 = vpack.c.bf16 %v6452_v21, %v6450_v9  ;;  %v6460_v57 = vadd.f32 %v3890_v38, %v3882_v58 }
0x2764   :  { %v3903_v7 = vpack.c.bf16 %v6460_v57, %v6456_v34  ;;  %3908 = vxpose.xlu1.b32.cont [4/8] (short) (narrow) %v6435_v4, 16 }
0x2768   :  { %3909 = vxpose.xlu1.b32.cont [5/8] (short) (narrow) %v6456_v34, 16 }
0x276c   :  { %3910 = vxpose.xlu1.b32.cont [6/8] (short) (narrow) %v6460_v57, 16 }
0x2770   :  { %3911 = vxpose.xlu1.b32.cont [7/8] (short) (narrow) %v6450_v9, 16 }
0x2774   :  { %3912 = vxpose.xlu1.b32.end [8/8] (short) (narrow) %v6452_v21, 16 }
0x27d4   :  { %v3921_v6 = vpop.trf.xlu1 }
0x27d8   :  { %v3922_v12 = vpop.trf.xlu1 }
0x27d9   :  { %v3937_v51 = vpack.c.bf16 %v3922_v12, %v3921_v6  ;;  %v4160_v6 = vmul.f32 0.9998, %v6441_v49  ;;  %v4163_v49 = vmul.f32 0.9998, %v6456_v34 }
0x27db   :  { %5246 = vmatmul.mubr.msk.bf16.vlgmr.msra.gmra.mxu1 %vm271_vm2, %v3937_v51 }
0x289b   :  { %v3975_v29 = vpop.f32.mrf.mxu1 }
0x289c   :  { %v3984_v24 = vmul.f32 0.002, %v3975_v29 }
0x289d   :  { %v5247_v59 = vpop.f32.mrf.mxu1 }
0x289e   :  { %v6472_v40 = vadd.f32 %v3984_v24, %v3982_v35  ;;  %v4166_v35 = vmul.f32 0.9998, %v6452_v21 }
0x289f   :  { %v3978_v13 = vpop.f32.mrf.mxu1 }
0x28a0   :  { %v3985_v55 = vmul.f32 0.002, %v3978_v13 }
0x28a1   :  { %v5248_v0 = vpop.f32.mrf.mxu1 }
0x28a2   :  { %v6474_v20 = vadd.f32 %v3985_v55, %v3983_v28 }
0x28a4   :  { %v3988_v18 = vpack.c.bf16 %v6474_v20, %v6472_v40 }
0x28a6   :  { %5249 = vmatprep.subr.bf16.mxu0 %v3988_v18  ;;  %5259 = vmatprep.subr.bf16.mxu1 %v3988_v18 }
0x28a7   :  { %5250 = vmatpush3.bf16.msra.mxu0 %v3988_v18  ;;  %5260 = vmatpush3.bf16.xpose.msra.mxu1 %v3988_v18 }
0x28a8   :  { %5269 = vmatprep.subr.bf16.mxu0 %v5334_v15 }
0x28aa   :  { %5252 = vmatmul.mubr.msk.bf16.vlgmr.msra.gmra.mxu0 %vm39_vm0, %v3902_v10 }
0x28ab   :  { %5255 = vmatprep.mubr.msk.bf16.mxu0 %vm39_vm0, %v3903_v7 }
0x28b2   :  { %5256 = vmatmul.mubr.msk.bf16.gmra.mxu0 %vm39_vm0, %v3904_v48 }
0x28b3   :  { %5277 = vmatprep.mubr.msk.bf16.mxu0 %vm5335_vm1, %v5334_v15 }
0x296a   :  { %v5253_v2 = vpop.f32.mrf.mxu0 }
0x296b   :  { %v4068_v52 = vsub.f32 %v6191_v5, %v5253_v2  ;;  %v4164_v2 = vmul.f32 0.9998, %v6460_v57 }
0x296c   :  { %v4035_v47 = vpop.f32.mrf.mxu0 }
0x296d   :  { %v4066_v8 = vsub.f32 %v6179_v17, %v4035_v47  ;;  %v4560_v3 = vclamps-f32 %v4068_v52, 1.345 }
0x296e   :  { %v5254_v44 = vpop.f32.mrf.mxu0 }
0x296f   :  { %v4069_v43 = vsub.f32 %v6185_v22, %v5254_v44  ;;  %v4558_v16 = vclamps-f32 %v4066_v8, 1.345 }
0x2970   :  { %v4038_v32 = vpop.f32.mrf.mxu0 }
0x2971   :  { %v4067_v11 = vsub.f32 %v6197_v23, %v4038_v32  ;;  %v4561_v50 = vclamps-f32 %v4069_v43, 1.345 }
0x2972   :  { %v5257_v60 = vpop.f32.mrf.mxu0 }
0x2973   :  { %v4559_v46 = vclamps-f32 %v4067_v11, 1.345  ;;  %v4072_v53 = vsub.f32 %v6203_v41, %v5257_v60  ;;  %v4091_v26 = vpack.c.bf16 %v4561_v50, %v4560_v3  ;;  %v4264_v60 = vmul.f32 0.9998, %v6472_v40 }
0x2974   :  { %v4051_v36 = vpop.f32.mrf.mxu0 }
0x2975   :  { %v4090_v39 = vpack.c.bf16 %v4559_v46, %v4558_v16  ;;  %v4070_v17 = vsub.f32 %v6209_v42, %v4051_v36  ;;  %v4564_v10 = vclamps-f32 %v4072_v53, 1.345  ;;  %v4265_v16 = vmul.f32 0.9998, %v6474_v20 }
0x2976   :  { %v5258_v25 = vpop.f32.mrf.mxu0 }
0x2977   :  { %v4073_v22 = vsub.f32 %v6215_v56, %v5258_v25  ;;  %5261 = vmatprep.mubr.bf16.mxu1 %v4090_v39  ;;  %v4562_v63 = vclamps-f32 %v4070_v17, 1.345 }
0x2978   :  { %v4054_v5 = vpop.f32.mrf.mxu0  ;;  %5262 = vmatmul.mubr.bf16.vlgmr.msra.gmra.mxu1 %v4091_v26 }
0x2979   :  { %v4565_v23 = vclamps-f32 %v4073_v22, 1.345  ;;  %v4071_v1 = vsub.f32 %v6221_v54, %v4054_v5 }
0x297b   :  { %v4093_v19 = vpack.c.bf16 %v4565_v23, %v4564_v10  ;;  %v4563_v33 = vclamps-f32 %v4071_v1, 1.345 }
0x297d   :  { %v4092_v61 = vpack.c.bf16 %v4563_v33, %v4562_v63  ;;  %5270 = vmatpush3.bf16.msra.mxu0 %v4093_v19 }
0x297e   :  { %5271 = vmatprep.subr.bf16.mxu0 %v5334_v15 }
0x297f   :  { %5265 = vmatprep.mubr.bf16.mxu1 %v4092_v61 }
0x2980   :  { %5266 = vmatmul.mubr.bf16.gmra.mxu1 %v4093_v19 }
0x2981   :  { %5272 = vmatpush3.bf16.msra.mxu0 %v4092_v61 }
0x2982   :  { %5273 = vmatprep.subr.bf16.mxu0 %v5334_v15 }
0x2985   :  { %5274 = vmatpush3.bf16.msra.mxu0 %v4091_v26 }
0x2986   :  { %5275 = vmatprep.subr.bf16.mxu0 %v5334_v15 }
0x2989   :  { %5276 = vmatpush3.bf16.msra.mxu0 %v4090_v39 }
0x2a38   :  { %v5263_v41 = vpop.f32.mrf.mxu1 }
0x2a39   :  { %v4169_v56 = vmul.f32 0.002, %v5263_v41 }
0x2a3a   :  { %v4128_v42 = vpop.f32.mrf.mxu1 }
0x2a3b   :  { %v4167_v54 = vmul.f32 0.002, %v4128_v42  ;;  %v4177_v48 = vadd.f32 %v4169_v56, %v4161_v45 }
0x2a3c   :  { %v5264_v62 = vpop.f32.mrf.mxu1 }
0x2a3d   :  { %v4170_v31 = vmul.f32 0.002, %v5264_v62  ;;  %v4175_v58 = vadd.f32 %v4167_v54, %v4159_v37 }
0x2a3e   :  { %v4131_v38 = vpop.f32.mrf.mxu1 }
0x2a3f   :  { %v4178_v7 = vadd.f32 %v4170_v31, %v4162_v14  ;;  %v4168_v15 = vmul.f32 0.002, %v4131_v38  ;;  %4187 = vxpose.xlu0.b32.start [1/8] (short) (narrow) %v4175_v58, 16 }
0x2a40   :  { %v5267_v12 = vpop.f32.mrf.mxu1 }
0x2a41   :  { %v4184_v51 = vpack.c.bf16 %v4178_v7, %v4177_v48  ;;  %v4176_v29 = vadd.f32 %v4168_v15, %v4160_v6  ;;  %v4173_v30 = vmul.f32 0.002, %v5267_v12 }
0x2a42   :  { %v4144_v59 = vpop.f32.mrf.mxu1 }
0x2a43   :  { %v4183_v24 = vpack.c.bf16 %v4176_v29, %v4175_v58  ;;  %4188 = vxpose.xlu0.b32.cont [2/8] (short) (narrow) %v4176_v29, 16  ;;  %v4171_v4 = vmul.f32 0.002, %v4144_v59  ;;  %v4181_v0 = vadd.f32 %v4173_v30, %v4165_v27 }
0x2a44   :  { %v5268_v13 = vpop.f32.mrf.mxu1 }
0x2a45   :  { %v4174_v28 = vmul.f32 0.002, %v5268_v13  ;;  %5283 = vmatprep.mubr.msk.bf16.mxu1 %vm39_vm0, %v4183_v24  ;;  %v4179_v44 = vadd.f32 %v4171_v4, %v4163_v49 }
0x2a46   :  { %v4147_v55 = vpop.f32.mrf.mxu1 }
0x2a47   :  { %v4182_v18 = vadd.f32 %v4174_v28, %v4166_v35  ;;  %v4172_v47 = vmul.f32 0.002, %v4147_v55  ;;  %4189 = vxpose.xlu0.b32.cont [3/8] (short) (narrow) %v4177_v48, 16 }
0x2a49   :  { %v4186_v8 = vpack.c.bf16 %v4182_v18, %v4181_v0  ;;  %v4180_v43 = vadd.f32 %v4172_v47, %v4164_v2 }
0x2a4b   :  { %v4185_v9 = vpack.c.bf16 %v4180_v43, %v4179_v44  ;;  %4190 = vxpose.xlu0.b32.cont [4/8] (short) (narrow) %v4178_v7, 16 }
0x2a4f   :  { %4191 = vxpose.xlu0.b32.cont [5/8] (short) (narrow) %v4179_v44, 16 }
0x2a53   :  { %4192 = vxpose.xlu0.b32.cont [6/8] (short) (narrow) %v4180_v43, 16 }
0x2a57   :  { %4193 = vxpose.xlu0.b32.cont [7/8] (short) (narrow) %v4181_v0, 16 }
0x2a5b   :  { %4194 = vxpose.xlu0.b32.end [8/8] (short) (narrow) %v4182_v18, 16 }
0x2abb   :  { %v4203_v21 = vpop.trf.xlu0 }
0x2abf   :  { %v4204_v52 = vpop.trf.xlu0 }
0x2ac0   :  { %v4219_v32 = vpack.c.bf16 %v4204_v52, %v4203_v21 }
0x2ac2   :  { %5278 = vmatmul.mubr.msk.bf16.vlgmr.msra.gmra.mxu0 %vm271_vm2, %v4219_v32 }
0x2b82   :  { %v4257_v34 = vpop.f32.mrf.mxu0 }
0x2b83   :  { %v4266_v50 = vmul.f32 0.002, %v4257_v34 }
0x2b84   :  { %v5279_v11 = vpop.f32.mrf.mxu0 }
0x2b85   :  { %v4268_v36 = vadd.f32 %v4266_v50, %v4264_v60 }
0x2b86   :  { %v4260_v57 = vpop.f32.mrf.mxu0 }
0x2b87   :  { %v4267_v46 = vmul.f32 0.002, %v4260_v57 }
0x2b88   :  { %v5280_v3 = vpop.f32.mrf.mxu0 }
0x2b89   :  { %v4269_v39 = vadd.f32 %v4267_v46, %v4265_v16 }
0x2b8b   :  { %v4270_v53 = vpack.c.bf16 %v4269_v39, %v4268_v36 }
0x2b8d   :  { %5281 = vmatprep.subr.bf16.mxu1 %v4270_v53 }
0x2b8e   :  { %5282 = vmatpush3.bf16.msra.mxu1 %v4270_v53 }
0x2b91   :  { %5284 = vmatmul.mubr.msk.bf16.vlgmr.msra.gmra.mxu1 %vm39_vm0, %v4184_v51 }
0x2b92   :  { %5287 = vmatprep.mubr.msk.bf16.mxu1 %vm39_vm0, %v4185_v9 }
0x2b99   :  { %5288 = vmatmul.mubr.msk.bf16.gmra.mxu1 %vm39_vm0, %v4186_v8 }
0x2c51   :  { %v5285_v26 = vpop.f32.mrf.mxu1 }
0x2c52   :  { %4350 = vst [vmem:[#allocation2 + $0x10] sm:$0xff] %v5285_v26 }
0x2c53   :  { %v4317_v25 = vpop.f32.mrf.mxu1 }
0x2c54   :  { %4348 = vst [vmem:[#allocation2] sm:$0xff] %v4317_v25 }
0x2c55   :  { %v5286_v40 = vpop.f32.mrf.mxu1 }
0x2c56   :  { %4351 = vst [vmem:[#allocation2 + $0x18] sm:$0xff] %v5286_v40 }
0x2c57   :  { %v4320_v20 = vpop.f32.mrf.mxu1 }
0x2c58   :  { %4349 = vst [vmem:[#allocation2 + $0x8] sm:$0xff] %v4320_v20 }
0x2c59   :  { %v5289_v17 = vpop.f32.mrf.mxu1 }
0x2c5a   :  { %4354 = vst [vmem:[#allocation2 + $0x30] sm:$0xff] %v5289_v17 }
0x2c5b   :  { %v4333_v22 = vpop.f32.mrf.mxu1 }
0x2c5c   :  { %4352 = vst [vmem:[#allocation2 + $0x20] sm:$0xff] %v4333_v22 }
0x2c5d   :  { %v5290_v5 = vpop.f32.mrf.mxu1 }
0x2c5e   :  { %4355 = vst [vmem:[#allocation2 + $0x38] sm:$0xff] %v5290_v5 }
0x2c5f   :  { %v4336_v10 = vpop.f32.mrf.mxu1 }
0x2c60   :  { %4353 = vst [vmem:[#allocation2 + $0x28] sm:$0xff] %v4336_v10 }
0x2c61   :  { %5323 = shalt.err (!%p5320_p4)
}
0x2c62   :  { %s5337_s23 = smov 128   ;;  %s5338_s24 = smov 8  }
0x2c63   :  { %4367 = dma.vmem_to_hbm [thread:$0]  %s4362_s2, 1024, %s6516_s3, [#allocation3], %s5337_s23, %s5337_s23, %s5338_s24  }
0x2c64   :  { %5332 = dma.done.wait [#allocation3], 1024  }
0x2c65   :  { %5333 = vsyncadd [#allocation3], 4294966272 }
0x2c66   :  { %4371 = vsyncpa [#allocation3], 1 }

</bundles_post_ra>
